<compile_context>
chip_gen: v7x
topology: tpu7x:2x2x1
jax: 0.10.0
libtpu: 0.0.40
codegen_flags: <defaults>
</compile_context>

<pallas_src>
import jax
import jax.numpy as jnp
from jax import lax
from jax.experimental import pallas as pl
from jax.experimental.pallas import tpu as pltpu

BN_EPS = 1e-5
_ACT_DTYPE = jnp.bfloat16       # inter-kernel activation storage dtype


# ----------------------------- hardware-aware budgets -----------------------------

def _round_up(v, m):
    return ((v + m - 1) // m) * m


def _vmem_capacity_bytes():
    try:
        return int(pltpu.get_tpu_info().vmem_capacity_bytes)
    except Exception:
        return 64 * 1024 * 1024          # conservative fallback (v7x per-core VMEM)


def _vmem_limit_bytes():
    # ~96 MiB on v5e/v6e (128 MiB VMEM), ~48 MiB on v7x (64 MiB VMEM).
    return min(int(_vmem_capacity_bytes() * 3 // 4), 96 * 1024 * 1024)


def _cparams(num_grid_axes):
    return pltpu.CompilerParams(
        dimension_semantics=("parallel",) * num_grid_axes,
        vmem_limit_bytes=_vmem_limit_bytes())


def _row_tile(m, row_bytes, resident_bytes, min_steps=4):
    """Largest row tile whose double-buffered working set fits the per-generation VMEM
    budget, capped so the grid keeps >= min_steps steps (megacore + DMA pipelining)."""
    budget = _vmem_capacity_bytes() // 4
    avail = max(budget - resident_bytes, 2 * 1024 * 1024)
    tm = int(avail // (2 * max(row_bytes, 1)))
    tm = max(8, min(2048, (tm // 8) * 8))
    cap = max(8, _round_up(-(-m // min_steps), 8))
    tm = min(tm, cap)
    return min(tm, _round_up(m, 8))


# ----------------------------------- kernels --------------------------------------

def _conv0_kernel(x_ref, w_ref, b_ref, o_ref):
    """conv0-as-matmul (im2col rows) with fused bias+ReLU epilogue (norm0 scale folded
    into the weight columns at trace time)."""
    acc = jnp.dot(x_ref[...], w_ref[...], preferred_element_type=jnp.float32)
    o_ref[...] = jnp.maximum(acc + b_ref[...], 0.0).astype(o_ref.dtype)


def make_dense_layer_kernel(h, w, seg_channels, cb, g):
    """One fused kernel per dense layer, one image per grid step.

    Inputs (refs):  x segments, norm1 scale segments, norm1 bias segments,
                    w1 (cin, cb)  [norm2 scale folded in], b2 (1, cb), w9 (9, cb, g).
    Output:         new_features (1, h*w, g).
    Scratch:        f32 halo buffer (h+2, w+2, cb) holding the bottleneck activation.
    """
    nseg = len(seg_channels)
    hw = h * w

    def kernel(*refs):
        x_refs = refs[0:nseg]
        s_refs = refs[nseg:2 * nseg]
        b_refs = refs[2 * nseg:3 * nseg]
        w1_ref, b2_ref, w9_ref, o_ref, apad_ref = refs[3 * nseg:]

        # norm1 + relu1 per segment, 1x1 conv1 accumulated over segments (this IS the
        # dense-block concat, without ever materializing it).
        acc = jnp.zeros((hw, cb), jnp.float32)
        off = 0
        for si in range(nseg):
            cs = seg_channels[si]
            a = jnp.maximum(
                x_refs[si][0].astype(jnp.float32) * s_refs[si][...] + b_refs[si][...], 0.0)
            acc = acc + jnp.dot(a.astype(jnp.bfloat16), w1_ref[off:off + cs, :],
                                preferred_element_type=jnp.float32)
            off += cs
        a2 = jnp.maximum(acc + b2_ref[...], 0.0)            # relu2(norm2(.)), f32 (hw, cb)

        # Bottleneck activation stays in VMEM: write into a zero halo scratch, then the
        # 3x3 / pad-1 conv is 9 shifted MXU matmuls accumulated in f32.
        apad_ref[...] = jnp.zeros_like(apad_ref)
        apad_ref[1:h + 1, 1:w + 1, :] = a2.reshape(h, w, cb)
        xp = apad_ref[...]
        out = jnp.zeros((hw, g), jnp.float32)
        for dy in range(3):
            for dx in range(3):
                patch = xp[dy:dy + h, dx:dx + w, :].reshape(hw, cb).astype(jnp.bfloat16)
                out = out + jnp.dot(patch, w9_ref[dy * 3 + dx],
                                    preferred_element_type=jnp.float32)
        o_ref[0] = out.astype(o_ref.dtype)

    return kernel


def make_transition_kernel(h, w, seg_channels, cout):
    """Transition: per-segment norm+relu, 1x1 conv accumulated over segments, fused
    2x2 / stride-2 average pool. One image per grid step."""
    nseg = len(seg_channels)
    hw = h * w

    def kernel(*refs):
        x_refs = refs[0:nseg]
        s_refs = refs[nseg:2 * nseg]
        b_refs = refs[2 * nseg:3 * nseg]
        wt_ref, o_ref = refs[3 * nseg:]

        acc = jnp.zeros((hw, cout), jnp.float32)
        off = 0
        for si in range(nseg):
            cs = seg_channels[si]
            a = jnp.maximum(
                x_refs[si][0].astype(jnp.float32) * s_refs[si][...] + b_refs[si][...], 0.0)
            acc = acc + jnp.dot(a.astype(jnp.bfloat16), wt_ref[off:off + cs, :],
                                preferred_element_type=jnp.float32)
            off += cs

        # Fused 2x2 average pool (even H, W), done with leading-dim reshapes only.
        y = acc.reshape(hw // 2, 2, cout)
        y = y[:, 0, :] + y[:, 1, :]                         # sum adjacent W pairs
        y = y.reshape(h // 2, w, cout)                      # [y-even x' | y-odd x'] per row group
        y = (y[:, :w // 2, :] + y[:, w // 2:, :]) * 0.25    # sum adjacent H pairs, / 4
        o_ref[0] = y.reshape((h // 2) * (w // 2), cout).astype(o_ref.dtype)

    return kernel


def make_head_kernel(seg_channels, num_classes):
    """norm5 + relu + adaptive_avg_pool2d((1,1)) + classifier, per-segment reduction.
    One image per grid step."""
    nseg = len(seg_channels)

    def kernel(*refs):
        x_refs = refs[0:nseg]
        s_refs = refs[nseg:2 * nseg]
        b_refs = refs[2 * nseg:3 * nseg]
        wc_ref, bc_ref, o_ref = refs[3 * nseg:]

        acc = jnp.zeros((1, num_classes), jnp.float32)
        off = 0
        for si in range(nseg):
            cs = seg_channels[si]
            a = jnp.maximum(
                x_refs[si][0].astype(jnp.float32) * s_refs[si][...] + b_refs[si][...], 0.0)
            pooled = jnp.mean(a, axis=0, keepdims=True)     # (1, cs)
            acc = acc + jnp.dot(pooled, wc_ref[off:off + cs, :],
                                preferred_element_type=jnp.float32)
            off += cs
        o_ref[0] = (acc + bc_ref[...]).astype(o_ref.dtype)

    return kernel


# ------------------------------- pallas_call wrappers ------------------------------

def pallas_conv0(col, w, b):
    m, k = col.shape
    n = w.shape[1]
    row_bytes = 2 * k + 2 * n + 4 * n                    # bf16 in + bf16 out + f32 acc
    resident = 2 * (2 * k * n + 4 * n)                   # double-buffered weights + bias
    tm = _row_tile(m, row_bytes, resident)
    return pl.pallas_call(
        _conv0_kernel,
        out_shape=jax.ShapeDtypeStruct((m, n), _ACT_DTYPE),
        grid=(pl.cdiv(m, tm),),
        in_specs=[
            pl.BlockSpec((tm, k), lambda i: (i, 0)),
            pl.BlockSpec((k, n), lambda i: (0, 0)),
            pl.BlockSpec((1, n), lambda i: (0, 0)),
        ],
        out_specs=pl.BlockSpec((tm, n), lambda i: (i, 0)),
        compiler_params=_cparams(1),
    )(col, w, b)


def pallas_dense_layer(feats, seg_channels, s_segs, b_segs, w1s, b2, w9, h, w):
    n, hw, _ = feats[0].shape
    cin = sum(seg_channels)
    cb = w1s.shape[1]
    g = w9.shape[2]
    kernel = make_dense_layer_kernel(h, w, seg_channels, cb, g)

    in_specs = [pl.BlockSpec((1, hw, cs), lambda i: (i, 0, 0)) for cs in seg_channels]
    in_specs += [pl.BlockSpec((1, cs), lambda i: (0, 0)) for cs in seg_channels]
    in_specs += [pl.BlockSpec((1, cs), lambda i: (0, 0)) for cs in seg_channels]
    in_specs += [
        pl.BlockSpec((cin, cb), lambda i: (0, 0)),
        pl.BlockSpec((1, cb), lambda i: (0, 0)),
        pl.BlockSpec((9, cb, g), lambda i: (0, 0, 0)),
    ]
    return pl.pallas_call(
        kernel,
        out_shape=jax.ShapeDtypeStruct((n, hw, g), _ACT_DTYPE),
        grid=(n,),
        in_specs=in_specs,
        out_specs=pl.BlockSpec((1, hw, g), lambda i: (i, 0, 0)),
        scratch_shapes=[pltpu.VMEM((h + 2, w + 2, cb), jnp.float32)],
        compiler_params=_cparams(1),
    )(*feats, *s_segs, *b_segs, w1s, b2, w9)


def pallas_transition(feats, seg_channels, s_segs, b_segs, wt, h, w):
    assert h % 2 == 0 and w % 2 == 0
    n, hw, _ = feats[0].shape
    cin = sum(seg_channels)
    cout = wt.shape[1]
    hw_out = (h // 2) * (w // 2)
    kernel = make_transition_kernel(h, w, seg_channels, cout)

    in_specs = [pl.BlockSpec((1, hw, cs), lambda i: (i, 0, 0)) for cs in seg_channels]
    in_specs += [pl.BlockSpec((1, cs), lambda i: (0, 0)) for cs in seg_channels]
    in_specs += [pl.BlockSpec((1, cs), lambda i: (0, 0)) for cs in seg_channels]
    in_specs += [pl.BlockSpec((cin, cout), lambda i: (0, 0))]
    return pl.pallas_call(
        kernel,
        out_shape=jax.ShapeDtypeStruct((n, hw_out, cout), _ACT_DTYPE),
        grid=(n,),
        in_specs=in_specs,
        out_specs=pl.BlockSpec((1, hw_out, cout), lambda i: (i, 0, 0)),
        compiler_params=_cparams(1),
    )(*feats, *s_segs, *b_segs, wt)


def pallas_head(feats, seg_channels, s_segs, b_segs, wc, bc):
    n, hw, _ = feats[0].shape
    cin = sum(seg_channels)
    nc = wc.shape[1]
    kernel = make_head_kernel(seg_channels, nc)

    in_specs = [pl.BlockSpec((1, hw, cs), lambda i: (i, 0, 0)) for cs in seg_channels]
    in_specs += [pl.BlockSpec((1, cs), lambda i: (0, 0)) for cs in seg_channels]
    in_specs += [pl.BlockSpec((1, cs), lambda i: (0, 0)) for cs in seg_channels]
    in_specs += [pl.BlockSpec((cin, nc), lambda i: (0, 0)),
                 pl.BlockSpec((1, nc), lambda i: (0, 0))]
    out = pl.pallas_call(
        kernel,
        out_shape=jax.ShapeDtypeStruct((n, 1, nc), jnp.float32),
        grid=(n,),
        in_specs=in_specs,
        out_specs=pl.BlockSpec((1, 1, nc), lambda i: (i, 0, 0)),
        compiler_params=_cparams(1),
    )(*feats, *s_segs, *b_segs, wc, bc)
    return out.reshape(n, nc)


# ----------------------------------- glue helpers ----------------------------------

def bn_fold(gamma, beta, mean, var):
    """Fold inference-mode BatchNorm into per-channel scale/bias (shape (1, C))."""
    scale = gamma / jnp.sqrt(var + BN_EPS)
    bias = beta - mean * scale
    return scale.reshape(1, -1), bias.reshape(1, -1)


def _split_channels(v, seg_channels):
    out, off = [], 0
    for cs in seg_channels:
        out.append(v[:, off:off + cs])
        off += cs
    return out


def im2col(x_nhwc, kh, kw, stride, pad):
    n, h, w, c = x_nhwc.shape
    xp = jnp.pad(x_nhwc, ((0, 0), (pad, pad), (pad, pad), (0, 0)))
    ho = (h + 2 * pad - kh) // stride + 1
    wo = (w + 2 * pad - kw) // stride + 1
    cols = []
    for i in range(kh):
        for j in range(kw):
            cols.append(xp[:, i:i + stride * ho:stride, j:j + stride * wo:stride, :])
    col = jnp.stack(cols, axis=3).reshape(n * ho * wo, kh * kw * c)
    return col, ho, wo


def maxpool2d_3x3_s2_p1(x):
    return lax.reduce_window(
        x, jnp.array(-jnp.inf, x.dtype), lax.max,
        (1, 3, 3, 1), (1, 2, 2, 1), ((0, 0), (1, 1), (1, 1), (0, 0)))


# ------------------------------ parameter construction -----------------------------

def _kaiming_normal(key, shape):
    fan_in = shape[1] * shape[2] * shape[3]
    return jax.random.normal(key, shape, jnp.float32) * jnp.sqrt(2.0 / fan_in)


def _bn_params(c):
    return dict(
        gamma=jnp.ones((c,), jnp.float32),
        beta=jnp.zeros((c,), jnp.float32),
        mean=jnp.zeros((c,), jnp.float32),
        var=jnp.ones((c,), jnp.float32),
    )


def init_densenet_params(key, growth_rate, block_config, num_init_features, bn_size,
                         num_classes):
    keys = iter(jax.random.split(key, 512))
    params = {}
    params["conv0"] = _kaiming_normal(next(keys), (num_init_features, 3, 7, 7))
    params["norm0"] = _bn_params(num_init_features)

    num_features = num_init_features
    blocks, transitions = [], []
    for i, num_layers in enumerate(block_config):
        layers = []
        for l in range(num_layers):
            cin = num_features + l * growth_rate
            layers.append(
                dict(
                    norm1=_bn_params(cin),
                    conv1=_kaiming_normal(next(keys), (bn_size * growth_rate, cin, 1, 1)),
                    norm2=_bn_params(bn_size * growth_rate),
                    conv2=_kaiming_normal(
                        next(keys), (growth_rate, bn_size * growth_rate, 3, 3)),
                )
            )
        blocks.append(layers)
        num_features += num_layers * growth_rate
        if i != len(block_config) - 1:
            transitions.append(
                dict(
                    norm=_bn_params(num_features),
                    conv=_kaiming_normal(
                        next(keys), (num_features // 2, num_features, 1, 1)),
                )
            )
            num_features //= 2

    params["blocks"] = blocks
    params["transitions"] = transitions
    params["norm5"] = _bn_params(num_features)
    params["classifier_w"] = (
        jax.random.normal(next(keys), (num_classes, num_features), jnp.float32)
        / jnp.sqrt(num_features)
    )
    params["classifier_b"] = jnp.zeros((num_classes,), jnp.float32)
    return params


# -------------------------------------- forward -------------------------------------

def densenet_forward(params, x_nchw):
    # Accept NCHW (PyTorch), compute in NHWC; cast to bf16 BEFORE im2col expansion.
    x = jnp.transpose(x_nchw, (0, 2, 3, 1)).astype(_ACT_DTYPE)
    n = x.shape[0]

    # features.conv0 (7x7 s2 p3, no bias) + norm0 + relu0 (norm0 scale folded into w0)
    c0 = params["conv0"].shape[0]
    col, ho, wo = im2col(x, 7, 7, 2, 3)
    s0, b0 = bn_fold(**params["norm0"])
    w0 = jnp.transpose(params["conv0"], (2, 3, 1, 0)).reshape(-1, c0)
    w0s = (w0 * s0).astype(jnp.bfloat16)
    x = pallas_conv0(col, w0s, b0).reshape(n, ho, wo, c0)

    # features.pool0 (maxpool 3x3, stride 2, pad 1)
    x = maxpool2d_3x3_s2_p1(x)
    _, h, w, _ = x.shape

    # Dense blocks: the running feature map is a LIST of channel segments (no concat).
    feats = [x.reshape(n, h * w, c0)]
    seg_channels = [c0]

    n_blocks = len(params["blocks"])
    for bi, layers in enumerate(params["blocks"]):
        for layer in layers:
            s1, b1 = bn_fold(**layer["norm1"])
            s2, b2 = bn_fold(**layer["norm2"])
            w1 = layer["conv1"][:, :, 0, 0].T                    # (cin, cb)
            w1s = (w1 * s2).astype(jnp.bfloat16)                 # fold norm2 scale
            cb = w1s.shape[1]
            g = layer["conv2"].shape[0]
            w9 = jnp.transpose(layer["conv2"], (2, 3, 1, 0)).reshape(9, cb, g)
            s_segs = _split_channels(s1, seg_channels)
            b_segs = _split_channels(b1, seg_channels)
            new_f = pallas_dense_layer(feats, seg_channels, s_segs, b_segs,
                                       w1s, b2, w9.astype(jnp.bfloat16), h, w)
            # drop_rate == 0 -> dropout is the identity.
            feats.append(new_f)
            seg_channels = seg_channels + [g]

        if bi != n_blocks - 1:
            trans = params["transitions"][bi]
            st, bt = bn_fold(**trans["norm"])
            wt = trans["conv"][:, :, 0, 0].T.astype(jnp.bfloat16)
            s_segs = _split_channels(st, seg_channels)
            b_segs = _split_channels(bt, seg_channels)
            x_tr = pallas_transition(feats, seg_channels, s_segs, b_segs, wt, h, w)
            h, w = h // 2, w // 2
            feats = [x_tr]
            seg_channels = [wt.shape[1]]

    # norm5 + F.relu + adaptive_avg_pool2d((1,1)) + flatten + classifier (one fused kernel)
    s5, b5 = bn_fold(**params["norm5"])
    s_segs = _split_channels(s5, seg_channels)
    b_segs = _split_channels(b5, seg_channels)
    wc = params["classifier_w"].T                                 # (C, num_classes)
    bc = params["classifier_b"].reshape(1, -1)
    return pallas_head(feats, seg_channels, s_segs, b_segs, wc, bc)


# ---------------------------------------- main ---------------------------------------

if __name__ == "__main__":
    key = jax.random.PRNGKey(0)
    pkey, xkey = jax.random.split(key)

    # Small DenseNet config consistent with the module's constructor arguments.
    growth_rate = 8
    block_config = (2, 2)
    num_init_features = 16
    bn_size = 2
    num_classes = 10

    params = init_densenet_params(
        pkey, growth_rate, block_config, num_init_features, bn_size, num_classes
    )

    # PyTorch-style NCHW input.
    x = jax.random.normal(xkey, (2, 3, 32, 32), jnp.float32)

    fwd = jax.jit(densenet_forward)
    out = fwd(params, x)
    jax.block_until_ready(out)
    assert out.shape == (2, num_classes), out.shape
    assert bool(jnp.all(jnp.isfinite(out)))
    print("KERNEL_OK")
</pallas_src>

<mosaic_0001>
module attributes {stable_mosaic.version = 11 : i64} {
  func.func @_conv0_kernel(%arg0: i32, %arg1: memref<128x147xbf16, #tpu.memory_space<vmem>>, %arg2: memref<147x16xbf16, #tpu.memory_space<vmem>>, %arg3: memref<1x16xf32, #tpu.memory_space<vmem>>, %arg4: memref<128x16xbf16, #tpu.memory_space<vmem>>) attributes {dimension_semantics = [#tpu.dimension_semantics<parallel>], iteration_bounds = array<i64: 4>, scalar_prefetch = 0 : i64, scratch_operands = 0 : i64, tpu.core_type = #tpu.core_type<tc>, window_params = [{transform_indices = @transform_0, window_bounds = array<i64: 128, 147>}, {pipeline_mode = #tpu.pipeline_mode<synchronous>, transform_indices = @transform_1, window_bounds = array<i64: 147, 16>}, {pipeline_mode = #tpu.pipeline_mode<synchronous>, transform_indices = @transform_2, window_bounds = array<i64: 1, 16>}, {transform_indices = @transform_3, window_bounds = array<i64: 128, 16>}]} {
    %c0 = arith.constant 0 : index
    %c0_0 = arith.constant 0 : index
    %0 = vector.load %arg1[%c0, %c0_0] : memref<128x147xbf16, #tpu.memory_space<vmem>>, vector<128x147xbf16>
    %c0_1 = arith.constant 0 : index
    %c0_2 = arith.constant 0 : index
    %1 = vector.load %arg2[%c0_1, %c0_2] : memref<147x16xbf16, #tpu.memory_space<vmem>>, vector<147x16xbf16>
    %cst = arith.constant dense<0.000000e+00> : vector<128x16xf32>
    %2 = tpu.matmul %0, %1, %cst {dimension_numbers = #tpu.dot_dimension_numbers<[1], [0], [0], [1], [0, 0, 1, 1], [], []>} : vector<128x147xbf16>, vector<147x16xbf16>, vector<128x16xf32> -> vector<128x16xf32>
    %c0_3 = arith.constant 0 : index
    %c0_4 = arith.constant 0 : index
    %3 = vector.load %arg3[%c0_3, %c0_4] : memref<1x16xf32, #tpu.memory_space<vmem>>, vector<1x16xf32>
    %4 = vector.broadcast %3 : vector<1x16xf32> to vector<128x16xf32>
    %5 = arith.addf %2, %4 : vector<128x16xf32>
    %cst_5 = arith.constant 0.000000e+00 : f32
    %6 = vector.broadcast %cst_5 : f32 to vector<128x16xf32>
    %7 = arith.maximumf %5, %6 : vector<128x16xf32>
    %8 = arith.truncf %7 : vector<128x16xf32> to vector<128x16xbf16>
    %c0_6 = arith.constant 0 : index
    %c0_7 = arith.constant 0 : index
    %9 = vector.load %arg4[%c0_6, %c0_7] : memref<128x16xbf16, #tpu.memory_space<vmem>>, vector<128x16xbf16>
    tpu.vector_store %arg4[%c0_6, %c0_7], %8 {strides = array<i32>} : memref<128x16xbf16, #tpu.memory_space<vmem>>, vector<128x16xbf16>,
    return
  }
  func.func @transform_0(%arg0: i32) -> (i32, i32) {
    %c0_i32 = arith.constant 0 : i32
    %c0_i32_0 = arith.constant 0 : i32
    return %arg0, %c0_i32 : i32, i32
  }
  func.func @transform_1(%arg0: i32) -> (i32, i32) {
    %c0_i32 = arith.constant 0 : i32
    %c0_i32_0 = arith.constant 0 : i32
    %c0_i32_1 = arith.constant 0 : i32
    return %c0_i32, %c0_i32_0 : i32, i32
  }
  func.func @transform_2(%arg0: i32) -> (i32, i32) {
    %c0_i32 = arith.constant 0 : i32
    %c0_i32_0 = arith.constant 0 : i32
    %c0_i32_1 = arith.constant 0 : i32
    return %c0_i32, %c0_i32_0 : i32, i32
  }
  func.func @transform_3(%arg0: i32) -> (i32, i32) {
    %c0_i32 = arith.constant 0 : i32
    %c0_i32_0 = arith.constant 0 : i32
    return %arg0, %c0_i32 : i32, i32
  }
}

module attributes {stable_mosaic.version = 11 : i64} {
  func.func @kernel(%arg0: i32, %arg1: memref<1x64x16xbf16, #tpu.memory_space<vmem>>, %arg2: memref<1x16xf32, #tpu.memory_space<vmem>>, %arg3: memref<1x16xf32, #tpu.memory_space<vmem>>, %arg4: memref<16x16xbf16, #tpu.memory_space<vmem>>, %arg5: memref<1x16xf32, #tpu.memory_space<vmem>>, %arg6: memref<9x16x8xbf16, #tpu.memory_space<vmem>>, %arg7: memref<1x64x8xbf16, #tpu.memory_space<vmem>>, %arg8: memref<10x10x16xf32, #tpu.memory_space<vmem>>) attributes {dimension_semantics = [#tpu.dimension_semantics<parallel>], iteration_bounds = array<i64: 2>, scalar_prefetch = 0 : i64, scratch_operands = 1 : i64, tpu.core_type = #tpu.core_type<tc>, window_params = [{transform_indices = @transform_0, window_bounds = array<i64: 1, 64, 16>}, {pipeline_mode = #tpu.pipeline_mode<synchronous>, transform_indices = @transform_1, window_bounds = array<i64: 1, 16>}, {pipeline_mode = #tpu.pipeline_mode<synchronous>, transform_indices = @transform_2, window_bounds = array<i64: 1, 16>}, {pipeline_mode = #tpu.pipeline_mode<synchronous>, transform_indices = @transform_3, window_bounds = array<i64: 16, 16>}, {pipeline_mode = #tpu.pipeline_mode<synchronous>, transform_indices = @transform_4, window_bounds = array<i64: 1, 16>}, {pipeline_mode = #tpu.pipeline_mode<synchronous>, transform_indices = @transform_5, window_bounds = array<i64: 9, 16, 8>}, {transform_indices = @transform_6, window_bounds = array<i64: 1, 64, 8>}]} {
    %cst = arith.constant 0.000000e+00 : f32
    %0 = vector.broadcast %cst : f32 to vector<64x16xf32>
    %c0 = arith.constant 0 : index
    %c0_0 = arith.constant 0 : index
    %c0_1 = arith.constant 0 : index
    %1 = vector.load %arg1[%c0, %c0_0, %c0_1] : memref<1x64x16xbf16, #tpu.memory_space<vmem>>, vector<1x64x16xbf16>
    %2 = vector.shape_cast %1 : vector<1x64x16xbf16> to vector<64x16xbf16>
    %3 = arith.extf %2 : vector<64x16xbf16> to vector<64x16xf32>
    %c0_2 = arith.constant 0 : index
    %c0_3 = arith.constant 0 : index
    %4 = vector.load %arg2[%c0_2, %c0_3] : memref<1x16xf32, #tpu.memory_space<vmem>>, vector<1x16xf32>
    %5 = vector.broadcast %4 : vector<1x16xf32> to vector<64x16xf32>
    %6 = arith.mulf %3, %5 : vector<64x16xf32>
    %c0_4 = arith.constant 0 : index
    %c0_5 = arith.constant 0 : index
    %7 = vector.load %arg3[%c0_4, %c0_5] : memref<1x16xf32, #tpu.memory_space<vmem>>, vector<1x16xf32>
    %8 = vector.broadcast %7 : vector<1x16xf32> to vector<64x16xf32>
    %9 = arith.addf %6, %8 : vector<64x16xf32>
    %cst_6 = arith.constant 0.000000e+00 : f32
    %10 = vector.broadcast %cst_6 : f32 to vector<64x16xf32>
    %11 = arith.maximumf %9, %10 : vector<64x16xf32>
    %12 = arith.truncf %11 : vector<64x16xf32> to vector<64x16xbf16>
    %c0_7 = arith.constant 0 : index
    %c0_8 = arith.constant 0 : index
    %13 = vector.load %arg4[%c0_7, %c0_8] : memref<16x16xbf16, #tpu.memory_space<vmem>>, vector<16x16xbf16>
    %cst_9 = arith.constant dense<0.000000e+00> : vector<64x16xf32>
    %14 = tpu.matmul %12, %13, %cst_9 {dimension_numbers = #tpu.dot_dimension_numbers<[1], [0], [0], [1], [0, 0, 1, 1], [], []>} : vector<64x16xbf16>, vector<16x16xbf16>, vector<64x16xf32> -> vector<64x16xf32>
    %15 = arith.addf %0, %14 : vector<64x16xf32>
    %c0_10 = arith.constant 0 : index
    %c0_11 = arith.constant 0 : index
    %16 = vector.load %arg5[%c0_10, %c0_11] : memref<1x16xf32, #tpu.memory_space<vmem>>, vector<1x16xf32>
    %17 = vector.broadcast %16 : vector<1x16xf32> to vector<64x16xf32>
    %18 = arith.addf %15, %17 : vector<64x16xf32>
    %cst_12 = arith.constant 0.000000e+00 : f32
    %19 = vector.broadcast %cst_12 : f32 to vector<64x16xf32>
    %20 = arith.maximumf %18, %19 : vector<64x16xf32>
    %cst_13 = arith.constant 0.000000e+00 : f32
    %21 = vector.broadcast %cst_13 : f32 to vector<10x10x16xf32>
    %c0_14 = arith.constant 0 : index
    %c0_15 = arith.constant 0 : index
    %c0_16 = arith.constant 0 : index
    %22 = vector.load %arg8[%c0_14, %c0_15, %c0_16] : memref<10x10x16xf32, #tpu.memory_space<vmem>>, vector<10x10x16xf32>
    tpu.vector_store %arg8[%c0_14, %c0_15, %c0_16], %21 {strides = array<i32>} : memref<10x10x16xf32, #tpu.memory_space<vmem>>, vector<10x10x16xf32>,
    %23 = vector.shape_cast %20 : vector<64x16xf32> to vector<8x8x16xf32>
    %c1 = arith.constant 1 : index
    %c1_17 = arith.constant 1 : index
    %c0_18 = arith.constant 0 : index
    %24 = vector.load %arg8[%c1, %c1_17, %c0_18] : memref<10x10x16xf32, #tpu.memory_space<vmem>>, vector<8x8x16xf32>
    tpu.vector_store %arg8[%c1, %c1_17, %c0_18], %23 {strides = array<i32>} : memref<10x10x16xf32, #tpu.memory_space<vmem>>, vector<8x8x16xf32>,
    %c0_19 = arith.constant 0 : index
    %c0_20 = arith.constant 0 : index
    %c0_21 = arith.constant 0 : index
    %25 = vector.load %arg8[%c0_19, %c0_20, %c0_21] : memref<10x10x16xf32, #tpu.memory_space<vmem>>, vector<10x10x16xf32>
    %cst_22 = arith.constant 0.000000e+00 : f32
    %26 = vector.broadcast %cst_22 : f32 to vector<64x8xf32>
    %27 = vector.extract_strided_slice %25 {offsets = [0, 0, 0], sizes = [8, 8, 16], strides = [1, 1, 1]} : vector<10x10x16xf32> to vector<8x8x16xf32>
    %28 = vector.shape_cast %27 : vector<8x8x16xf32> to vector<64x16xf32>
    %29 = arith.truncf %28 : vector<64x16xf32> to vector<64x16xbf16>
    %c0_23 = arith.constant 0 : index
    %c0_24 = arith.constant 0 : index
    %c0_25 = arith.constant 0 : index
    %30 = vector.load %arg6[%c0_23, %c0_24, %c0_25] : memref<9x16x8xbf16, #tpu.memory_space<vmem>>, vector<1x16x8xbf16>
    %31 = vector.shape_cast %30 : vector<1x16x8xbf16> to vector<16x8xbf16>
    %cst_26 = arith.constant dense<0.000000e+00> : vector<64x8xf32>
    %32 = tpu.matmul %29, %31, %cst_26 {dimension_numbers = #tpu.dot_dimension_numbers<[1], [0], [0], [1], [0, 0, 1, 1], [], []>} : vector<64x16xbf16>, vector<16x8xbf16>, vector<64x8xf32> -> vector<64x8xf32>
    %33 = arith.addf %26, %32 : vector<64x8xf32>
    %34 = vector.extract_strided_slice %25 {offsets = [0, 1, 0], sizes = [8, 8, 16], strides = [1, 1, 1]} : vector<10x10x16xf32> to vector<8x8x16xf32>
    %35 = vector.shape_cast %34 : vector<8x8x16xf32> to vector<64x16xf32>
    %36 = arith.truncf %35 : vector<64x16xf32> to vector<64x16xbf16>
    %c1_27 = arith.constant 1 : index
    %c0_28 = arith.constant 0 : index
    %c0_29 = arith.constant 0 : index
    %37 = vector.load %arg6[%c1_27, %c0_28, %c0_29] : memref<9x16x8xbf16, #tpu.memory_space<vmem>>, vector<1x16x8xbf16>
    %38 = vector.shape_cast %37 : vector<1x16x8xbf16> to vector<16x8xbf16>
    %cst_30 = arith.constant dense<0.000000e+00> : vector<64x8xf32>
    %39 = tpu.matmul %36, %38, %cst_30 {dimension_numbers = #tpu.dot_dimension_numbers<[1], [0], [0], [1], [0, 0, 1, 1], [], []>} : vector<64x16xbf16>, vector<16x8xbf16>, vector<64x8xf32> -> vector<64x8xf32>
    %40 = arith.addf %33, %39 : vector<64x8xf32>
    %41 = vector.extract_strided_slice %25 {offsets = [0, 2, 0], sizes = [8, 8, 16], strides = [1, 1, 1]} : vector<10x10x16xf32> to vector<8x8x16xf32>
    %42 = vector.shape_cast %41 : vector<8x8x16xf32> to vector<64x16xf32>
    %43 = arith.truncf %42 : vector<64x16xf32> to vector<64x16xbf16>
    %c2 = arith.constant 2 : index
    %c0_31 = arith.constant 0 : index
    %c0_32 = arith.constant 0 : index
    %44 = vector.load %arg6[%c2, %c0_31, %c0_32] : memref<9x16x8xbf16, #tpu.memory_space<vmem>>, vector<1x16x8xbf16>
    %45 = vector.shape_cast %44 : vector<1x16x8xbf16> to vector<16x8xbf16>
    %cst_33 = arith.constant dense<0.000000e+00> : vector<64x8xf32>
    %46 = tpu.matmul %43, %45, %cst_33 {dimension_numbers = #tpu.dot_dimension_numbers<[1], [0], [0], [1], [0, 0, 1, 1], [], []>} : vector<64x16xbf16>, vector<16x8xbf16>, vector<64x8xf32> -> vector<64x8xf32>
    %47 = arith.addf %40, %46 : vector<64x8xf32>
    %48 = vector.extract_strided_slice %25 {offsets = [1, 0, 0], sizes = [8, 8, 16], strides = [1, 1, 1]} : vector<10x10x16xf32> to vector<8x8x16xf32>
    %49 = vector.shape_cast %48 : vector<8x8x16xf32> to vector<64x16xf32>
    %50 = arith.truncf %49 : vector<64x16xf32> to vector<64x16xbf16>
    %c3 = arith.constant 3 : index
    %c0_34 = arith.constant 0 : index
    %c0_35 = arith.constant 0 : index
    %51 = vector.load %arg6[%c3, %c0_34, %c0_35] : memref<9x16x8xbf16, #tpu.memory_space<vmem>>, vector<1x16x8xbf16>
    %52 = vector.shape_cast %51 : vector<1x16x8xbf16> to vector<16x8xbf16>
    %cst_36 = arith.constant dense<0.000000e+00> : vector<64x8xf32>
    %53 = tpu.matmul %50, %52, %cst_36 {dimension_numbers = #tpu.dot_dimension_numbers<[1], [0], [0], [1], [0, 0, 1, 1], [], []>} : vector<64x16xbf16>, vector<16x8xbf16>, vector<64x8xf32> -> vector<64x8xf32>
    %54 = arith.addf %47, %53 : vector<64x8xf32>
    %55 = vector.extract_strided_slice %25 {offsets = [1, 1, 0], sizes = [8, 8, 16], strides = [1, 1, 1]} : vector<10x10x16xf32> to vector<8x8x16xf32>
    %56 = vector.shape_cast %55 : vector<8x8x16xf32> to vector<64x16xf32>
    %57 = arith.truncf %56 : vector<64x16xf32> to vector<64x16xbf16>
    %c4 = arith.constant 4 : index
    %c0_37 = arith.constant 0 : index
    %c0_38 = arith.constant 0 : index
    %58 = vector.load %arg6[%c4, %c0_37, %c0_38] : memref<9x16x8xbf16, #tpu.memory_space<vmem>>, vector<1x16x8xbf16>
    %59 = vector.shape_cast %58 : vector<1x16x8xbf16> to vector<16x8xbf16>
    %cst_39 = arith.constant dense<0.000000e+00> : vector<64x8xf32>
    %60 = tpu.matmul %57, %59, %cst_39 {dimension_numbers = #tpu.dot_dimension_numbers<[1], [0], [0], [1], [0, 0, 1, 1], [], []>} : vector<64x16xbf16>, vector<16x8xbf16>, vector<64x8xf32> -> vector<64x8xf32>
    %61 = arith.addf %54, %60 : vector<64x8xf32>
    %62 = vector.extract_strided_slice %25 {offsets = [1, 2, 0], sizes = [8, 8, 16], strides = [1, 1, 1]} : vector<10x10x16xf32> to vector<8x8x16xf32>
    %63 = vector.shape_cast %62 : vector<8x8x16xf32> to vector<64x16xf32>
    %64 = arith.truncf %63 : vector<64x16xf32> to vector<64x16xbf16>
    %c5 = arith.constant 5 : index
    %c0_40 = arith.constant 0 : index
    %c0_41 = arith.constant 0 : index
    %65 = vector.load %arg6[%c5, %c0_40, %c0_41] : memref<9x16x8xbf16, #tpu.memory_space<vmem>>, vector<1x16x8xbf16>
    %66 = vector.shape_cast %65 : vector<1x16x8xbf16> to vector<16x8xbf16>
    %cst_42 = arith.constant dense<0.000000e+00> : vector<64x8xf32>
    %67 = tpu.matmul %64, %66, %cst_42 {dimension_numbers = #tpu.dot_dimension_numbers<[1], [0], [0], [1], [0, 0, 1, 1], [], []>} : vector<64x16xbf16>, vector<16x8xbf16>, vector<64x8xf32> -> vector<64x8xf32>
    %68 = arith.addf %61, %67 : vector<64x8xf32>
    %69 = vector.extract_strided_slice %25 {offsets = [2, 0, 0], sizes = [8, 8, 16], strides = [1, 1, 1]} : vector<10x10x16xf32> to vector<8x8x16xf32>
    %70 = vector.shape_cast %69 : vector<8x8x16xf32> to vector<64x16xf32>
    %71 = arith.truncf %70 : vector<64x16xf32> to vector<64x16xbf16>
    %c6 = arith.constant 6 : index
    %c0_43 = arith.constant 0 : index
    %c0_44 = arith.constant 0 : index
    %72 = vector.load %arg6[%c6, %c0_43, %c0_44] : memref<9x16x8xbf16, #tpu.memory_space<vmem>>, vector<1x16x8xbf16>
    %73 = vector.shape_cast %72 : vector<1x16x8xbf16> to vector<16x8xbf16>
    %cst_45 = arith.constant dense<0.000000e+00> : vector<64x8xf32>
    %74 = tpu.matmul %71, %73, %cst_45 {dimension_numbers = #tpu.dot_dimension_numbers<[1], [0], [0], [1], [0, 0, 1, 1], [], []>} : vector<64x16xbf16>, vector<16x8xbf16>, vector<64x8xf32> -> vector<64x8xf32>
    %75 = arith.addf %68, %74 : vector<64x8xf32>
    %76 = vector.extract_strided_slice %25 {offsets = [2, 1, 0], sizes = [8, 8, 16], strides = [1, 1, 1]} : vector<10x10x16xf32> to vector<8x8x16xf32>
    %77 = vector.shape_cast %76 : vector<8x8x16xf32> to vector<64x16xf32>
    %78 = arith.truncf %77 : vector<64x16xf32> to vector<64x16xbf16>
    %c7 = arith.constant 7 : index
    %c0_46 = arith.constant 0 : index
    %c0_47 = arith.constant 0 : index
    %79 = vector.load %arg6[%c7, %c0_46, %c0_47] : memref<9x16x8xbf16, #tpu.memory_space<vmem>>, vector<1x16x8xbf16>
    %80 = vector.shape_cast %79 : vector<1x16x8xbf16> to vector<16x8xbf16>
    %cst_48 = arith.constant dense<0.000000e+00> : vector<64x8xf32>
    %81 = tpu.matmul %78, %80, %cst_48 {dimension_numbers = #tpu.dot_dimension_numbers<[1], [0], [0], [1], [0, 0, 1, 1], [], []>} : vector<64x16xbf16>, vector<16x8xbf16>, vector<64x8xf32> -> vector<64x8xf32>
    %82 = arith.addf %75, %81 : vector<64x8xf32>
    %83 = vector.extract_strided_slice %25 {offsets = [2, 2, 0], sizes = [8, 8, 16], strides = [1, 1, 1]} : vector<10x10x16xf32> to vector<8x8x16xf32>
    %84 = vector.shape_cast %83 : vector<8x8x16xf32> to vector<64x16xf32>
    %85 = arith.truncf %84 : vector<64x16xf32> to vector<64x16xbf16>
    %c8 = arith.constant 8 : index
    %c0_49 = arith.constant 0 : index
    %c0_50 = arith.constant 0 : index
    %86 = vector.load %arg6[%c8, %c0_49, %c0_50] : memref<9x16x8xbf16, #tpu.memory_space<vmem>>, vector<1x16x8xbf16>
    %87 = vector.shape_cast %86 : vector<1x16x8xbf16> to vector<16x8xbf16>
    %cst_51 = arith.constant dense<0.000000e+00> : vector<64x8xf32>
    %88 = tpu.matmul %85, %87, %cst_51 {dimension_numbers = #tpu.dot_dimension_numbers<[1], [0], [0], [1], [0, 0, 1, 1], [], []>} : vector<64x16xbf16>, vector<16x8xbf16>, vector<64x8xf32> -> vector<64x8xf32>
    %89 = arith.addf %82, %88 : vector<64x8xf32>
    %90 = arith.truncf %89 : vector<64x8xf32> to vector<64x8xbf16>
    %c0_52 = arith.constant 0 : index
    %c0_53 = arith.constant 0 : index
    %c0_54 = arith.constant 0 : index
    %91 = vector.load %arg7[%c0_52, %c0_53, %c0_54] : memref<1x64x8xbf16, #tpu.memory_space<vmem>>, vector<1x64x8xbf16>
    %92 = vector.shape_cast %91 : vector<1x64x8xbf16> to vector<64x8xbf16>
    %93 = vector.shape_cast %90 : vector<64x8xbf16> to vector<1x64x8xbf16>
    tpu.vector_store %arg7[%c0_52, %c0_53, %c0_54], %93 {strides = array<i32>} : memref<1x64x8xbf16, #tpu.memory_space<vmem>>, vector<1x64x8xbf16>,
    return
  }
  func.func @transform_0(%arg0: i32) -> (i32, i32, i32) {
    %c0_i32 = arith.constant 0 : i32
    %c0_i32_0 = arith.constant 0 : i32
    %c0_i32_1 = arith.constant 0 : i32
    return %arg0, %c0_i32, %c0_i32_0 : i32, i32, i32
  }
  func.func @transform_1(%arg0: i32) -> (i32, i32) {
    %c0_i32 = arith.constant 0 : i32
    %c0_i32_0 = arith.constant 0 : i32
    %c0_i32_1 = arith.constant 0 : i32
    return %c0_i32, %c0_i32_0 : i32, i32
  }
  func.func @transform_2(%arg0: i32) -> (i32, i32) {
    %c0_i32 = arith.constant 0 : i32
    %c0_i32_0 = arith.constant 0 : i32
    %c0_i32_1 = arith.constant 0 : i32
    return %c0_i32, %c0_i32_0 : i32, i32
  }
  func.func @transform_3(%arg0: i32) -> (i32, i32) {
    %c0_i32 = arith.constant 0 : i32
    %c0_i32_0 = arith.constant 0 : i32
    %c0_i32_1 = arith.constant 0 : i32
    return %c0_i32, %c0_i32_0 : i32, i32
  }
  func.func @transform_4(%arg0: i32) -> (i32, i32) {
    %c0_i32 = arith.constant 0 : i32
    %c0_i32_0 = arith.constant 0 : i32
    %c0_i32_1 = arith.constant 0 : i32
    return %c0_i32, %c0_i32_0 : i32, i32
  }
  func.func @transform_5(%arg0: i32) -> (i32, i32, i32) {
    %c0_i32 = arith.constant 0 : i32
    %c0_i32_0 = arith.constant 0 : i32
    %c0_i32_1 = arith.constant 0 : i32
    %c0_i32_2 = arith.constant 0 : i32
    return %c0_i32, %c0_i32_0, %c0_i32_1 : i32, i32, i32
  }
  func.func @transform_6(%arg0: i32) -> (i32, i32, i32) {
    %c0_i32 = arith.constant 0 : i32
    %c0_i32_0 = arith.constant 0 : i32
    %c0_i32_1 = arith.constant 0 : i32
    return %arg0, %c0_i32, %c0_i32_0 : i32, i32, i32
  }
}

module attributes {stable_mosaic.version = 11 : i64} {
  func.func @kernel(%arg0: i32, %arg1: memref<1x64x16xbf16, #tpu.memory_space<vmem>>, %arg2: memref<1x64x8xbf16, #tpu.memory_space<vmem>>, %arg3: memref<1x16xf32, #tpu.memory_space<vmem>>, %arg4: memref<1x8xf32, #tpu.memory_space<vmem>>, %arg5: memref<1x16xf32, #tpu.memory_space<vmem>>, %arg6: memref<1x8xf32, #tpu.memory_space<vmem>>, %arg7: memref<24x16xbf16, #tpu.memory_space<vmem>>, %arg8: memref<1x16xf32, #tpu.memory_space<vmem>>, %arg9: memref<9x16x8xbf16, #tpu.memory_space<vmem>>, %arg10: memref<1x64x8xbf16, #tpu.memory_space<vmem>>, %arg11: memref<10x10x16xf32, #tpu.memory_space<vmem>>) attributes {dimension_semantics = [#tpu.dimension_semantics<parallel>], iteration_bounds = array<i64: 2>, scalar_prefetch = 0 : i64, scratch_operands = 1 : i64, tpu.core_type = #tpu.core_type<tc>, window_params = [{transform_indices = @transform_0, window_bounds = array<i64: 1, 64, 16>}, {transform_indices = @transform_1, window_bounds = array<i64: 1, 64, 8>}, {pipeline_mode = #tpu.pipeline_mode<synchronous>, transform_indices = @transform_2, window_bounds = array<i64: 1, 16>}, {pipeline_mode = #tpu.pipeline_mode<synchronous>, transform_indices = @transform_3, window_bounds = array<i64: 1, 8>}, {pipeline_mode = #tpu.pipeline_mode<synchronous>, transform_indices = @transform_4, window_bounds = array<i64: 1, 16>}, {pipeline_mode = #tpu.pipeline_mode<synchronous>, transform_indices = @transform_5, window_bounds = array<i64: 1, 8>}, {pipeline_mode = #tpu.pipeline_mode<synchronous>, transform_indices = @transform_6, window_bounds = array<i64: 24, 16>}, {pipeline_mode = #tpu.pipeline_mode<synchronous>, transform_indices = @transform_7, window_bounds = array<i64: 1, 16>}, {pipeline_mode = #tpu.pipeline_mode<synchronous>, transform_indices = @transform_8, window_bounds = array<i64: 9, 16, 8>}, {transform_indices = @transform_9, window_bounds = array<i64: 1, 64, 8>}]} {
    %cst = arith.constant 0.000000e+00 : f32
    %0 = vector.broadcast %cst : f32 to vector<64x16xf32>
    %c0 = arith.constant 0 : index
    %c0_0 = arith.constant 0 : index
    %c0_1 = arith.constant 0 : index
    %1 = vector.load %arg1[%c0, %c0_0, %c0_1] : memref<1x64x16xbf16, #tpu.memory_space<vmem>>, vector<1x64x16xbf16>
    %2 = vector.shape_cast %1 : vector<1x64x16xbf16> to vector<64x16xbf16>
    %3 = arith.extf %2 : vector<64x16xbf16> to vector<64x16xf32>
    %c0_2 = arith.constant 0 : index
    %c0_3 = arith.constant 0 : index
    %4 = vector.load %arg3[%c0_2, %c0_3] : memref<1x16xf32, #tpu.memory_space<vmem>>, vector<1x16xf32>
    %5 = vector.broadcast %4 : vector<1x16xf32> to vector<64x16xf32>
    %6 = arith.mulf %3, %5 : vector<64x16xf32>
    %c0_4 = arith.constant 0 : index
    %c0_5 = arith.constant 0 : index
    %7 = vector.load %arg5[%c0_4, %c0_5] : memref<1x16xf32, #tpu.memory_space<vmem>>, vector<1x16xf32>
    %8 = vector.broadcast %7 : vector<1x16xf32> to vector<64x16xf32>
    %9 = arith.addf %6, %8 : vector<64x16xf32>
    %cst_6 = arith.constant 0.000000e+00 : f32
    %10 = vector.broadcast %cst_6 : f32 to vector<64x16xf32>
    %11 = arith.maximumf %9, %10 : vector<64x16xf32>
    %12 = arith.truncf %11 : vector<64x16xf32> to vector<64x16xbf16>
    %c0_7 = arith.constant 0 : index
    %c0_8 = arith.constant 0 : index
    %13 = vector.load %arg7[%c0_7, %c0_8] : memref<24x16xbf16, #tpu.memory_space<vmem>>, vector<16x16xbf16>
    %cst_9 = arith.constant dense<0.000000e+00> : vector<64x16xf32>
    %14 = tpu.matmul %12, %13, %cst_9 {dimension_numbers = #tpu.dot_dimension_numbers<[1], [0], [0], [1], [0, 0, 1, 1], [], []>} : vector<64x16xbf16>, vector<16x16xbf16>, vector<64x16xf32> -> vector<64x16xf32>
    %15 = arith.addf %0, %14 : vector<64x16xf32>
    %c0_10 = arith.constant 0 : index
    %c0_11 = arith.constant 0 : index
    %c0_12 = arith.constant 0 : index
    %16 = vector.load %arg2[%c0_10, %c0_11, %c0_12] : memref<1x64x8xbf16, #tpu.memory_space<vmem>>, vector<1x64x8xbf16>
    %17 = vector.shape_cast %16 : vector<1x64x8xbf16> to vector<64x8xbf16>
    %18 = arith.extf %17 : vector<64x8xbf16> to vector<64x8xf32>
    %c0_13 = arith.constant 0 : index
    %c0_14 = arith.constant 0 : index
    %19 = vector.load %arg4[%c0_13, %c0_14] : memref<1x8xf32, #tpu.memory_space<vmem>>, vector<1x8xf32>
    %20 = vector.broadcast %19 : vector<1x8xf32> to vector<64x8xf32>
    %21 = arith.mulf %18, %20 : vector<64x8xf32>
    %c0_15 = arith.constant 0 : index
    %c0_16 = arith.constant 0 : index
    %22 = vector.load %arg6[%c0_15, %c0_16] : memref<1x8xf32, #tpu.memory_space<vmem>>, vector<1x8xf32>
    %23 = vector.broadcast %22 : vector<1x8xf32> to vector<64x8xf32>
    %24 = arith.addf %21, %23 : vector<64x8xf32>
    %cst_17 = arith.constant 0.000000e+00 : f32
    %25 = vector.broadcast %cst_17 : f32 to vector<64x8xf32>
    %26 = arith.maximumf %24, %25 : vector<64x8xf32>
    %27 = arith.truncf %26 : vector<64x8xf32> to vector<64x8xbf16>
    %c16 = arith.constant 16 : index
    %c0_18 = arith.constant 0 : index
    %28 = vector.load %arg7[%c16, %c0_18] : memref<24x16xbf16, #tpu.memory_space<vmem>>, vector<8x16xbf16>
    %cst_19 = arith.constant dense<0.000000e+00> : vector<64x16xf32>
    %29 = tpu.matmul %27, %28, %cst_19 {dimension_numbers = #tpu.dot_dimension_numbers<[1], [0], [0], [1], [0, 0, 1, 1], [], []>} : vector<64x8xbf16>, vector<8x16xbf16>, vector<64x16xf32> -> vector<64x16xf32>
    %30 = arith.addf %15, %29 : vector<64x16xf32>
    %c0_20 = arith.constant 0 : index
    %c0_21 = arith.constant 0 : index
    %31 = vector.load %arg8[%c0_20, %c0_21] : memref<1x16xf32, #tpu.memory_space<vmem>>, vector<1x16xf32>
    %32 = vector.broadcast %31 : vector<1x16xf32> to vector<64x16xf32>
    %33 = arith.addf %30, %32 : vector<64x16xf32>
    %cst_22 = arith.constant 0.000000e+00 : f32
    %34 = vector.broadcast %cst_22 : f32 to vector<64x16xf32>
    %35 = arith.maximumf %33, %34 : vector<64x16xf32>
    %cst_23 = arith.constant 0.000000e+00 : f32
    %36 = vector.broadcast %cst_23 : f32 to vector<10x10x16xf32>
    %c0_24 = arith.constant 0 : index
    %c0_25 = arith.constant 0 : index
    %c0_26 = arith.constant 0 : index
    %37 = vector.load %arg11[%c0_24, %c0_25, %c0_26] : memref<10x10x16xf32, #tpu.memory_space<vmem>>, vector<10x10x16xf32>
    tpu.vector_store %arg11[%c0_24, %c0_25, %c0_26], %36 {strides = array<i32>} : memref<10x10x16xf32, #tpu.memory_space<vmem>>, vector<10x10x16xf32>,
    %38 = vector.shape_cast %35 : vector<64x16xf32> to vector<8x8x16xf32>
    %c1 = arith.constant 1 : index
    %c1_27 = arith.constant 1 : index
    %c0_28 = arith.constant 0 : index
    %39 = vector.load %arg11[%c1, %c1_27, %c0_28] : memref<10x10x16xf32, #tpu.memory_space<vmem>>, vector<8x8x16xf32>
    tpu.vector_store %arg11[%c1, %c1_27, %c0_28], %38 {strides = array<i32>} : memref<10x10x16xf32, #tpu.memory_space<vmem>>, vector<8x8x16xf32>,
    %c0_29 = arith.constant 0 : index
    %c0_30 = arith.constant 0 : index
    %c0_31 = arith.constant 0 : index
    %40 = vector.load %arg11[%c0_29, %c0_30, %c0_31] : memref<10x10x16xf32, #tpu.memory_space<vmem>>, vector<10x10x16xf32>
    %cst_32 = arith.constant 0.000000e+00 : f32
    %41 = vector.broadcast %cst_32 : f32 to vector<64x8xf32>
    %42 = vector.extract_strided_slice %40 {offsets = [0, 0, 0], sizes = [8, 8, 16], strides = [1, 1, 1]} : vector<10x10x16xf32> to vector<8x8x16xf32>
    %43 = vector.shape_cast %42 : vector<8x8x16xf32> to vector<64x16xf32>
    %44 = arith.truncf %43 : vector<64x16xf32> to vector<64x16xbf16>
    %c0_33 = arith.constant 0 : index
    %c0_34 = arith.constant 0 : index
    %c0_35 = arith.constant 0 : index
    %45 = vector.load %arg9[%c0_33, %c0_34, %c0_35] : memref<9x16x8xbf16, #tpu.memory_space<vmem>>, vector<1x16x8xbf16>
    %46 = vector.shape_cast %45 : vector<1x16x8xbf16> to vector<16x8xbf16>
    %cst_36 = arith.constant dense<0.000000e+00> : vector<64x8xf32>
    %47 = tpu.matmul %44, %46, %cst_36 {dimension_numbers = #tpu.dot_dimension_numbers<[1], [0], [0], [1], [0, 0, 1, 1], [], []>} : vector<64x16xbf16>, vector<16x8xbf16>, vector<64x8xf32> -> vector<64x8xf32>
    %48 = arith.addf %41, %47 : vector<64x8xf32>
    %49 = vector.extract_strided_slice %40 {offsets = [0, 1, 0], sizes = [8, 8, 16], strides = [1, 1, 1]} : vector<10x10x16xf32> to vector<8x8x16xf32>
    %50 = vector.shape_cast %49 : vector<8x8x16xf32> to vector<64x16xf32>
    %51 = arith.truncf %50 : vector<64x16xf32> to vector<64x16xbf16>
    %c1_37 = arith.constant 1 : index
    %c0_38 = arith.constant 0 : index
    %c0_39 = arith.constant 0 : index
    %52 = vector.load %arg9[%c1_37, %c0_38, %c0_39] : memref<9x16x8xbf16, #tpu.memory_space<vmem>>, vector<1x16x8xbf16>
    %53 = vector.shape_cast %52 : vector<1x16x8xbf16> to vector<16x8xbf16>
    %cst_40 = arith.constant dense<0.000000e+00> : vector<64x8xf32>
    %54 = tpu.matmul %51, %53, %cst_40 {dimension_numbers = #tpu.dot_dimension_numbers<[1], [0], [0], [1], [0, 0, 1, 1], [], []>} : vector<64x16xbf16>, vector<16x8xbf16>, vector<64x8xf32> -> vector<64x8xf32>
    %55 = arith.addf %48, %54 : vector<64x8xf32>
    %56 = vector.extract_strided_slice %40 {offsets = [0, 2, 0], sizes = [8, 8, 16], strides = [1, 1, 1]} : vector<10x10x16xf32> to vector<8x8x16xf32>
    %57 = vector.shape_cast %56 : vector<8x8x16xf32> to vector<64x16xf32>
    %58 = arith.truncf %57 : vector<64x16xf32> to vector<64x16xbf16>
    %c2 = arith.constant 2 : index
    %c0_41 = arith.constant 0 : index
    %c0_42 = arith.constant 0 : index
    %59 = vector.load %arg9[%c2, %c0_41, %c0_42] : memref<9x16x8xbf16, #tpu.memory_space<vmem>>, vector<1x16x8xbf16>
    %60 = vector.shape_cast %59 : vector<1x16x8xbf16> to vector<16x8xbf16>
    %cst_43 = arith.constant dense<0.000000e+00> : vector<64x8xf32>
    %61 = tpu.matmul %58, %60, %cst_43 {dimension_numbers = #tpu.dot_dimension_numbers<[1], [0], [0], [1], [0, 0, 1, 1], [], []>} : vector<64x16xbf16>, vector<16x8xbf16>, vector<64x8xf32> -> vector<64x8xf32>
    %62 = arith.addf %55, %61 : vector<64x8xf32>
    %63 = vector.extract_strided_slice %40 {offsets = [1, 0, 0], sizes = [8, 8, 16], strides = [1, 1, 1]} : vector<10x10x16xf32> to vector<8x8x16xf32>
    %64 = vector.shape_cast %63 : vector<8x8x16xf32> to vector<64x16xf32>
    %65 = arith.truncf %64 : vector<64x16xf32> to vector<64x16xbf16>
    %c3 = arith.constant 3 : index
    %c0_44 = arith.constant 0 : index
    %c0_45 = arith.constant 0 : index
    %66 = vector.load %arg9[%c3, %c0_44, %c0_45] : memref<9x16x8xbf16, #tpu.memory_space<vmem>>, vector<1x16x8xbf16>
    %67 = vector.shape_cast %66 : vector<1x16x8xbf16> to vector<16x8xbf16>
    %cst_46 = arith.constant dense<0.000000e+00> : vector<64x8xf32>
    %68 = tpu.matmul %65, %67, %cst_46 {dimension_numbers = #tpu.dot_dimension_numbers<[1], [0], [0], [1], [0, 0, 1, 1], [], []>} : vector<64x16xbf16>, vector<16x8xbf16>, vector<64x8xf32> -> vector<64x8xf32>
    %69 = arith.addf %62, %68 : vector<64x8xf32>
    %70 = vector.extract_strided_slice %40 {offsets = [1, 1, 0], sizes = [8, 8, 16], strides = [1, 1, 1]} : vector<10x10x16xf32> to vector<8x8x16xf32>
    %71 = vector.shape_cast %70 : vector<8x8x16xf32> to vector<64x16xf32>
    %72 = arith.truncf %71 : vector<64x16xf32> to vector<64x16xbf16>
    %c4 = arith.constant 4 : index
    %c0_47 = arith.constant 0 : index
    %c0_48 = arith.constant 0 : index
    %73 = vector.load %arg9[%c4, %c0_47, %c0_48] : memref<9x16x8xbf16, #tpu.memory_space<vmem>>, vector<1x16x8xbf16>
    %74 = vector.shape_cast %73 : vector<1x16x8xbf16> to vector<16x8xbf16>
    %cst_49 = arith.constant dense<0.000000e+00> : vector<64x8xf32>
    %75 = tpu.matmul %72, %74, %cst_49 {dimension_numbers = #tpu.dot_dimension_numbers<[1], [0], [0], [1], [0, 0, 1, 1], [], []>} : vector<64x16xbf16>, vector<16x8xbf16>, vector<64x8xf32> -> vector<64x8xf32>
    %76 = arith.addf %69, %75 : vector<64x8xf32>
    %77 = vector.extract_strided_slice %40 {offsets = [1, 2, 0], sizes = [8, 8, 16], strides = [1, 1, 1]} : vector<10x10x16xf32> to vector<8x8x16xf32>
    %78 = vector.shape_cast %77 : vector<8x8x16xf32> to vector<64x16xf32>
    %79 = arith.truncf %78 : vector<64x16xf32> to vector<64x16xbf16>
    %c5 = arith.constant 5 : index
    %c0_50 = arith.constant 0 : index
    %c0_51 = arith.constant 0 : index
    %80 = vector.load %arg9[%c5, %c0_50, %c0_51] : memref<9x16x8xbf16, #tpu.memory_space<vmem>>, vector<1x16x8xbf16>
    %81 = vector.shape_cast %80 : vector<1x16x8xbf16> to vector<16x8xbf16>
    %cst_52 = arith.constant dense<0.000000e+00> : vector<64x8xf32>
    %82 = tpu.matmul %79, %81, %cst_52 {dimension_numbers = #tpu.dot_dimension_numbers<[1], [0], [0], [1], [0, 0, 1, 1], [], []>} : vector<64x16xbf16>, vector<16x8xbf16>, vector<64x8xf32> -> vector<64x8xf32>
    %83 = arith.addf %76, %82 : vector<64x8xf32>
    %84 = vector.extract_strided_slice %40 {offsets = [2, 0, 0], sizes = [8, 8, 16], strides = [1, 1, 1]} : vector<10x10x16xf32> to vector<8x8x16xf32>
    %85 = vector.shape_cast %84 : vector<8x8x16xf32> to vector<64x16xf32>
    %86 = arith.truncf %85 : vector<64x16xf32> to vector<64x16xbf16>
    %c6 = arith.constant 6 : index
    %c0_53 = arith.constant 0 : index
    %c0_54 = arith.constant 0 : index
    %87 = vector.load %arg9[%c6, %c0_53, %c0_54] : memref<9x16x8xbf16, #tpu.memory_space<vmem>>, vector<1x16x8xbf16>
    %88 = vector.shape_cast %87 : vector<1x16x8xbf16> to vector<16x8xbf16>
    %cst_55 = arith.constant dense<0.000000e+00> : vector<64x8xf32>
    %89 = tpu.matmul %86, %88, %cst_55 {dimension_numbers = #tpu.dot_dimension_numbers<[1], [0], [0], [1], [0, 0, 1, 1], [], []>} : vector<64x16xbf16>, vector<16x8xbf16>, vector<64x8xf32> -> vector<64x8xf32>
    %90 = arith.addf %83, %89 : vector<64x8xf32>
    %91 = vector.extract_strided_slice %40 {offsets = [2, 1, 0], sizes = [8, 8, 16], strides = [1, 1, 1]} : vector<10x10x16xf32> to vector<8x8x16xf32>
    %92 = vector.shape_cast %91 : vector<8x8x16xf32> to vector<64x16xf32>
    %93 = arith.truncf %92 : vector<64x16xf32> to vector<64x16xbf16>
    %c7 = arith.constant 7 : index
    %c0_56 = arith.constant 0 : index
    %c0_57 = arith.constant 0 : index
    %94 = vector.load %arg9[%c7, %c0_56, %c0_57] : memref<9x16x8xbf16, #tpu.memory_space<vmem>>, vector<1x16x8xbf16>
    %95 = vector.shape_cast %94 : vector<1x16x8xbf16> to vector<16x8xbf16>
    %cst_58 = arith.constant dense<0.000000e+00> : vector<64x8xf32>
    %96 = tpu.matmul %93, %95, %cst_58 {dimension_numbers = #tpu.dot_dimension_numbers<[1], [0], [0], [1], [0, 0, 1, 1], [], []>} : vector<64x16xbf16>, vector<16x8xbf16>, vector<64x8xf32> -> vector<64x8xf32>
    %97 = arith.addf %90, %96 : vector<64x8xf32>
    %98 = vector.extract_strided_slice %40 {offsets = [2, 2, 0], sizes = [8, 8, 16], strides = [1, 1, 1]} : vector<10x10x16xf32> to vector<8x8x16xf32>
    %99 = vector.shape_cast %98 : vector<8x8x16xf32> to vector<64x16xf32>
    %100 = arith.truncf %99 : vector<64x16xf32> to vector<64x16xbf16>
    %c8 = arith.constant 8 : index
    %c0_59 = arith.constant 0 : index
    %c0_60 = arith.constant 0 : index
    %101 = vector.load %arg9[%c8, %c0_59, %c0_60] : memref<9x16x8xbf16, #tpu.memory_space<vmem>>, vector<1x16x8xbf16>
    %102 = vector.shape_cast %101 : vector<1x16x8xbf16> to vector<16x8xbf16>
    %cst_61 = arith.constant dense<0.000000e+00> : vector<64x8xf32>
    %103 = tpu.matmul %100, %102, %cst_61 {dimension_numbers = #tpu.dot_dimension_numbers<[1], [0], [0], [1], [0, 0, 1, 1], [], []>} : vector<64x16xbf16>, vector<16x8xbf16>, vector<64x8xf32> -> vector<64x8xf32>
    %104 = arith.addf %97, %103 : vector<64x8xf32>
    %105 = arith.truncf %104 : vector<64x8xf32> to vector<64x8xbf16>
    %c0_62 = arith.constant 0 : index
    %c0_63 = arith.constant 0 : index
    %c0_64 = arith.constant 0 : index
    %106 = vector.load %arg10[%c0_62, %c0_63, %c0_64] : memref<1x64x8xbf16, #tpu.memory_space<vmem>>, vector<1x64x8xbf16>
    %107 = vector.shape_cast %106 : vector<1x64x8xbf16> to vector<64x8xbf16>
    %108 = vector.shape_cast %105 : vector<64x8xbf16> to vector<1x64x8xbf16>
    tpu.vector_store %arg10[%c0_62, %c0_63, %c0_64], %108 {strides = array<i32>} : memref<1x64x8xbf16, #tpu.memory_space<vmem>>, vector<1x64x8xbf16>,
    return
  }
  func.func @transform_0(%arg0: i32) -> (i32, i32, i32) {
    %c0_i32 = arith.constant 0 : i32
    %c0_i32_0 = arith.constant 0 : i32
    %c0_i32_1 = arith.constant 0 : i32
    return %arg0, %c0_i32, %c0_i32_0 : i32, i32, i32
  }
  func.func @transform_1(%arg0: i32) -> (i32, i32, i32) {
    %c0_i32 = arith.constant 0 : i32
    %c0_i32_0 = arith.constant 0 : i32
    %c0_i32_1 = arith.constant 0 : i32
    return %arg0, %c0_i32, %c0_i32_0 : i32, i32, i32
  }
  func.func @transform_2(%arg0: i32) -> (i32, i32) {
    %c0_i32 = arith.constant 0 : i32
    %c0_i32_0 = arith.constant 0 : i32
    %c0_i32_1 = arith.constant 0 : i32
    return %c0_i32, %c0_i32_0 : i32, i32
  }
  func.func @transform_3(%arg0: i32) -> (i32, i32) {
    %c0_i32 = arith.constant 0 : i32
    %c0_i32_0 = arith.constant 0 : i32
    %c0_i32_1 = arith.constant 0 : i32
    return %c0_i32, %c0_i32_0 : i32, i32
  }
  func.func @transform_4(%arg0: i32) -> (i32, i32) {
    %c0_i32 = arith.constant 0 : i32
    %c0_i32_0 = arith.constant 0 : i32
    %c0_i32_1 = arith.constant 0 : i32
    return %c0_i32, %c0_i32_0 : i32, i32
  }
  func.func @transform_5(%arg0: i32) -> (i32, i32) {
    %c0_i32 = arith.constant 0 : i32
    %c0_i32_0 = arith.constant 0 : i32
    %c0_i32_1 = arith.constant 0 : i32
    return %c0_i32, %c0_i32_0 : i32, i32
  }
  func.func @transform_6(%arg0: i32) -> (i32, i32) {
    %c0_i32 = arith.constant 0 : i32
    %c0_i32_0 = arith.constant 0 : i32
    %c0_i32_1 = arith.constant 0 : i32
    return %c0_i32, %c0_i32_0 : i32, i32
  }
  func.func @transform_7(%arg0: i32) -> (i32, i32) {
    %c0_i32 = arith.constant 0 : i32
    %c0_i32_0 = arith.constant 0 : i32
    %c0_i32_1 = arith.constant 0 : i32
    return %c0_i32, %c0_i32_0 : i32, i32
  }
  func.func @transform_8(%arg0: i32) -> (i32, i32, i32) {
    %c0_i32 = arith.constant 0 : i32
    %c0_i32_0 = arith.constant 0 : i32
    %c0_i32_1 = arith.constant 0 : i32
    %c0_i32_2 = arith.constant 0 : i32
    return %c0_i32, %c0_i32_0, %c0_i32_1 : i32, i32, i32
  }
  func.func @transform_9(%arg0: i32) -> (i32, i32, i32) {
    %c0_i32 = arith.constant 0 : i32
    %c0_i32_0 = arith.constant 0 : i32
    %c0_i32_1 = arith.constant 0 : i32
    return %arg0, %c0_i32, %c0_i32_0 : i32, i32, i32
  }
}

module attributes {stable_mosaic.version = 11 : i64} {
  func.func @kernel(%arg0: i32, %arg1: memref<1x64x16xbf16, #tpu.memory_space<vmem>>, %arg2: memref<1x64x8xbf16, #tpu.memory_space<vmem>>, %arg3: memref<1x64x8xbf16, #tpu.memory_space<vmem>>, %arg4: memref<1x16xf32, #tpu.memory_space<vmem>>, %arg5: memref<1x8xf32, #tpu.memory_space<vmem>>, %arg6: memref<1x8xf32, #tpu.memory_space<vmem>>, %arg7: memref<1x16xf32, #tpu.memory_space<vmem>>, %arg8: memref<1x8xf32, #tpu.memory_space<vmem>>, %arg9: memref<1x8xf32, #tpu.memory_space<vmem>>, %arg10: memref<32x16xbf16, #tpu.memory_space<vmem>>, %arg11: memref<1x16x16xbf16, #tpu.memory_space<vmem>>) attributes {dimension_semantics = [#tpu.dimension_semantics<parallel>], iteration_bounds = array<i64: 2>, scalar_prefetch = 0 : i64, scratch_operands = 0 : i64, tpu.core_type = #tpu.core_type<tc>, window_params = [{transform_indices = @transform_0, window_bounds = array<i64: 1, 64, 16>}, {transform_indices = @transform_1, window_bounds = array<i64: 1, 64, 8>}, {transform_indices = @transform_2, window_bounds = array<i64: 1, 64, 8>}, {pipeline_mode = #tpu.pipeline_mode<synchronous>, transform_indices = @transform_3, window_bounds = array<i64: 1, 16>}, {pipeline_mode = #tpu.pipeline_mode<synchronous>, transform_indices = @transform_4, window_bounds = array<i64: 1, 8>}, {pipeline_mode = #tpu.pipeline_mode<synchronous>, transform_indices = @transform_5, window_bounds = array<i64: 1, 8>}, {pipeline_mode = #tpu.pipeline_mode<synchronous>, transform_indices = @transform_6, window_bounds = array<i64: 1, 16>}, {pipeline_mode = #tpu.pipeline_mode<synchronous>, transform_indices = @transform_7, window_bounds = array<i64: 1, 8>}, {pipeline_mode = #tpu.pipeline_mode<synchronous>, transform_indices = @transform_8, window_bounds = array<i64: 1, 8>}, {pipeline_mode = #tpu.pipeline_mode<synchronous>, transform_indices = @transform_9, window_bounds = array<i64: 32, 16>}, {transform_indices = @transform_10, window_bounds = array<i64: 1, 16, 16>}]} {
    %cst = arith.constant 0.000000e+00 : f32
    %0 = vector.broadcast %cst : f32 to vector<64x16xf32>
    %c0 = arith.constant 0 : index
    %c0_0 = arith.constant 0 : index
    %c0_1 = arith.constant 0 : index
    %1 = vector.load %arg1[%c0, %c0_0, %c0_1] : memref<1x64x16xbf16, #tpu.memory_space<vmem>>, vector<1x64x16xbf16>
    %2 = vector.shape_cast %1 : vector<1x64x16xbf16> to vector<64x16xbf16>
    %3 = arith.extf %2 : vector<64x16xbf16> to vector<64x16xf32>
    %c0_2 = arith.constant 0 : index
    %c0_3 = arith.constant 0 : index
    %4 = vector.load %arg4[%c0_2, %c0_3] : memref<1x16xf32, #tpu.memory_space<vmem>>, vector<1x16xf32>
    %5 = vector.broadcast %4 : vector<1x16xf32> to vector<64x16xf32>
    %6 = arith.mulf %3, %5 : vector<64x16xf32>
    %c0_4 = arith.constant 0 : index
    %c0_5 = arith.constant 0 : index
    %7 = vector.load %arg7[%c0_4, %c0_5] : memref<1x16xf32, #tpu.memory_space<vmem>>, vector<1x16xf32>
    %8 = vector.broadcast %7 : vector<1x16xf32> to vector<64x16xf32>
    %9 = arith.addf %6, %8 : vector<64x16xf32>
    %cst_6 = arith.constant 0.000000e+00 : f32
    %10 = vector.broadcast %cst_6 : f32 to vector<64x16xf32>
    %11 = arith.maximumf %9, %10 : vector<64x16xf32>
    %12 = arith.truncf %11 : vector<64x16xf32> to vector<64x16xbf16>
    %c0_7 = arith.constant 0 : index
    %c0_8 = arith.constant 0 : index
    %13 = vector.load %arg10[%c0_7, %c0_8] : memref<32x16xbf16, #tpu.memory_space<vmem>>, vector<16x16xbf16>
    %cst_9 = arith.constant dense<0.000000e+00> : vector<64x16xf32>
    %14 = tpu.matmul %12, %13, %cst_9 {dimension_numbers = #tpu.dot_dimension_numbers<[1], [0], [0], [1], [0, 0, 1, 1], [], []>} : vector<64x16xbf16>, vector<16x16xbf16>, vector<64x16xf32> -> vector<64x16xf32>
    %15 = arith.addf %0, %14 : vector<64x16xf32>
    %c0_10 = arith.constant 0 : index
    %c0_11 = arith.constant 0 : index
    %c0_12 = arith.constant 0 : index
    %16 = vector.load %arg2[%c0_10, %c0_11, %c0_12] : memref<1x64x8xbf16, #tpu.memory_space<vmem>>, vector<1x64x8xbf16>
    %17 = vector.shape_cast %16 : vector<1x64x8xbf16> to vector<64x8xbf16>
    %18 = arith.extf %17 : vector<64x8xbf16> to vector<64x8xf32>
    %c0_13 = arith.constant 0 : index
    %c0_14 = arith.constant 0 : index
    %19 = vector.load %arg5[%c0_13, %c0_14] : memref<1x8xf32, #tpu.memory_space<vmem>>, vector<1x8xf32>
    %20 = vector.broadcast %19 : vector<1x8xf32> to vector<64x8xf32>
    %21 = arith.mulf %18, %20 : vector<64x8xf32>
    %c0_15 = arith.constant 0 : index
    %c0_16 = arith.constant 0 : index
    %22 = vector.load %arg8[%c0_15, %c0_16] : memref<1x8xf32, #tpu.memory_space<vmem>>, vector<1x8xf32>
    %23 = vector.broadcast %22 : vector<1x8xf32> to vector<64x8xf32>
    %24 = arith.addf %21, %23 : vector<64x8xf32>
    %cst_17 = arith.constant 0.000000e+00 : f32
    %25 = vector.broadcast %cst_17 : f32 to vector<64x8xf32>
    %26 = arith.maximumf %24, %25 : vector<64x8xf32>
    %27 = arith.truncf %26 : vector<64x8xf32> to vector<64x8xbf16>
    %c16 = arith.constant 16 : index
    %c0_18 = arith.constant 0 : index
    %28 = vector.load %arg10[%c16, %c0_18] : memref<32x16xbf16, #tpu.memory_space<vmem>>, vector<8x16xbf16>
    %cst_19 = arith.constant dense<0.000000e+00> : vector<64x16xf32>
    %29 = tpu.matmul %27, %28, %cst_19 {dimension_numbers = #tpu.dot_dimension_numbers<[1], [0], [0], [1], [0, 0, 1, 1], [], []>} : vector<64x8xbf16>, vector<8x16xbf16>, vector<64x16xf32> -> vector<64x16xf32>
    %30 = arith.addf %15, %29 : vector<64x16xf32>
    %c0_20 = arith.constant 0 : index
    %c0_21 = arith.constant 0 : index
    %c0_22 = arith.constant 0 : index
    %31 = vector.load %arg3[%c0_20, %c0_21, %c0_22] : memref<1x64x8xbf16, #tpu.memory_space<vmem>>, vector<1x64x8xbf16>
    %32 = vector.shape_cast %31 : vector<1x64x8xbf16> to vector<64x8xbf16>
    %33 = arith.extf %32 : vector<64x8xbf16> to vector<64x8xf32>
    %c0_23 = arith.constant 0 : index
    %c0_24 = arith.constant 0 : index
    %34 = vector.load %arg6[%c0_23, %c0_24] : memref<1x8xf32, #tpu.memory_space<vmem>>, vector<1x8xf32>
    %35 = vector.broadcast %34 : vector<1x8xf32> to vector<64x8xf32>
    %36 = arith.mulf %33, %35 : vector<64x8xf32>
    %c0_25 = arith.constant 0 : index
    %c0_26 = arith.constant 0 : index
    %37 = vector.load %arg9[%c0_25, %c0_26] : memref<1x8xf32, #tpu.memory_space<vmem>>, vector<1x8xf32>
    %38 = vector.broadcast %37 : vector<1x8xf32> to vector<64x8xf32>
    %39 = arith.addf %36, %38 : vector<64x8xf32>
    %cst_27 = arith.constant 0.000000e+00 : f32
    %40 = vector.broadcast %cst_27 : f32 to vector<64x8xf32>
    %41 = arith.maximumf %39, %40 : vector<64x8xf32>
    %42 = arith.truncf %41 : vector<64x8xf32> to vector<64x8xbf16>
    %c24 = arith.constant 24 : index
    %c0_28 = arith.constant 0 : index
    %43 = vector.load %arg10[%c24, %c0_28] : memref<32x16xbf16, #tpu.memory_space<vmem>>, vector<8x16xbf16>
    %cst_29 = arith.constant dense<0.000000e+00> : vector<64x16xf32>
    %44 = tpu.matmul %42, %43, %cst_29 {dimension_numbers = #tpu.dot_dimension_numbers<[1], [0], [0], [1], [0, 0, 1, 1], [], []>} : vector<64x8xbf16>, vector<8x16xbf16>, vector<64x16xf32> -> vector<64x16xf32>
    %45 = arith.addf %30, %44 : vector<64x16xf32>
    %46 = vector.shape_cast %45 : vector<64x16xf32> to vector<32x2x16xf32>
    %47 = vector.extract_strided_slice %46 {offsets = [0, 0, 0], sizes = [32, 1, 16], strides = [1, 1, 1]} : vector<32x2x16xf32> to vector<32x1x16xf32>
    %48 = vector.shape_cast %47 : vector<32x1x16xf32> to vector<32x16xf32>
    %49 = vector.extract_strided_slice %46 {offsets = [0, 1, 0], sizes = [32, 1, 16], strides = [1, 1, 1]} : vector<32x2x16xf32> to vector<32x1x16xf32>
    %50 = vector.shape_cast %49 : vector<32x1x16xf32> to vector<32x16xf32>
    %51 = arith.addf %48, %50 : vector<32x16xf32>
    %52 = vector.shape_cast %51 : vector<32x16xf32> to vector<4x8x16xf32>
    %53 = vector.extract_strided_slice %52 {offsets = [0, 0, 0], sizes = [4, 4, 16], strides = [1, 1, 1]} : vector<4x8x16xf32> to vector<4x4x16xf32>
    %54 = vector.extract_strided_slice %52 {offsets = [0, 4, 0], sizes = [4, 4, 16], strides = [1, 1, 1]} : vector<4x8x16xf32> to vector<4x4x16xf32>
    %55 = arith.addf %53, %54 : vector<4x4x16xf32>
    %cst_30 = arith.constant 2.500000e-01 : f32
    %56 = vector.broadcast %cst_30 : f32 to vector<4x4x16xf32>
    %57 = arith.mulf %55, %56 : vector<4x4x16xf32>
    %58 = vector.shape_cast %57 : vector<4x4x16xf32> to vector<16x16xf32>
    %59 = arith.truncf %58 : vector<16x16xf32> to vector<16x16xbf16>
    %c0_31 = arith.constant 0 : index
    %c0_32 = arith.constant 0 : index
    %c0_33 = arith.constant 0 : index
    %60 = vector.load %arg11[%c0_31, %c0_32, %c0_33] : memref<1x16x16xbf16, #tpu.memory_space<vmem>>, vector<1x16x16xbf16>
    %61 = vector.shape_cast %60 : vector<1x16x16xbf16> to vector<16x16xbf16>
    %62 = vector.shape_cast %59 : vector<16x16xbf16> to vector<1x16x16xbf16>
    tpu.vector_store %arg11[%c0_31, %c0_32, %c0_33], %62 {strides = array<i32>} : memref<1x16x16xbf16, #tpu.memory_space<vmem>>, vector<1x16x16xbf16>,
    return
  }
  func.func @transform_0(%arg0: i32) -> (i32, i32, i32) {
    %c0_i32 = arith.constant 0 : i32
    %c0_i32_0 = arith.constant 0 : i32
    %c0_i32_1 = arith.constant 0 : i32
    return %arg0, %c0_i32, %c0_i32_0 : i32, i32, i32
  }
  func.func @transform_1(%arg0: i32) -> (i32, i32, i32) {
    %c0_i32 = arith.constant 0 : i32
    %c0_i32_0 = arith.constant 0 : i32
    %c0_i32_1 = arith.constant 0 : i32
    return %arg0, %c0_i32, %c0_i32_0 : i32, i32, i32
  }
  func.func @transform_2(%arg0: i32) -> (i32, i32, i32) {
    %c0_i32 = arith.constant 0 : i32
    %c0_i32_0 = arith.constant 0 : i32
    %c0_i32_1 = arith.constant 0 : i32
    return %arg0, %c0_i32, %c0_i32_0 : i32, i32, i32
  }
  func.func @transform_3(%arg0: i32) -> (i32, i32) {
    %c0_i32 = arith.constant 0 : i32
    %c0_i32_0 = arith.constant 0 : i32
    %c0_i32_1 = arith.constant 0 : i32
    return %c0_i32, %c0_i32_0 : i32, i32
  }
  func.func @transform_4(%arg0: i32) -> (i32, i32) {
    %c0_i32 = arith.constant 0 : i32
    %c0_i32_0 = arith.constant 0 : i32
    %c0_i32_1 = arith.constant 0 : i32
    return %c0_i32, %c0_i32_0 : i32, i32
  }
  func.func @transform_5(%arg0: i32) -> (i32, i32) {
    %c0_i32 = arith.constant 0 : i32
    %c0_i32_0 = arith.constant 0 : i32
    %c0_i32_1 = arith.constant 0 : i32
    return %c0_i32, %c0_i32_0 : i32, i32
  }
  func.func @transform_6(%arg0: i32) -> (i32, i32) {
    %c0_i32 = arith.constant 0 : i32
    %c0_i32_0 = arith.constant 0 : i32
    %c0_i32_1 = arith.constant 0 : i32
    return %c0_i32, %c0_i32_0 : i32, i32
  }
  func.func @transform_7(%arg0: i32) -> (i32, i32) {
    %c0_i32 = arith.constant 0 : i32
    %c0_i32_0 = arith.constant 0 : i32
    %c0_i32_1 = arith.constant 0 : i32
    return %c0_i32, %c0_i32_0 : i32, i32
  }
  func.func @transform_8(%arg0: i32) -> (i32, i32) {
    %c0_i32 = arith.constant 0 : i32
    %c0_i32_0 = arith.constant 0 : i32
    %c0_i32_1 = arith.constant 0 : i32
    return %c0_i32, %c0_i32_0 : i32, i32
  }
  func.func @transform_9(%arg0: i32) -> (i32, i32) {
    %c0_i32 = arith.constant 0 : i32
    %c0_i32_0 = arith.constant 0 : i32
    %c0_i32_1 = arith.constant 0 : i32
    return %c0_i32, %c0_i32_0 : i32, i32
  }
  func.func @transform_10(%arg0: i32) -> (i32, i32, i32) {
    %c0_i32 = arith.constant 0 : i32
    %c0_i32_0 = arith.constant 0 : i32
    %c0_i32_1 = arith.constant 0 : i32
    return %arg0, %c0_i32, %c0_i32_0 : i32, i32, i32
  }
}

module attributes {stable_mosaic.version = 11 : i64} {
  func.func @kernel(%arg0: i32, %arg1: memref<1x16x16xbf16, #tpu.memory_space<vmem>>, %arg2: memref<1x16xf32, #tpu.memory_space<vmem>>, %arg3: memref<1x16xf32, #tpu.memory_space<vmem>>, %arg4: memref<16x16xbf16, #tpu.memory_space<vmem>>, %arg5: memref<1x16xf32, #tpu.memory_space<vmem>>, %arg6: memref<9x16x8xbf16, #tpu.memory_space<vmem>>, %arg7: memref<1x16x8xbf16, #tpu.memory_space<vmem>>, %arg8: memref<6x6x16xf32, #tpu.memory_space<vmem>>) attributes {dimension_semantics = [#tpu.dimension_semantics<parallel>], iteration_bounds = array<i64: 2>, scalar_prefetch = 0 : i64, scratch_operands = 1 : i64, tpu.core_type = #tpu.core_type<tc>, window_params = [{transform_indices = @transform_0, window_bounds = array<i64: 1, 16, 16>}, {pipeline_mode = #tpu.pipeline_mode<synchronous>, transform_indices = @transform_1, window_bounds = array<i64: 1, 16>}, {pipeline_mode = #tpu.pipeline_mode<synchronous>, transform_indices = @transform_2, window_bounds = array<i64: 1, 16>}, {pipeline_mode = #tpu.pipeline_mode<synchronous>, transform_indices = @transform_3, window_bounds = array<i64: 16, 16>}, {pipeline_mode = #tpu.pipeline_mode<synchronous>, transform_indices = @transform_4, window_bounds = array<i64: 1, 16>}, {pipeline_mode = #tpu.pipeline_mode<synchronous>, transform_indices = @transform_5, window_bounds = array<i64: 9, 16, 8>}, {transform_indices = @transform_6, window_bounds = array<i64: 1, 16, 8>}]} {
    %cst = arith.constant 0.000000e+00 : f32
    %0 = vector.broadcast %cst : f32 to vector<16x16xf32>
    %c0 = arith.constant 0 : index
    %c0_0 = arith.constant 0 : index
    %c0_1 = arith.constant 0 : index
    %1 = vector.load %arg1[%c0, %c0_0, %c0_1] : memref<1x16x16xbf16, #tpu.memory_space<vmem>>, vector<1x16x16xbf16>
    %2 = vector.shape_cast %1 : vector<1x16x16xbf16> to vector<16x16xbf16>
    %3 = arith.extf %2 : vector<16x16xbf16> to vector<16x16xf32>
    %c0_2 = arith.constant 0 : index
    %c0_3 = arith.constant 0 : index
    %4 = vector.load %arg2[%c0_2, %c0_3] : memref<1x16xf32, #tpu.memory_space<vmem>>, vector<1x16xf32>
    %5 = vector.broadcast %4 : vector<1x16xf32> to vector<16x16xf32>
    %6 = arith.mulf %3, %5 : vector<16x16xf32>
    %c0_4 = arith.constant 0 : index
    %c0_5 = arith.constant 0 : index
    %7 = vector.load %arg3[%c0_4, %c0_5] : memref<1x16xf32, #tpu.memory_space<vmem>>, vector<1x16xf32>
    %8 = vector.broadcast %7 : vector<1x16xf32> to vector<16x16xf32>
    %9 = arith.addf %6, %8 : vector<16x16xf32>
    %cst_6 = arith.constant 0.000000e+00 : f32
    %10 = vector.broadcast %cst_6 : f32 to vector<16x16xf32>
    %11 = arith.maximumf %9, %10 : vector<16x16xf32>
    %12 = arith.truncf %11 : vector<16x16xf32> to vector<16x16xbf16>
    %c0_7 = arith.constant 0 : index
    %c0_8 = arith.constant 0 : index
    %13 = vector.load %arg4[%c0_7, %c0_8] : memref<16x16xbf16, #tpu.memory_space<vmem>>, vector<16x16xbf16>
    %cst_9 = arith.constant dense<0.000000e+00> : vector<16x16xf32>
    %14 = tpu.matmul %12, %13, %cst_9 {dimension_numbers = #tpu.dot_dimension_numbers<[1], [0], [0], [1], [0, 0, 1, 1], [], []>} : vector<16x16xbf16>, vector<16x16xbf16>, vector<16x16xf32> -> vector<16x16xf32>
    %15 = arith.addf %0, %14 : vector<16x16xf32>
    %c0_10 = arith.constant 0 : index
    %c0_11 = arith.constant 0 : index
    %16 = vector.load %arg5[%c0_10, %c0_11] : memref<1x16xf32, #tpu.memory_space<vmem>>, vector<1x16xf32>
    %17 = vector.broadcast %16 : vector<1x16xf32> to vector<16x16xf32>
    %18 = arith.addf %15, %17 : vector<16x16xf32>
    %cst_12 = arith.constant 0.000000e+00 : f32
    %19 = vector.broadcast %cst_12 : f32 to vector<16x16xf32>
    %20 = arith.maximumf %18, %19 : vector<16x16xf32>
    %cst_13 = arith.constant 0.000000e+00 : f32
    %21 = vector.broadcast %cst_13 : f32 to vector<6x6x16xf32>
    %c0_14 = arith.constant 0 : index
    %c0_15 = arith.constant 0 : index
    %c0_16 = arith.constant 0 : index
    %22 = vector.load %arg8[%c0_14, %c0_15, %c0_16] : memref<6x6x16xf32, #tpu.memory_space<vmem>>, vector<6x6x16xf32>
    tpu.vector_store %arg8[%c0_14, %c0_15, %c0_16], %21 {strides = array<i32>} : memref<6x6x16xf32, #tpu.memory_space<vmem>>, vector<6x6x16xf32>,
    %23 = vector.shape_cast %20 : vector<16x16xf32> to vector<4x4x16xf32>
    %c1 = arith.constant 1 : index
    %c1_17 = arith.constant 1 : index
    %c0_18 = arith.constant 0 : index
    %24 = vector.load %arg8[%c1, %c1_17, %c0_18] : memref<6x6x16xf32, #tpu.memory_space<vmem>>, vector<4x4x16xf32>
    tpu.vector_store %arg8[%c1, %c1_17, %c0_18], %23 {strides = array<i32>} : memref<6x6x16xf32, #tpu.memory_space<vmem>>, vector<4x4x16xf32>,
    %c0_19 = arith.constant 0 : index
    %c0_20 = arith.constant 0 : index
    %c0_21 = arith.constant 0 : index
    %25 = vector.load %arg8[%c0_19, %c0_20, %c0_21] : memref<6x6x16xf32, #tpu.memory_space<vmem>>, vector<6x6x16xf32>
    %cst_22 = arith.constant 0.000000e+00 : f32
    %26 = vector.broadcast %cst_22 : f32 to vector<16x8xf32>
    %27 = vector.extract_strided_slice %25 {offsets = [0, 0, 0], sizes = [4, 4, 16], strides = [1, 1, 1]} : vector<6x6x16xf32> to vector<4x4x16xf32>
    %28 = vector.shape_cast %27 : vector<4x4x16xf32> to vector<16x16xf32>
    %29 = arith.truncf %28 : vector<16x16xf32> to vector<16x16xbf16>
    %c0_23 = arith.constant 0 : index
    %c0_24 = arith.constant 0 : index
    %c0_25 = arith.constant 0 : index
    %30 = vector.load %arg6[%c0_23, %c0_24, %c0_25] : memref<9x16x8xbf16, #tpu.memory_space<vmem>>, vector<1x16x8xbf16>
    %31 = vector.shape_cast %30 : vector<1x16x8xbf16> to vector<16x8xbf16>
    %cst_26 = arith.constant dense<0.000000e+00> : vector<16x8xf32>
    %32 = tpu.matmul %29, %31, %cst_26 {dimension_numbers = #tpu.dot_dimension_numbers<[1], [0], [0], [1], [0, 0, 1, 1], [], []>} : vector<16x16xbf16>, vector<16x8xbf16>, vector<16x8xf32> -> vector<16x8xf32>
    %33 = arith.addf %26, %32 : vector<16x8xf32>
    %34 = vector.extract_strided_slice %25 {offsets = [0, 1, 0], sizes = [4, 4, 16], strides = [1, 1, 1]} : vector<6x6x16xf32> to vector<4x4x16xf32>
    %35 = vector.shape_cast %34 : vector<4x4x16xf32> to vector<16x16xf32>
    %36 = arith.truncf %35 : vector<16x16xf32> to vector<16x16xbf16>
    %c1_27 = arith.constant 1 : index
    %c0_28 = arith.constant 0 : index
    %c0_29 = arith.constant 0 : index
    %37 = vector.load %arg6[%c1_27, %c0_28, %c0_29] : memref<9x16x8xbf16, #tpu.memory_space<vmem>>, vector<1x16x8xbf16>
    %38 = vector.shape_cast %37 : vector<1x16x8xbf16> to vector<16x8xbf16>
    %cst_30 = arith.constant dense<0.000000e+00> : vector<16x8xf32>
    %39 = tpu.matmul %36, %38, %cst_30 {dimension_numbers = #tpu.dot_dimension_numbers<[1], [0], [0], [1], [0, 0, 1, 1], [], []>} : vector<16x16xbf16>, vector<16x8xbf16>, vector<16x8xf32> -> vector<16x8xf32>
    %40 = arith.addf %33, %39 : vector<16x8xf32>
    %41 = vector.extract_strided_slice %25 {offsets = [0, 2, 0], sizes = [4, 4, 16], strides = [1, 1, 1]} : vector<6x6x16xf32> to vector<4x4x16xf32>
    %42 = vector.shape_cast %41 : vector<4x4x16xf32> to vector<16x16xf32>
    %43 = arith.truncf %42 : vector<16x16xf32> to vector<16x16xbf16>
    %c2 = arith.constant 2 : index
    %c0_31 = arith.constant 0 : index
    %c0_32 = arith.constant 0 : index
    %44 = vector.load %arg6[%c2, %c0_31, %c0_32] : memref<9x16x8xbf16, #tpu.memory_space<vmem>>, vector<1x16x8xbf16>
    %45 = vector.shape_cast %44 : vector<1x16x8xbf16> to vector<16x8xbf16>
    %cst_33 = arith.constant dense<0.000000e+00> : vector<16x8xf32>
    %46 = tpu.matmul %43, %45, %cst_33 {dimension_numbers = #tpu.dot_dimension_numbers<[1], [0], [0], [1], [0, 0, 1, 1], [], []>} : vector<16x16xbf16>, vector<16x8xbf16>, vector<16x8xf32> -> vector<16x8xf32>
    %47 = arith.addf %40, %46 : vector<16x8xf32>
    %48 = vector.extract_strided_slice %25 {offsets = [1, 0, 0], sizes = [4, 4, 16], strides = [1, 1, 1]} : vector<6x6x16xf32> to vector<4x4x16xf32>
    %49 = vector.shape_cast %48 : vector<4x4x16xf32> to vector<16x16xf32>
    %50 = arith.truncf %49 : vector<16x16xf32> to vector<16x16xbf16>
    %c3 = arith.constant 3 : index
    %c0_34 = arith.constant 0 : index
    %c0_35 = arith.constant 0 : index
    %51 = vector.load %arg6[%c3, %c0_34, %c0_35] : memref<9x16x8xbf16, #tpu.memory_space<vmem>>, vector<1x16x8xbf16>
    %52 = vector.shape_cast %51 : vector<1x16x8xbf16> to vector<16x8xbf16>
    %cst_36 = arith.constant dense<0.000000e+00> : vector<16x8xf32>
    %53 = tpu.matmul %50, %52, %cst_36 {dimension_numbers = #tpu.dot_dimension_numbers<[1], [0], [0], [1], [0, 0, 1, 1], [], []>} : vector<16x16xbf16>, vector<16x8xbf16>, vector<16x8xf32> -> vector<16x8xf32>
    %54 = arith.addf %47, %53 : vector<16x8xf32>
    %55 = vector.extract_strided_slice %25 {offsets = [1, 1, 0], sizes = [4, 4, 16], strides = [1, 1, 1]} : vector<6x6x16xf32> to vector<4x4x16xf32>
    %56 = vector.shape_cast %55 : vector<4x4x16xf32> to vector<16x16xf32>
    %57 = arith.truncf %56 : vector<16x16xf32> to vector<16x16xbf16>
    %c4 = arith.constant 4 : index
    %c0_37 = arith.constant 0 : index
    %c0_38 = arith.constant 0 : index
    %58 = vector.load %arg6[%c4, %c0_37, %c0_38] : memref<9x16x8xbf16, #tpu.memory_space<vmem>>, vector<1x16x8xbf16>
    %59 = vector.shape_cast %58 : vector<1x16x8xbf16> to vector<16x8xbf16>
    %cst_39 = arith.constant dense<0.000000e+00> : vector<16x8xf32>
    %60 = tpu.matmul %57, %59, %cst_39 {dimension_numbers = #tpu.dot_dimension_numbers<[1], [0], [0], [1], [0, 0, 1, 1], [], []>} : vector<16x16xbf16>, vector<16x8xbf16>, vector<16x8xf32> -> vector<16x8xf32>
    %61 = arith.addf %54, %60 : vector<16x8xf32>
    %62 = vector.extract_strided_slice %25 {offsets = [1, 2, 0], sizes = [4, 4, 16], strides = [1, 1, 1]} : vector<6x6x16xf32> to vector<4x4x16xf32>
    %63 = vector.shape_cast %62 : vector<4x4x16xf32> to vector<16x16xf32>
    %64 = arith.truncf %63 : vector<16x16xf32> to vector<16x16xbf16>
    %c5 = arith.constant 5 : index
    %c0_40 = arith.constant 0 : index
    %c0_41 = arith.constant 0 : index
    %65 = vector.load %arg6[%c5, %c0_40, %c0_41] : memref<9x16x8xbf16, #tpu.memory_space<vmem>>, vector<1x16x8xbf16>
    %66 = vector.shape_cast %65 : vector<1x16x8xbf16> to vector<16x8xbf16>
    %cst_42 = arith.constant dense<0.000000e+00> : vector<16x8xf32>
    %67 = tpu.matmul %64, %66, %cst_42 {dimension_numbers = #tpu.dot_dimension_numbers<[1], [0], [0], [1], [0, 0, 1, 1], [], []>} : vector<16x16xbf16>, vector<16x8xbf16>, vector<16x8xf32> -> vector<16x8xf32>
    %68 = arith.addf %61, %67 : vector<16x8xf32>
    %69 = vector.extract_strided_slice %25 {offsets = [2, 0, 0], sizes = [4, 4, 16], strides = [1, 1, 1]} : vector<6x6x16xf32> to vector<4x4x16xf32>
    %70 = vector.shape_cast %69 : vector<4x4x16xf32> to vector<16x16xf32>
    %71 = arith.truncf %70 : vector<16x16xf32> to vector<16x16xbf16>
    %c6 = arith.constant 6 : index
    %c0_43 = arith.constant 0 : index
    %c0_44 = arith.constant 0 : index
    %72 = vector.load %arg6[%c6, %c0_43, %c0_44] : memref<9x16x8xbf16, #tpu.memory_space<vmem>>, vector<1x16x8xbf16>
    %73 = vector.shape_cast %72 : vector<1x16x8xbf16> to vector<16x8xbf16>
    %cst_45 = arith.constant dense<0.000000e+00> : vector<16x8xf32>
    %74 = tpu.matmul %71, %73, %cst_45 {dimension_numbers = #tpu.dot_dimension_numbers<[1], [0], [0], [1], [0, 0, 1, 1], [], []>} : vector<16x16xbf16>, vector<16x8xbf16>, vector<16x8xf32> -> vector<16x8xf32>
    %75 = arith.addf %68, %74 : vector<16x8xf32>
    %76 = vector.extract_strided_slice %25 {offsets = [2, 1, 0], sizes = [4, 4, 16], strides = [1, 1, 1]} : vector<6x6x16xf32> to vector<4x4x16xf32>
    %77 = vector.shape_cast %76 : vector<4x4x16xf32> to vector<16x16xf32>
    %78 = arith.truncf %77 : vector<16x16xf32> to vector<16x16xbf16>
    %c7 = arith.constant 7 : index
    %c0_46 = arith.constant 0 : index
    %c0_47 = arith.constant 0 : index
    %79 = vector.load %arg6[%c7, %c0_46, %c0_47] : memref<9x16x8xbf16, #tpu.memory_space<vmem>>, vector<1x16x8xbf16>
    %80 = vector.shape_cast %79 : vector<1x16x8xbf16> to vector<16x8xbf16>
    %cst_48 = arith.constant dense<0.000000e+00> : vector<16x8xf32>
    %81 = tpu.matmul %78, %80, %cst_48 {dimension_numbers = #tpu.dot_dimension_numbers<[1], [0], [0], [1], [0, 0, 1, 1], [], []>} : vector<16x16xbf16>, vector<16x8xbf16>, vector<16x8xf32> -> vector<16x8xf32>
    %82 = arith.addf %75, %81 : vector<16x8xf32>
    %83 = vector.extract_strided_slice %25 {offsets = [2, 2, 0], sizes = [4, 4, 16], strides = [1, 1, 1]} : vector<6x6x16xf32> to vector<4x4x16xf32>
    %84 = vector.shape_cast %83 : vector<4x4x16xf32> to vector<16x16xf32>
    %85 = arith.truncf %84 : vector<16x16xf32> to vector<16x16xbf16>
    %c8 = arith.constant 8 : index
    %c0_49 = arith.constant 0 : index
    %c0_50 = arith.constant 0 : index
    %86 = vector.load %arg6[%c8, %c0_49, %c0_50] : memref<9x16x8xbf16, #tpu.memory_space<vmem>>, vector<1x16x8xbf16>
    %87 = vector.shape_cast %86 : vector<1x16x8xbf16> to vector<16x8xbf16>
    %cst_51 = arith.constant dense<0.000000e+00> : vector<16x8xf32>
    %88 = tpu.matmul %85, %87, %cst_51 {dimension_numbers = #tpu.dot_dimension_numbers<[1], [0], [0], [1], [0, 0, 1, 1], [], []>} : vector<16x16xbf16>, vector<16x8xbf16>, vector<16x8xf32> -> vector<16x8xf32>
    %89 = arith.addf %82, %88 : vector<16x8xf32>
    %90 = arith.truncf %89 : vector<16x8xf32> to vector<16x8xbf16>
    %c0_52 = arith.constant 0 : index
    %c0_53 = arith.constant 0 : index
    %c0_54 = arith.constant 0 : index
    %91 = vector.load %arg7[%c0_52, %c0_53, %c0_54] : memref<1x16x8xbf16, #tpu.memory_space<vmem>>, vector<1x16x8xbf16>
    %92 = vector.shape_cast %91 : vector<1x16x8xbf16> to vector<16x8xbf16>
    %93 = vector.shape_cast %90 : vector<16x8xbf16> to vector<1x16x8xbf16>
    tpu.vector_store %arg7[%c0_52, %c0_53, %c0_54], %93 {strides = array<i32>} : memref<1x16x8xbf16, #tpu.memory_space<vmem>>, vector<1x16x8xbf16>,
    return
  }
  func.func @transform_0(%arg0: i32) -> (i32, i32, i32) {
    %c0_i32 = arith.constant 0 : i32
    %c0_i32_0 = arith.constant 0 : i32
    %c0_i32_1 = arith.constant 0 : i32
    return %arg0, %c0_i32, %c0_i32_0 : i32, i32, i32
  }
  func.func @transform_1(%arg0: i32) -> (i32, i32) {
    %c0_i32 = arith.constant 0 : i32
    %c0_i32_0 = arith.constant 0 : i32
    %c0_i32_1 = arith.constant 0 : i32
    return %c0_i32, %c0_i32_0 : i32, i32
  }
  func.func @transform_2(%arg0: i32) -> (i32, i32) {
    %c0_i32 = arith.constant 0 : i32
    %c0_i32_0 = arith.constant 0 : i32
    %c0_i32_1 = arith.constant 0 : i32
    return %c0_i32, %c0_i32_0 : i32, i32
  }
  func.func @transform_3(%arg0: i32) -> (i32, i32) {
    %c0_i32 = arith.constant 0 : i32
    %c0_i32_0 = arith.constant 0 : i32
    %c0_i32_1 = arith.constant 0 : i32
    return %c0_i32, %c0_i32_0 : i32, i32
  }
  func.func @transform_4(%arg0: i32) -> (i32, i32) {
    %c0_i32 = arith.constant 0 : i32
    %c0_i32_0 = arith.constant 0 : i32
    %c0_i32_1 = arith.constant 0 : i32
    return %c0_i32, %c0_i32_0 : i32, i32
  }
  func.func @transform_5(%arg0: i32) -> (i32, i32, i32) {
    %c0_i32 = arith.constant 0 : i32
    %c0_i32_0 = arith.constant 0 : i32
    %c0_i32_1 = arith.constant 0 : i32
    %c0_i32_2 = arith.constant 0 : i32
    return %c0_i32, %c0_i32_0, %c0_i32_1 : i32, i32, i32
  }
  func.func @transform_6(%arg0: i32) -> (i32, i32, i32) {
    %c0_i32 = arith.constant 0 : i32
    %c0_i32_0 = arith.constant 0 : i32
    %c0_i32_1 = arith.constant 0 : i32
    return %arg0, %c0_i32, %c0_i32_0 : i32, i32, i32
  }
}

module attributes {stable_mosaic.version = 11 : i64} {
  func.func @kernel(%arg0: i32, %arg1: memref<1x16x16xbf16, #tpu.memory_space<vmem>>, %arg2: memref<1x16x8xbf16, #tpu.memory_space<vmem>>, %arg3: memref<1x16xf32, #tpu.memory_space<vmem>>, %arg4: memref<1x8xf32, #tpu.memory_space<vmem>>, %arg5: memref<1x16xf32, #tpu.memory_space<vmem>>, %arg6: memref<1x8xf32, #tpu.memory_space<vmem>>, %arg7: memref<24x16xbf16, #tpu.memory_space<vmem>>, %arg8: memref<1x16xf32, #tpu.memory_space<vmem>>, %arg9: memref<9x16x8xbf16, #tpu.memory_space<vmem>>, %arg10: memref<1x16x8xbf16, #tpu.memory_space<vmem>>, %arg11: memref<6x6x16xf32, #tpu.memory_space<vmem>>) attributes {dimension_semantics = [#tpu.dimension_semantics<parallel>], iteration_bounds = array<i64: 2>, scalar_prefetch = 0 : i64, scratch_operands = 1 : i64, tpu.core_type = #tpu.core_type<tc>, window_params = [{transform_indices = @transform_0, window_bounds = array<i64: 1, 16, 16>}, {transform_indices = @transform_1, window_bounds = array<i64: 1, 16, 8>}, {pipeline_mode = #tpu.pipeline_mode<synchronous>, transform_indices = @transform_2, window_bounds = array<i64: 1, 16>}, {pipeline_mode = #tpu.pipeline_mode<synchronous>, transform_indices = @transform_3, window_bounds = array<i64: 1, 8>}, {pipeline_mode = #tpu.pipeline_mode<synchronous>, transform_indices = @transform_4, window_bounds = array<i64: 1, 16>}, {pipeline_mode = #tpu.pipeline_mode<synchronous>, transform_indices = @transform_5, window_bounds = array<i64: 1, 8>}, {pipeline_mode = #tpu.pipeline_mode<synchronous>, transform_indices = @transform_6, window_bounds = array<i64: 24, 16>}, {pipeline_mode = #tpu.pipeline_mode<synchronous>, transform_indices = @transform_7, window_bounds = array<i64: 1, 16>}, {pipeline_mode = #tpu.pipeline_mode<synchronous>, transform_indices = @transform_8, window_bounds = array<i64: 9, 16, 8>}, {transform_indices = @transform_9, window_bounds = array<i64: 1, 16, 8>}]} {
    %cst = arith.constant 0.000000e+00 : f32
    %0 = vector.broadcast %cst : f32 to vector<16x16xf32>
    %c0 = arith.constant 0 : index
    %c0_0 = arith.constant 0 : index
    %c0_1 = arith.constant 0 : index
    %1 = vector.load %arg1[%c0, %c0_0, %c0_1] : memref<1x16x16xbf16, #tpu.memory_space<vmem>>, vector<1x16x16xbf16>
    %2 = vector.shape_cast %1 : vector<1x16x16xbf16> to vector<16x16xbf16>
    %3 = arith.extf %2 : vector<16x16xbf16> to vector<16x16xf32>
    %c0_2 = arith.constant 0 : index
    %c0_3 = arith.constant 0 : index
    %4 = vector.load %arg3[%c0_2, %c0_3] : memref<1x16xf32, #tpu.memory_space<vmem>>, vector<1x16xf32>
    %5 = vector.broadcast %4 : vector<1x16xf32> to vector<16x16xf32>
    %6 = arith.mulf %3, %5 : vector<16x16xf32>
    %c0_4 = arith.constant 0 : index
    %c0_5 = arith.constant 0 : index
    %7 = vector.load %arg5[%c0_4, %c0_5] : memref<1x16xf32, #tpu.memory_space<vmem>>, vector<1x16xf32>
    %8 = vector.broadcast %7 : vector<1x16xf32> to vector<16x16xf32>
    %9 = arith.addf %6, %8 : vector<16x16xf32>
    %cst_6 = arith.constant 0.000000e+00 : f32
    %10 = vector.broadcast %cst_6 : f32 to vector<16x16xf32>
    %11 = arith.maximumf %9, %10 : vector<16x16xf32>
    %12 = arith.truncf %11 : vector<16x16xf32> to vector<16x16xbf16>
    %c0_7 = arith.constant 0 : index
    %c0_8 = arith.constant 0 : index
    %13 = vector.load %arg7[%c0_7, %c0_8] : memref<24x16xbf16, #tpu.memory_space<vmem>>, vector<16x16xbf16>
    %cst_9 = arith.constant dense<0.000000e+00> : vector<16x16xf32>
    %14 = tpu.matmul %12, %13, %cst_9 {dimension_numbers = #tpu.dot_dimension_numbers<[1], [0], [0], [1], [0, 0, 1, 1], [], []>} : vector<16x16xbf16>, vector<16x16xbf16>, vector<16x16xf32> -> vector<16x16xf32>
    %15 = arith.addf %0, %14 : vector<16x16xf32>
    %c0_10 = arith.constant 0 : index
    %c0_11 = arith.constant 0 : index
    %c0_12 = arith.constant 0 : index
    %16 = vector.load %arg2[%c0_10, %c0_11, %c0_12] : memref<1x16x8xbf16, #tpu.memory_space<vmem>>, vector<1x16x8xbf16>
    %17 = vector.shape_cast %16 : vector<1x16x8xbf16> to vector<16x8xbf16>
    %18 = arith.extf %17 : vector<16x8xbf16> to vector<16x8xf32>
    %c0_13 = arith.constant 0 : index
    %c0_14 = arith.constant 0 : index
    %19 = vector.load %arg4[%c0_13, %c0_14] : memref<1x8xf32, #tpu.memory_space<vmem>>, vector<1x8xf32>
    %20 = vector.broadcast %19 : vector<1x8xf32> to vector<16x8xf32>
    %21 = arith.mulf %18, %20 : vector<16x8xf32>
    %c0_15 = arith.constant 0 : index
    %c0_16 = arith.constant 0 : index
    %22 = vector.load %arg6[%c0_15, %c0_16] : memref<1x8xf32, #tpu.memory_space<vmem>>, vector<1x8xf32>
    %23 = vector.broadcast %22 : vector<1x8xf32> to vector<16x8xf32>
    %24 = arith.addf %21, %23 : vector<16x8xf32>
    %cst_17 = arith.constant 0.000000e+00 : f32
    %25 = vector.broadcast %cst_17 : f32 to vector<16x8xf32>
    %26 = arith.maximumf %24, %25 : vector<16x8xf32>
    %27 = arith.truncf %26 : vector<16x8xf32> to vector<16x8xbf16>
    %c16 = arith.constant 16 : index
    %c0_18 = arith.constant 0 : index
    %28 = vector.load %arg7[%c16, %c0_18] : memref<24x16xbf16, #tpu.memory_space<vmem>>, vector<8x16xbf16>
    %cst_19 = arith.constant dense<0.000000e+00> : vector<16x16xf32>
    %29 = tpu.matmul %27, %28, %cst_19 {dimension_numbers = #tpu.dot_dimension_numbers<[1], [0], [0], [1], [0, 0, 1, 1], [], []>} : vector<16x8xbf16>, vector<8x16xbf16>, vector<16x16xf32> -> vector<16x16xf32>
    %30 = arith.addf %15, %29 : vector<16x16xf32>
    %c0_20 = arith.constant 0 : index
    %c0_21 = arith.constant 0 : index
    %31 = vector.load %arg8[%c0_20, %c0_21] : memref<1x16xf32, #tpu.memory_space<vmem>>, vector<1x16xf32>
    %32 = vector.broadcast %31 : vector<1x16xf32> to vector<16x16xf32>
    %33 = arith.addf %30, %32 : vector<16x16xf32>
    %cst_22 = arith.constant 0.000000e+00 : f32
    %34 = vector.broadcast %cst_22 : f32 to vector<16x16xf32>
    %35 = arith.maximumf %33, %34 : vector<16x16xf32>
    %cst_23 = arith.constant 0.000000e+00 : f32
    %36 = vector.broadcast %cst_23 : f32 to vector<6x6x16xf32>
    %c0_24 = arith.constant 0 : index
    %c0_25 = arith.constant 0 : index
    %c0_26 = arith.constant 0 : index
    %37 = vector.load %arg11[%c0_24, %c0_25, %c0_26] : memref<6x6x16xf32, #tpu.memory_space<vmem>>, vector<6x6x16xf32>
    tpu.vector_store %arg11[%c0_24, %c0_25, %c0_26], %36 {strides = array<i32>} : memref<6x6x16xf32, #tpu.memory_space<vmem>>, vector<6x6x16xf32>,
    %38 = vector.shape_cast %35 : vector<16x16xf32> to vector<4x4x16xf32>
    %c1 = arith.constant 1 : index
    %c1_27 = arith.constant 1 : index
    %c0_28 = arith.constant 0 : index
    %39 = vector.load %arg11[%c1, %c1_27, %c0_28] : memref<6x6x16xf32, #tpu.memory_space<vmem>>, vector<4x4x16xf32>
    tpu.vector_store %arg11[%c1, %c1_27, %c0_28], %38 {strides = array<i32>} : memref<6x6x16xf32, #tpu.memory_space<vmem>>, vector<4x4x16xf32>,
    %c0_29 = arith.constant 0 : index
    %c0_30 = arith.constant 0 : index
    %c0_31 = arith.constant 0 : index
    %40 = vector.load %arg11[%c0_29, %c0_30, %c0_31] : memref<6x6x16xf32, #tpu.memory_space<vmem>>, vector<6x6x16xf32>
    %cst_32 = arith.constant 0.000000e+00 : f32
    %41 = vector.broadcast %cst_32 : f32 to vector<16x8xf32>
    %42 = vector.extract_strided_slice %40 {offsets = [0, 0, 0], sizes = [4, 4, 16], strides = [1, 1, 1]} : vector<6x6x16xf32> to vector<4x4x16xf32>
    %43 = vector.shape_cast %42 : vector<4x4x16xf32> to vector<16x16xf32>
    %44 = arith.truncf %43 : vector<16x16xf32> to vector<16x16xbf16>
    %c0_33 = arith.constant 0 : index
    %c0_34 = arith.constant 0 : index
    %c0_35 = arith.constant 0 : index
    %45 = vector.load %arg9[%c0_33, %c0_34, %c0_35] : memref<9x16x8xbf16, #tpu.memory_space<vmem>>, vector<1x16x8xbf16>
    %46 = vector.shape_cast %45 : vector<1x16x8xbf16> to vector<16x8xbf16>
    %cst_36 = arith.constant dense<0.000000e+00> : vector<16x8xf32>
    %47 = tpu.matmul %44, %46, %cst_36 {dimension_numbers = #tpu.dot_dimension_numbers<[1], [0], [0], [1], [0, 0, 1, 1], [], []>} : vector<16x16xbf16>, vector<16x8xbf16>, vector<16x8xf32> -> vector<16x8xf32>
    %48 = arith.addf %41, %47 : vector<16x8xf32>
    %49 = vector.extract_strided_slice %40 {offsets = [0, 1, 0], sizes = [4, 4, 16], strides = [1, 1, 1]} : vector<6x6x16xf32> to vector<4x4x16xf32>
    %50 = vector.shape_cast %49 : vector<4x4x16xf32> to vector<16x16xf32>
    %51 = arith.truncf %50 : vector<16x16xf32> to vector<16x16xbf16>
    %c1_37 = arith.constant 1 : index
    %c0_38 = arith.constant 0 : index
    %c0_39 = arith.constant 0 : index
    %52 = vector.load %arg9[%c1_37, %c0_38, %c0_39] : memref<9x16x8xbf16, #tpu.memory_space<vmem>>, vector<1x16x8xbf16>
    %53 = vector.shape_cast %52 : vector<1x16x8xbf16> to vector<16x8xbf16>
    %cst_40 = arith.constant dense<0.000000e+00> : vector<16x8xf32>
    %54 = tpu.matmul %51, %53, %cst_40 {dimension_numbers = #tpu.dot_dimension_numbers<[1], [0], [0], [1], [0, 0, 1, 1], [], []>} : vector<16x16xbf16>, vector<16x8xbf16>, vector<16x8xf32> -> vector<16x8xf32>
    %55 = arith.addf %48, %54 : vector<16x8xf32>
    %56 = vector.extract_strided_slice %40 {offsets = [0, 2, 0], sizes = [4, 4, 16], strides = [1, 1, 1]} : vector<6x6x16xf32> to vector<4x4x16xf32>
    %57 = vector.shape_cast %56 : vector<4x4x16xf32> to vector<16x16xf32>
    %58 = arith.truncf %57 : vector<16x16xf32> to vector<16x16xbf16>
    %c2 = arith.constant 2 : index
    %c0_41 = arith.constant 0 : index
    %c0_42 = arith.constant 0 : index
    %59 = vector.load %arg9[%c2, %c0_41, %c0_42] : memref<9x16x8xbf16, #tpu.memory_space<vmem>>, vector<1x16x8xbf16>
    %60 = vector.shape_cast %59 : vector<1x16x8xbf16> to vector<16x8xbf16>
    %cst_43 = arith.constant dense<0.000000e+00> : vector<16x8xf32>
    %61 = tpu.matmul %58, %60, %cst_43 {dimension_numbers = #tpu.dot_dimension_numbers<[1], [0], [0], [1], [0, 0, 1, 1], [], []>} : vector<16x16xbf16>, vector<16x8xbf16>, vector<16x8xf32> -> vector<16x8xf32>
    %62 = arith.addf %55, %61 : vector<16x8xf32>
    %63 = vector.extract_strided_slice %40 {offsets = [1, 0, 0], sizes = [4, 4, 16], strides = [1, 1, 1]} : vector<6x6x16xf32> to vector<4x4x16xf32>
    %64 = vector.shape_cast %63 : vector<4x4x16xf32> to vector<16x16xf32>
    %65 = arith.truncf %64 : vector<16x16xf32> to vector<16x16xbf16>
    %c3 = arith.constant 3 : index
    %c0_44 = arith.constant 0 : index
    %c0_45 = arith.constant 0 : index
    %66 = vector.load %arg9[%c3, %c0_44, %c0_45] : memref<9x16x8xbf16, #tpu.memory_space<vmem>>, vector<1x16x8xbf16>
    %67 = vector.shape_cast %66 : vector<1x16x8xbf16> to vector<16x8xbf16>
    %cst_46 = arith.constant dense<0.000000e+00> : vector<16x8xf32>
    %68 = tpu.matmul %65, %67, %cst_46 {dimension_numbers = #tpu.dot_dimension_numbers<[1], [0], [0], [1], [0, 0, 1, 1], [], []>} : vector<16x16xbf16>, vector<16x8xbf16>, vector<16x8xf32> -> vector<16x8xf32>
    %69 = arith.addf %62, %68 : vector<16x8xf32>
    %70 = vector.extract_strided_slice %40 {offsets = [1, 1, 0], sizes = [4, 4, 16], strides = [1, 1, 1]} : vector<6x6x16xf32> to vector<4x4x16xf32>
    %71 = vector.shape_cast %70 : vector<4x4x16xf32> to vector<16x16xf32>
    %72 = arith.truncf %71 : vector<16x16xf32> to vector<16x16xbf16>
    %c4 = arith.constant 4 : index
    %c0_47 = arith.constant 0 : index
    %c0_48 = arith.constant 0 : index
    %73 = vector.load %arg9[%c4, %c0_47, %c0_48] : memref<9x16x8xbf16, #tpu.memory_space<vmem>>, vector<1x16x8xbf16>
    %74 = vector.shape_cast %73 : vector<1x16x8xbf16> to vector<16x8xbf16>
    %cst_49 = arith.constant dense<0.000000e+00> : vector<16x8xf32>
    %75 = tpu.matmul %72, %74, %cst_49 {dimension_numbers = #tpu.dot_dimension_numbers<[1], [0], [0], [1], [0, 0, 1, 1], [], []>} : vector<16x16xbf16>, vector<16x8xbf16>, vector<16x8xf32> -> vector<16x8xf32>
    %76 = arith.addf %69, %75 : vector<16x8xf32>
    %77 = vector.extract_strided_slice %40 {offsets = [1, 2, 0], sizes = [4, 4, 16], strides = [1, 1, 1]} : vector<6x6x16xf32> to vector<4x4x16xf32>
    %78 = vector.shape_cast %77 : vector<4x4x16xf32> to vector<16x16xf32>
    %79 = arith.truncf %78 : vector<16x16xf32> to vector<16x16xbf16>
    %c5 = arith.constant 5 : index
    %c0_50 = arith.constant 0 : index
    %c0_51 = arith.constant 0 : index
    %80 = vector.load %arg9[%c5, %c0_50, %c0_51] : memref<9x16x8xbf16, #tpu.memory_space<vmem>>, vector<1x16x8xbf16>
    %81 = vector.shape_cast %80 : vector<1x16x8xbf16> to vector<16x8xbf16>
    %cst_52 = arith.constant dense<0.000000e+00> : vector<16x8xf32>
    %82 = tpu.matmul %79, %81, %cst_52 {dimension_numbers = #tpu.dot_dimension_numbers<[1], [0], [0], [1], [0, 0, 1, 1], [], []>} : vector<16x16xbf16>, vector<16x8xbf16>, vector<16x8xf32> -> vector<16x8xf32>
    %83 = arith.addf %76, %82 : vector<16x8xf32>
    %84 = vector.extract_strided_slice %40 {offsets = [2, 0, 0], sizes = [4, 4, 16], strides = [1, 1, 1]} : vector<6x6x16xf32> to vector<4x4x16xf32>
    %85 = vector.shape_cast %84 : vector<4x4x16xf32> to vector<16x16xf32>
    %86 = arith.truncf %85 : vector<16x16xf32> to vector<16x16xbf16>
    %c6 = arith.constant 6 : index
    %c0_53 = arith.constant 0 : index
    %c0_54 = arith.constant 0 : index
    %87 = vector.load %arg9[%c6, %c0_53, %c0_54] : memref<9x16x8xbf16, #tpu.memory_space<vmem>>, vector<1x16x8xbf16>
    %88 = vector.shape_cast %87 : vector<1x16x8xbf16> to vector<16x8xbf16>
    %cst_55 = arith.constant dense<0.000000e+00> : vector<16x8xf32>
    %89 = tpu.matmul %86, %88, %cst_55 {dimension_numbers = #tpu.dot_dimension_numbers<[1], [0], [0], [1], [0, 0, 1, 1], [], []>} : vector<16x16xbf16>, vector<16x8xbf16>, vector<16x8xf32> -> vector<16x8xf32>
    %90 = arith.addf %83, %89 : vector<16x8xf32>
    %91 = vector.extract_strided_slice %40 {offsets = [2, 1, 0], sizes = [4, 4, 16], strides = [1, 1, 1]} : vector<6x6x16xf32> to vector<4x4x16xf32>
    %92 = vector.shape_cast %91 : vector<4x4x16xf32> to vector<16x16xf32>
    %93 = arith.truncf %92 : vector<16x16xf32> to vector<16x16xbf16>
    %c7 = arith.constant 7 : index
    %c0_56 = arith.constant 0 : index
    %c0_57 = arith.constant 0 : index
    %94 = vector.load %arg9[%c7, %c0_56, %c0_57] : memref<9x16x8xbf16, #tpu.memory_space<vmem>>, vector<1x16x8xbf16>
    %95 = vector.shape_cast %94 : vector<1x16x8xbf16> to vector<16x8xbf16>
    %cst_58 = arith.constant dense<0.000000e+00> : vector<16x8xf32>
    %96 = tpu.matmul %93, %95, %cst_58 {dimension_numbers = #tpu.dot_dimension_numbers<[1], [0], [0], [1], [0, 0, 1, 1], [], []>} : vector<16x16xbf16>, vector<16x8xbf16>, vector<16x8xf32> -> vector<16x8xf32>
    %97 = arith.addf %90, %96 : vector<16x8xf32>
    %98 = vector.extract_strided_slice %40 {offsets = [2, 2, 0], sizes = [4, 4, 16], strides = [1, 1, 1]} : vector<6x6x16xf32> to vector<4x4x16xf32>
    %99 = vector.shape_cast %98 : vector<4x4x16xf32> to vector<16x16xf32>
    %100 = arith.truncf %99 : vector<16x16xf32> to vector<16x16xbf16>
    %c8 = arith.constant 8 : index
    %c0_59 = arith.constant 0 : index
    %c0_60 = arith.constant 0 : index
    %101 = vector.load %arg9[%c8, %c0_59, %c0_60] : memref<9x16x8xbf16, #tpu.memory_space<vmem>>, vector<1x16x8xbf16>
    %102 = vector.shape_cast %101 : vector<1x16x8xbf16> to vector<16x8xbf16>
    %cst_61 = arith.constant dense<0.000000e+00> : vector<16x8xf32>
    %103 = tpu.matmul %100, %102, %cst_61 {dimension_numbers = #tpu.dot_dimension_numbers<[1], [0], [0], [1], [0, 0, 1, 1], [], []>} : vector<16x16xbf16>, vector<16x8xbf16>, vector<16x8xf32> -> vector<16x8xf32>
    %104 = arith.addf %97, %103 : vector<16x8xf32>
    %105 = arith.truncf %104 : vector<16x8xf32> to vector<16x8xbf16>
    %c0_62 = arith.constant 0 : index
    %c0_63 = arith.constant 0 : index
    %c0_64 = arith.constant 0 : index
    %106 = vector.load %arg10[%c0_62, %c0_63, %c0_64] : memref<1x16x8xbf16, #tpu.memory_space<vmem>>, vector<1x16x8xbf16>
    %107 = vector.shape_cast %106 : vector<1x16x8xbf16> to vector<16x8xbf16>
    %108 = vector.shape_cast %105 : vector<16x8xbf16> to vector<1x16x8xbf16>
    tpu.vector_store %arg10[%c0_62, %c0_63, %c0_64], %108 {strides = array<i32>} : memref<1x16x8xbf16, #tpu.memory_space<vmem>>, vector<1x16x8xbf16>,
    return
  }
  func.func @transform_0(%arg0: i32) -> (i32, i32, i32) {
    %c0_i32 = arith.constant 0 : i32
    %c0_i32_0 = arith.constant 0 : i32
    %c0_i32_1 = arith.constant 0 : i32
    return %arg0, %c0_i32, %c0_i32_0 : i32, i32, i32
  }
  func.func @transform_1(%arg0: i32) -> (i32, i32, i32) {
    %c0_i32 = arith.constant 0 : i32
    %c0_i32_0 = arith.constant 0 : i32
    %c0_i32_1 = arith.constant 0 : i32
    return %arg0, %c0_i32, %c0_i32_0 : i32, i32, i32
  }
  func.func @transform_2(%arg0: i32) -> (i32, i32) {
    %c0_i32 = arith.constant 0 : i32
    %c0_i32_0 = arith.constant 0 : i32
    %c0_i32_1 = arith.constant 0 : i32
    return %c0_i32, %c0_i32_0 : i32, i32
  }
  func.func @transform_3(%arg0: i32) -> (i32, i32) {
    %c0_i32 = arith.constant 0 : i32
    %c0_i32_0 = arith.constant 0 : i32
    %c0_i32_1 = arith.constant 0 : i32
    return %c0_i32, %c0_i32_0 : i32, i32
  }
  func.func @transform_4(%arg0: i32) -> (i32, i32) {
    %c0_i32 = arith.constant 0 : i32
    %c0_i32_0 = arith.constant 0 : i32
    %c0_i32_1 = arith.constant 0 : i32
    return %c0_i32, %c0_i32_0 : i32, i32
  }
  func.func @transform_5(%arg0: i32) -> (i32, i32) {
    %c0_i32 = arith.constant 0 : i32
    %c0_i32_0 = arith.constant 0 : i32
    %c0_i32_1 = arith.constant 0 : i32
    return %c0_i32, %c0_i32_0 : i32, i32
  }
  func.func @transform_6(%arg0: i32) -> (i32, i32) {
    %c0_i32 = arith.constant 0 : i32
    %c0_i32_0 = arith.constant 0 : i32
    %c0_i32_1 = arith.constant 0 : i32
    return %c0_i32, %c0_i32_0 : i32, i32
  }
  func.func @transform_7(%arg0: i32) -> (i32, i32) {
    %c0_i32 = arith.constant 0 : i32
    %c0_i32_0 = arith.constant 0 : i32
    %c0_i32_1 = arith.constant 0 : i32
    return %c0_i32, %c0_i32_0 : i32, i32
  }
  func.func @transform_8(%arg0: i32) -> (i32, i32, i32) {
    %c0_i32 = arith.constant 0 : i32
    %c0_i32_0 = arith.constant 0 : i32
    %c0_i32_1 = arith.constant 0 : i32
    %c0_i32_2 = arith.constant 0 : i32
    return %c0_i32, %c0_i32_0, %c0_i32_1 : i32, i32, i32
  }
  func.func @transform_9(%arg0: i32) -> (i32, i32, i32) {
    %c0_i32 = arith.constant 0 : i32
    %c0_i32_0 = arith.constant 0 : i32
    %c0_i32_1 = arith.constant 0 : i32
    return %arg0, %c0_i32, %c0_i32_0 : i32, i32, i32
  }
}

module attributes {stable_mosaic.version = 11 : i64} {
  func.func @kernel(%arg0: i32, %arg1: memref<1x16x16xbf16, #tpu.memory_space<vmem>>, %arg2: memref<1x16x8xbf16, #tpu.memory_space<vmem>>, %arg3: memref<1x16x8xbf16, #tpu.memory_space<vmem>>, %arg4: memref<1x16xf32, #tpu.memory_space<vmem>>, %arg5: memref<1x8xf32, #tpu.memory_space<vmem>>, %arg6: memref<1x8xf32, #tpu.memory_space<vmem>>, %arg7: memref<1x16xf32, #tpu.memory_space<vmem>>, %arg8: memref<1x8xf32, #tpu.memory_space<vmem>>, %arg9: memref<1x8xf32, #tpu.memory_space<vmem>>, %arg10: memref<32x10xf32, #tpu.memory_space<vmem>>, %arg11: memref<1x10xf32, #tpu.memory_space<vmem>>, %arg12: memref<1x1x10xf32, #tpu.memory_space<vmem>>) attributes {dimension_semantics = [#tpu.dimension_semantics<parallel>], iteration_bounds = array<i64: 2>, scalar_prefetch = 0 : i64, scratch_operands = 0 : i64, tpu.core_type = #tpu.core_type<tc>, window_params = [{transform_indices = @transform_0, window_bounds = array<i64: 1, 16, 16>}, {transform_indices = @transform_1, window_bounds = array<i64: 1, 16, 8>}, {transform_indices = @transform_2, window_bounds = array<i64: 1, 16, 8>}, {pipeline_mode = #tpu.pipeline_mode<synchronous>, transform_indices = @transform_3, window_bounds = array<i64: 1, 16>}, {pipeline_mode = #tpu.pipeline_mode<synchronous>, transform_indices = @transform_4, window_bounds = array<i64: 1, 8>}, {pipeline_mode = #tpu.pipeline_mode<synchronous>, transform_indices = @transform_5, window_bounds = array<i64: 1, 8>}, {pipeline_mode = #tpu.pipeline_mode<synchronous>, transform_indices = @transform_6, window_bounds = array<i64: 1, 16>}, {pipeline_mode = #tpu.pipeline_mode<synchronous>, transform_indices = @transform_7, window_bounds = array<i64: 1, 8>}, {pipeline_mode = #tpu.pipeline_mode<synchronous>, transform_indices = @transform_8, window_bounds = array<i64: 1, 8>}, {pipeline_mode = #tpu.pipeline_mode<synchronous>, transform_indices = @transform_9, window_bounds = array<i64: 32, 10>}, {pipeline_mode = #tpu.pipeline_mode<synchronous>, transform_indices = @transform_10, window_bounds = array<i64: 1, 10>}, {transform_indices = @transform_11, window_bounds = array<i64: 1, 1, 10>}]} {
    %cst = arith.constant 0.000000e+00 : f32
    %0 = vector.broadcast %cst : f32 to vector<1x10xf32>
    %c0 = arith.constant 0 : index
    %c0_0 = arith.constant 0 : index
    %c0_1 = arith.constant 0 : index
    %1 = vector.load %arg1[%c0, %c0_0, %c0_1] : memref<1x16x16xbf16, #tpu.memory_space<vmem>>, vector<1x16x16xbf16>
    %2 = vector.shape_cast %1 : vector<1x16x16xbf16> to vector<16x16xbf16>
    %3 = arith.extf %2 : vector<16x16xbf16> to vector<16x16xf32>
    %c0_2 = arith.constant 0 : index
    %c0_3 = arith.constant 0 : index
    %4 = vector.load %arg4[%c0_2, %c0_3] : memref<1x16xf32, #tpu.memory_space<vmem>>, vector<1x16xf32>
    %5 = vector.broadcast %4 : vector<1x16xf32> to vector<16x16xf32>
    %6 = arith.mulf %3, %5 : vector<16x16xf32>
    %c0_4 = arith.constant 0 : index
    %c0_5 = arith.constant 0 : index
    %7 = vector.load %arg7[%c0_4, %c0_5] : memref<1x16xf32, #tpu.memory_space<vmem>>, vector<1x16xf32>
    %8 = vector.broadcast %7 : vector<1x16xf32> to vector<16x16xf32>
    %9 = arith.addf %6, %8 : vector<16x16xf32>
    %cst_6 = arith.constant 0.000000e+00 : f32
    %10 = vector.broadcast %cst_6 : f32 to vector<16x16xf32>
    %11 = arith.maximumf %9, %10 : vector<16x16xf32>
    %cst_7 = arith.constant dense<0.000000e+00> : vector<16xf32>
    %12 = vector.multi_reduction <add>, %11, %cst_7 [0] : vector<16x16xf32> to vector<16xf32>
    %13 = vector.shape_cast %12 : vector<16xf32> to vector<1x16xf32>
    %cst_8 = arith.constant 1.600000e+01 : f32
    %14 = vector.broadcast %cst_8 : f32 to vector<1x16xf32>
    %15 = arith.divf %13, %14 : vector<1x16xf32>
    %c0_9 = arith.constant 0 : index
    %c0_10 = arith.constant 0 : index
    %16 = vector.load %arg10[%c0_9, %c0_10] : memref<32x10xf32, #tpu.memory_space<vmem>>, vector<16x10xf32>
    %cst_11 = arith.constant dense<0.000000e+00> : vector<1x10xf32>
    %17 = tpu.matmul %15, %16, %cst_11 {dimension_numbers = #tpu.dot_dimension_numbers<[1], [0], [0], [1], [0, 0, 1, 1], [], []>} : vector<1x16xf32>, vector<16x10xf32>, vector<1x10xf32> -> vector<1x10xf32>
    %18 = arith.addf %0, %17 : vector<1x10xf32>
    %c0_12 = arith.constant 0 : index
    %c0_13 = arith.constant 0 : index
    %c0_14 = arith.constant 0 : index
    %19 = vector.load %arg2[%c0_12, %c0_13, %c0_14] : memref<1x16x8xbf16, #tpu.memory_space<vmem>>, vector<1x16x8xbf16>
    %20 = vector.shape_cast %19 : vector<1x16x8xbf16> to vector<16x8xbf16>
    %21 = arith.extf %20 : vector<16x8xbf16> to vector<16x8xf32>
    %c0_15 = arith.constant 0 : index
    %c0_16 = arith.constant 0 : index
    %22 = vector.load %arg5[%c0_15, %c0_16] : memref<1x8xf32, #tpu.memory_space<vmem>>, vector<1x8xf32>
    %23 = vector.broadcast %22 : vector<1x8xf32> to vector<16x8xf32>
    %24 = arith.mulf %21, %23 : vector<16x8xf32>
    %c0_17 = arith.constant 0 : index
    %c0_18 = arith.constant 0 : index
    %25 = vector.load %arg8[%c0_17, %c0_18] : memref<1x8xf32, #tpu.memory_space<vmem>>, vector<1x8xf32>
    %26 = vector.broadcast %25 : vector<1x8xf32> to vector<16x8xf32>
    %27 = arith.addf %24, %26 : vector<16x8xf32>
    %cst_19 = arith.constant 0.000000e+00 : f32
    %28 = vector.broadcast %cst_19 : f32 to vector<16x8xf32>
    %29 = arith.maximumf %27, %28 : vector<16x8xf32>
    %cst_20 = arith.constant dense<0.000000e+00> : vector<8xf32>
    %30 = vector.multi_reduction <add>, %29, %cst_20 [0] : vector<16x8xf32> to vector<8xf32>
    %31 = vector.shape_cast %30 : vector<8xf32> to vector<1x8xf32>
    %cst_21 = arith.constant 1.600000e+01 : f32
    %32 = vector.broadcast %cst_21 : f32 to vector<1x8xf32>
    %33 = arith.divf %31, %32 : vector<1x8xf32>
    %c16 = arith.constant 16 : index
    %c0_22 = arith.constant 0 : index
    %34 = vector.load %arg10[%c16, %c0_22] : memref<32x10xf32, #tpu.memory_space<vmem>>, vector<8x10xf32>
    %cst_23 = arith.constant dense<0.000000e+00> : vector<1x10xf32>
    %35 = tpu.matmul %33, %34, %cst_23 {dimension_numbers = #tpu.dot_dimension_numbers<[1], [0], [0], [1], [0, 0, 1, 1], [], []>} : vector<1x8xf32>, vector<8x10xf32>, vector<1x10xf32> -> vector<1x10xf32>
    %36 = arith.addf %18, %35 : vector<1x10xf32>
    %c0_24 = arith.constant 0 : index
    %c0_25 = arith.constant 0 : index
    %c0_26 = arith.constant 0 : index
    %37 = vector.load %arg3[%c0_24, %c0_25, %c0_26] : memref<1x16x8xbf16, #tpu.memory_space<vmem>>, vector<1x16x8xbf16>
    %38 = vector.shape_cast %37 : vector<1x16x8xbf16> to vector<16x8xbf16>
    %39 = arith.extf %38 : vector<16x8xbf16> to vector<16x8xf32>
    %c0_27 = arith.constant 0 : index
    %c0_28 = arith.constant 0 : index
    %40 = vector.load %arg6[%c0_27, %c0_28] : memref<1x8xf32, #tpu.memory_space<vmem>>, vector<1x8xf32>
    %41 = vector.broadcast %40 : vector<1x8xf32> to vector<16x8xf32>
    %42 = arith.mulf %39, %41 : vector<16x8xf32>
    %c0_29 = arith.constant 0 : index
    %c0_30 = arith.constant 0 : index
    %43 = vector.load %arg9[%c0_29, %c0_30] : memref<1x8xf32, #tpu.memory_space<vmem>>, vector<1x8xf32>
    %44 = vector.broadcast %43 : vector<1x8xf32> to vector<16x8xf32>
    %45 = arith.addf %42, %44 : vector<16x8xf32>
    %cst_31 = arith.constant 0.000000e+00 : f32
    %46 = vector.broadcast %cst_31 : f32 to vector<16x8xf32>
    %47 = arith.maximumf %45, %46 : vector<16x8xf32>
    %cst_32 = arith.constant dense<0.000000e+00> : vector<8xf32>
    %48 = vector.multi_reduction <add>, %47, %cst_32 [0] : vector<16x8xf32> to vector<8xf32>
    %49 = vector.shape_cast %48 : vector<8xf32> to vector<1x8xf32>
    %cst_33 = arith.constant 1.600000e+01 : f32
    %50 = vector.broadcast %cst_33 : f32 to vector<1x8xf32>
    %51 = arith.divf %49, %50 : vector<1x8xf32>
    %c24 = arith.constant 24 : index
    %c0_34 = arith.constant 0 : index
    %52 = vector.load %arg10[%c24, %c0_34] : memref<32x10xf32, #tpu.memory_space<vmem>>, vector<8x10xf32>
    %cst_35 = arith.constant dense<0.000000e+00> : vector<1x10xf32>
    %53 = tpu.matmul %51, %52, %cst_35 {dimension_numbers = #tpu.dot_dimension_numbers<[1], [0], [0], [1], [0, 0, 1, 1], [], []>} : vector<1x8xf32>, vector<8x10xf32>, vector<1x10xf32> -> vector<1x10xf32>
    %54 = arith.addf %36, %53 : vector<1x10xf32>
    %c0_36 = arith.constant 0 : index
    %c0_37 = arith.constant 0 : index
    %55 = vector.load %arg11[%c0_36, %c0_37] : memref<1x10xf32, #tpu.memory_space<vmem>>, vector<1x10xf32>
    %56 = arith.addf %54, %55 : vector<1x10xf32>
    %c0_38 = arith.constant 0 : index
    %c0_39 = arith.constant 0 : index
    %c0_40 = arith.constant 0 : index
    %57 = vector.load %arg12[%c0_38, %c0_39, %c0_40] : memref<1x1x10xf32, #tpu.memory_space<vmem>>, vector<1x1x10xf32>
    %58 = vector.shape_cast %57 : vector<1x1x10xf32> to vector<1x10xf32>
    %59 = vector.shape_cast %56 : vector<1x10xf32> to vector<1x1x10xf32>
    tpu.vector_store %arg12[%c0_38, %c0_39, %c0_40], %59 {strides = array<i32>} : memref<1x1x10xf32, #tpu.memory_space<vmem>>, vector<1x1x10xf32>,
    return
  }
  func.func @transform_0(%arg0: i32) -> (i32, i32, i32) {
    %c0_i32 = arith.constant 0 : i32
    %c0_i32_0 = arith.constant 0 : i32
    %c0_i32_1 = arith.constant 0 : i32
    return %arg0, %c0_i32, %c0_i32_0 : i32, i32, i32
  }
  func.func @transform_1(%arg0: i32) -> (i32, i32, i32) {
    %c0_i32 = arith.constant 0 : i32
    %c0_i32_0 = arith.constant 0 : i32
    %c0_i32_1 = arith.constant 0 : i32
    return %arg0, %c0_i32, %c0_i32_0 : i32, i32, i32
  }
  func.func @transform_2(%arg0: i32) -> (i32, i32, i32) {
    %c0_i32 = arith.constant 0 : i32
    %c0_i32_0 = arith.constant 0 : i32
    %c0_i32_1 = arith.constant 0 : i32
    return %arg0, %c0_i32, %c0_i32_0 : i32, i32, i32
  }
  func.func @transform_3(%arg0: i32) -> (i32, i32) {
    %c0_i32 = arith.constant 0 : i32
    %c0_i32_0 = arith.constant 0 : i32
    %c0_i32_1 = arith.constant 0 : i32
    return %c0_i32, %c0_i32_0 : i32, i32
  }
  func.func @transform_4(%arg0: i32) -> (i32, i32) {
    %c0_i32 = arith.constant 0 : i32
    %c0_i32_0 = arith.constant 0 : i32
    %c0_i32_1 = arith.constant 0 : i32
    return %c0_i32, %c0_i32_0 : i32, i32
  }
  func.func @transform_5(%arg0: i32) -> (i32, i32) {
    %c0_i32 = arith.constant 0 : i32
    %c0_i32_0 = arith.constant 0 : i32
    %c0_i32_1 = arith.constant 0 : i32
    return %c0_i32, %c0_i32_0 : i32, i32
  }
  func.func @transform_6(%arg0: i32) -> (i32, i32) {
    %c0_i32 = arith.constant 0 : i32
    %c0_i32_0 = arith.constant 0 : i32
    %c0_i32_1 = arith.constant 0 : i32
    return %c0_i32, %c0_i32_0 : i32, i32
  }
  func.func @transform_7(%arg0: i32) -> (i32, i32) {
    %c0_i32 = arith.constant 0 : i32
    %c0_i32_0 = arith.constant 0 : i32
    %c0_i32_1 = arith.constant 0 : i32
    return %c0_i32, %c0_i32_0 : i32, i32
  }
  func.func @transform_8(%arg0: i32) -> (i32, i32) {
    %c0_i32 = arith.constant 0 : i32
    %c0_i32_0 = arith.constant 0 : i32
    %c0_i32_1 = arith.constant 0 : i32
    return %c0_i32, %c0_i32_0 : i32, i32
  }
  func.func @transform_9(%arg0: i32) -> (i32, i32) {
    %c0_i32 = arith.constant 0 : i32
    %c0_i32_0 = arith.constant 0 : i32
    %c0_i32_1 = arith.constant 0 : i32
    return %c0_i32, %c0_i32_0 : i32, i32
  }
  func.func @transform_10(%arg0: i32) -> (i32, i32) {
    %c0_i32 = arith.constant 0 : i32
    %c0_i32_0 = arith.constant 0 : i32
    %c0_i32_1 = arith.constant 0 : i32
    return %c0_i32, %c0_i32_0 : i32, i32
  }
  func.func @transform_11(%arg0: i32) -> (i32, i32, i32) {
    %c0_i32 = arith.constant 0 : i32
    %c0_i32_0 = arith.constant 0 : i32
    %c0_i32_1 = arith.constant 0 : i32
    return %arg0, %c0_i32, %c0_i32_0 : i32, i32, i32
  }
}

</mosaic_0001>

<bundles_post_ra>
// kernel: densenet_forward.7
= control target key start
LH: loop header
LB: loop body
LE: loop exit
PB: predicated region body
PF: predicated region fallthrough
CT: control target
= control target key end

     0   :  { %s805_s12 = smov 0   ;;  %s937_s0 = inlined_call_operand.vmem [shape: bf16[512,147], index: 0, kind: input, shape index: {}]   ;;  %s938_s1 = inlined_call_operand.vmem [shape: bf16[147,16], index: 1, kind: input, shape index: {}]   ;;  %s939_s2 = inlined_call_operand.vmem [shape: f32[1,16], index: 2, kind: input, shape index: {}]   ;;  %s940_s3 = inlined_call_operand.vmem [shape: bf16[512,16], index: 3, kind: output, shape index: {}]  }
   0x1 LB: > { %s631_s13 = sadd.s32 4294967295, %s781_s12   ;;  %p635_p0 = scmp.ge.s32.totalorder %s781_s12, 1  ;;  %s781_s12 = sphi %s805_s12, %s13_s12  }
   0x2   : > { %p139_p1 = scmp.lt.s32.totalorder %s781_s12, 5 }
   0x4   : > { %p140_p2 = pnand %p635_p0, %p139_p1 }
   0x5   : > { %v741_v0 = vld [vmem:[%s938_s1] sm:$0xff] (!%p140_p2)   ;;  %v783_v1 = vmov (!%p140_p2), 0   ;;  %v742_v2 = vld [vmem:[%s938_s1 + $0x8] sm:$0xff] (!%p140_p2)   ;;  %v743_v3 = vld [vmem:[%s938_s1 + $0x10] sm:$0xff] (!%p140_p2)   ;;  %s636_s20 = sshll.u32 (!%p140_p2), %s631_s13, 4  ;;  %vm349_vm0 = vcmask (!%p140_p2), 154624  }
   0x6   : > { %143 = sbr.rel (%p140_p2) target bundleno = 291 (0x123), region = 32  ;;  %381 = vmatprep.subr.bf16.mxu0 (!%p140_p2), %v783_v1  ;;  %711 = vmatprep.subr.bf16.mxu1 (!%p140_p2), %v783_v1  ;;  %p165_p3 = scmp.lt.s32.totalorder (!%p140_p2), %s636_s20, 63  ;;  %v744_v4 = vld [vmem:[%s938_s1 + $0x18] sm:$0xff] (!%p140_p2)   ;;  %v745_v5 = vld [vmem:[%s938_s1 + $0x20] sm:$0xff] (!%p140_p2)   ;;  %v746_v8 = vld [vmem:[%s938_s1 + $0x28] sm:$0xff] (!%p140_p2)   ;;  %vm374_vm1 = vcmask (!%p140_p2), 1040384  }
   0x7   : > { %382 = vmatpush1.bf16.msra.mxu0 (!%p140_p2), %v741_v0  ;;  %721 = vmatpush1.bf16.msra.mxu1 (!%p140_p2), %v741_v0  ;;  %v747_v9 = vld [vmem:[%s938_s1 + $0x30] sm:$0xff] (!%p140_p2)   ;;  %v748_v10 = vld [vmem:[%s938_s1 + $0x38] sm:$0xff] (!%p140_p2)   ;;  %vm375_vm2 = vcmask (!%p140_p2), 1041408   ;;  %v784_v11 = vmov (!%p140_p2), 65535   ;;  %v749_v13 = vld [vmem:[%s938_s1 + $0x40] sm:$0xff] (!%p140_p2)   ;;  %vm558_vm3 = vcmask (!%p140_p2), 125952  }
   0x8   : > { %383 = vmatprep.subr.bf16.mxu0 (!%p140_p2), %v783_v1  ;;  %712 = vmatprep.subr.bf16.mxu1 (!%p140_p2), %v783_v1  ;;  %v376_v12 = vsel (!%p140_p2), %vm374_vm1, 4294967295, %v784_v11  ;;  %v750_v14 = vld [vmem:[%s938_s1 + $0x48] ss:$0 sps:$4 sm:$0x33] (!%p140_p2)   ;;  %v878_v31 = vld [vmem:[%s939_s2] ss:$0 sm:$0xff] (!%p140_p2) }
   0x9   : > { %v377_v15 = vsel (!%p140_p2), %vm375_vm2, %v376_v12, 0 }
   0xa   : > { %v379_v16 = vand.u32 (!%p140_p2), %v750_v14, %v377_v15 }
   0xb   : > { %384 = vmatpush1.bf16.msra.mxu0 (!%p140_p2), %v742_v2  ;;  %722 = vmatpush1.bf16.msra.mxu1 (!%p140_p2), %v742_v2 }
   0xc   : > { %385 = vmatprep.subr.bf16.mxu0 (!%p140_p2), %v783_v1  ;;  %713 = vmatprep.subr.bf16.mxu1 (!%p140_p2), %v783_v1 }
   0xd   : > { %s942_s20 = smov (!%p165_p3, %s636_s20), 63 }
   0xe   : > { %s694_s23 = sshll.u32 %s942_s20, 3  ;;  %s640_s15 = sshll.u32 %s942_s20, 2 }
   0xf   : > { %386 = vmatpush1.bf16.msra.mxu0 %v743_v3  ;;  %723 = vmatpush1.bf16.msra.mxu1 %v743_v3  ;;  %s831_s26 = scalar_lea.vmem %s937_s0, %s694_s23  ;;  %s888_s18 = scalar_lea.vmem %s940_s3, %s640_s15 }
  0x10   : > { %387 = vmatprep.subr.bf16.mxu0 %v783_v1  ;;  %714 = vmatprep.subr.bf16.mxu1 %v783_v1  ;;  %v753_v6 = vld [vmem:[%s831_s26 + $0x4] ss:$8 sps:$4 sm:$0xff]   ;;  %v751_v17 = vld [vmem:[%s831_s26] ss:$8 sps:$4 sm:$0xff]   ;;  %v757_v19 = vld [vmem:[%s831_s26 + $0x14] ss:$8 sps:$4 sm:$0xff]  }
  0x11   : > { %v756_v7 = vld [vmem:[%s831_s26 + $0x44] ss:$8 sps:$4 sm:$0xff]   ;;  %668 = vmatprep.mubr.msk.bf16.mxu0 %vm349_vm0, %v753_v6  ;;  %v754_v18 = vld [vmem:[%s831_s26 + $0x40] ss:$8 sps:$4 sm:$0xff]   ;;  %v759_v20 = vld [vmem:[%s831_s26 + $0x54] ss:$8 sps:$4 sm:$0xff]  }
  0x12   : > { %672 = vmatprep.mubr.msk.bf16.mxu1 %vm349_vm0, %v756_v7  ;;  %v761_v21 = vld [vmem:[%s831_s26 + $0x10] ss:$8 sps:$4 sm:$0xff]   ;;  %v763_v23 = vld [vmem:[%s831_s26 + $0x24] ss:$8 sps:$4 sm:$0xff]   ;;  %v767_v25 = vld [vmem:[%s831_s26 + $0x20] ss:$8 sps:$4 sm:$0xff]  }
  0x13   : > { %388 = vmatpush1.bf16.msra.mxu0 %v744_v4  ;;  %724 = vmatpush1.bf16.msra.mxu1 %v744_v4  ;;  %v762_v22 = vld [vmem:[%s831_s26 + $0x50] ss:$8 sps:$4 sm:$0xff]   ;;  %v765_v24 = vld [vmem:[%s831_s26 + $0x64] ss:$8 sps:$4 sm:$0xff]   ;;  %v768_v26 = vld [vmem:[%s831_s26 + $0x60] ss:$8 sps:$4 sm:$0xff]  }
  0x14   : > { %389 = vmatprep.subr.bf16.mxu0 %v783_v1  ;;  %715 = vmatprep.subr.bf16.mxu1 %v783_v1  ;;  %v769_v27 = vld [vmem:[%s831_s26 + $0x34] ss:$8 sps:$4 sm:$0xff]   ;;  %v773_v29 = vld [vmem:[%s831_s26 + $0x30] ss:$8 sps:$4 sm:$0xff]  }
  0x15   : > { %v771_v28 = vld [vmem:[%s831_s26 + $0x74] ss:$8 sps:$4 sm:$0xff]   ;;  %v774_v30 = vld [vmem:[%s831_s26 + $0x70] ss:$8 sps:$4 sm:$0xff]  }
  0x17   : > { %390 = vmatpush1.bf16.msra.mxu0 %v745_v5  ;;  %725 = vmatpush1.bf16.msra.mxu1 %v745_v5 }
  0x18   : > { %391 = vmatprep.subr.bf16.mxu0 %v783_v1  ;;  %716 = vmatprep.subr.bf16.mxu1 %v783_v1 }
  0x1b   : > { %392 = vmatpush1.bf16.msra.mxu0 %v746_v8  ;;  %726 = vmatpush1.bf16.msra.mxu1 %v746_v8 }
  0x1c   : > { %393 = vmatprep.subr.bf16.mxu0 %v783_v1  ;;  %717 = vmatprep.subr.bf16.mxu1 %v783_v1 }
  0x1f   : > { %394 = vmatpush1.bf16.msra.mxu0 %v747_v9  ;;  %727 = vmatpush1.bf16.msra.mxu1 %v747_v9 }
  0x20   : > { %395 = vmatprep.subr.bf16.mxu0 %v783_v1  ;;  %718 = vmatprep.subr.bf16.mxu1 %v783_v1 }
  0x23   : > { %396 = vmatpush1.bf16.msra.mxu0 %v748_v10  ;;  %728 = vmatpush1.bf16.msra.mxu1 %v748_v10 }
  0x24   : > { %397 = vmatprep.subr.bf16.mxu0 %v783_v1  ;;  %719 = vmatprep.subr.bf16.mxu1 %v783_v1 }
  0x27   : > { %398 = vmatpush1.bf16.msra.mxu0 %v749_v13  ;;  %729 = vmatpush1.bf16.msra.mxu1 %v749_v13 }
  0x28   : > { %399 = vmatprep.subr.bf16.mxu0 %v783_v1  ;;  %720 = vmatprep.subr.bf16.mxu1 %v783_v1 }
  0x2b   : > { %400 = vmatpush1.bf16.msra.mxu0 %v379_v16  ;;  %730 = vmatpush1.bf16.msra.mxu1 %v379_v16 }
  0x2e   : > { %414 = vmatmul.mubr.bf16.vlgmr.msra.gmra.mrb[0].mxu0 %v751_v17  ;;  %446 = vmatmul.mubr.bf16.vlgmr.msra.gmra.mrb[0].mxu1 %v754_v18 }
  0x2f   : > { %669 = vmatprep.mubr.msk.bf16.mxu0 %vm349_vm0, %v757_v19  ;;  %673 = vmatprep.mubr.msk.bf16.mxu1 %vm349_vm0, %v759_v20 }
  0x36   : > { %422 = vmatmul.mubr.bf16.gmra.mrb[4].mxu0 %v761_v21  ;;  %454 = vmatmul.mubr.bf16.gmra.mrb[4].mxu1 %v762_v22 }
  0x37   : > { %670 = vmatprep.mubr.msk.bf16.mxu0 %vm349_vm0, %v763_v23  ;;  %674 = vmatprep.mubr.msk.bf16.mxu1 %vm349_vm0, %v765_v24 }
  0x3e   : > { %430 = vmatmul.mubr.bf16.gmra.mrb[8].mxu0 %v767_v25  ;;  %462 = vmatmul.mubr.bf16.gmra.mrb[8].mxu1 %v768_v26 }
  0x3f   : > { %671 = vmatprep.mubr.msk.bf16.mxu0 %vm349_vm0, %v769_v27  ;;  %675 = vmatprep.mubr.msk.bf16.mxu1 %vm349_vm0, %v771_v28 }
  0x46   : > { %438 = vmatmul.mubr.bf16.gmra.mrb[12].mxu0 %v773_v29  ;;  %470 = vmatmul.mubr.bf16.gmra.mrb[12].mxu1 %v774_v30 }
 0x101   : > { %v415_v32 = vpop.f32.mrb[0].mxu0  ;;  %v447_v33 = vpop.f32.mrb[0].mxu1 }
 0x102   : > { %v416_v34 = vadd.f32 %v878_v31, %v415_v32  ;;  %v448_v35 = vadd.f32 %v878_v31, %v447_v33  ;;  %v417_v36 = vpop.f32.mrb[1].mxu0  ;;  %v449_v37 = vpop.f32.mrb[1].mxu1 }
 0x103   : > { %v418_v38 = vpop.f32.mrb[2].mxu0  ;;  %v450_v39 = vpop.f32.mrb[2].mxu1 }
 0x104   : > { %v478_v40 = vmax.f32 %v416_v34, 0.0  ;;  %v486_v41 = vmax.f32 %v448_v35, 0.0  ;;  %v419_v42 = vadd.f32 %v878_v31, %v418_v38  ;;  %v451_v43 = vadd.f32 %v878_v31, %v450_v39  ;;  %v420_v44 = vpop.f32.mrb[3].mxu0  ;;  %v452_v45 = vpop.f32.mrb[3].mxu1 }
 0x106   : > { %v695_v46 = vpack.c.bf16 %v478_v40, %v478_v40  ;;  %v703_v47 = vpack.c.bf16 %v486_v41, %v486_v41  ;;  %v479_v48 = vmax.f32 %v419_v42, 0.0  ;;  %v487_v49 = vmax.f32 %v451_v43, 0.0 }
 0x108   : > { %559 = vst.msk [vmem:[%s888_s18] sm:$0xf] %vm558_vm3, %v695_v46  ;;  %567 = vst.msk [vmem:[%s888_s18 + $0x20] sm:$0xf] %vm558_vm3, %v703_v47  ;;  %v696_v50 = vpack.c.bf16 %v479_v48, %v479_v48  ;;  %v704_v51 = vpack.c.bf16 %v487_v49, %v487_v49 }
 0x109   : > { %v423_v52 = vpop.f32.mrb[4].mxu0  ;;  %v455_v53 = vpop.f32.mrb[4].mxu1 }
 0x10a   : > { %560 = vst.msk [vmem:[%s888_s18 + $0x4] sm:$0xf] %vm558_vm3, %v696_v50  ;;  %568 = vst.msk [vmem:[%s888_s18 + $0x24] sm:$0xf] %vm558_vm3, %v704_v51  ;;  %v424_v54 = vadd.f32 %v878_v31, %v423_v52  ;;  %v456_v55 = vadd.f32 %v878_v31, %v455_v53  ;;  %v425_v56 = vpop.f32.mrb[5].mxu0  ;;  %v457_v57 = vpop.f32.mrb[5].mxu1 }
 0x10b   : > { %v426_v58 = vpop.f32.mrb[6].mxu0  ;;  %v458_v59 = vpop.f32.mrb[6].mxu1 }
 0x10c   : > { %v480_v60 = vmax.f32 %v424_v54, 0.0  ;;  %v488_v61 = vmax.f32 %v456_v55, 0.0  ;;  %v427_v62 = vadd.f32 %v878_v31, %v426_v58  ;;  %v459_v63 = vadd.f32 %v878_v31, %v458_v59  ;;  %v428_v0 = vpop.f32.mrb[7].mxu0  ;;  %v460_v1 = vpop.f32.mrb[7].mxu1 }
 0x10e   : > { %v697_v2 = vpack.c.bf16 %v480_v60, %v480_v60  ;;  %v705_v3 = vpack.c.bf16 %v488_v61, %v488_v61  ;;  %v481_v4 = vmax.f32 %v427_v62, 0.0  ;;  %v489_v5 = vmax.f32 %v459_v63, 0.0 }
 0x110   : > { %561 = vst.msk [vmem:[%s888_s18 + $0x8] sm:$0xf] %vm558_vm3, %v697_v2  ;;  %569 = vst.msk [vmem:[%s888_s18 + $0x28] sm:$0xf] %vm558_vm3, %v705_v3  ;;  %v698_v6 = vpack.c.bf16 %v481_v4, %v481_v4  ;;  %v706_v7 = vpack.c.bf16 %v489_v5, %v489_v5 }
 0x111   : > { %v431_v8 = vpop.f32.mrb[8].mxu0  ;;  %v463_v9 = vpop.f32.mrb[8].mxu1 }
 0x112   : > { %562 = vst.msk [vmem:[%s888_s18 + $0xc] sm:$0xf] %vm558_vm3, %v698_v6  ;;  %570 = vst.msk [vmem:[%s888_s18 + $0x2c] sm:$0xf] %vm558_vm3, %v706_v7  ;;  %v432_v10 = vadd.f32 %v878_v31, %v431_v8  ;;  %v464_v11 = vadd.f32 %v878_v31, %v463_v9  ;;  %v433_v12 = vpop.f32.mrb[9].mxu0  ;;  %v465_v13 = vpop.f32.mrb[9].mxu1 }
 0x113   : > { %v434_v14 = vpop.f32.mrb[10].mxu0  ;;  %v466_v15 = vpop.f32.mrb[10].mxu1 }
 0x114   : > { %v482_v16 = vmax.f32 %v432_v10, 0.0  ;;  %v490_v17 = vmax.f32 %v464_v11, 0.0  ;;  %v435_v18 = vadd.f32 %v878_v31, %v434_v14  ;;  %v467_v19 = vadd.f32 %v878_v31, %v466_v15  ;;  %v436_v20 = vpop.f32.mrb[11].mxu0  ;;  %v468_v21 = vpop.f32.mrb[11].mxu1 }
 0x116   : > { %v699_v22 = vpack.c.bf16 %v482_v16, %v482_v16  ;;  %v707_v23 = vpack.c.bf16 %v490_v17, %v490_v17  ;;  %v483_v24 = vmax.f32 %v435_v18, 0.0  ;;  %v491_v25 = vmax.f32 %v467_v19, 0.0 }
 0x118   : > { %563 = vst.msk [vmem:[%s888_s18 + $0x10] sm:$0xf] %vm558_vm3, %v699_v22  ;;  %571 = vst.msk [vmem:[%s888_s18 + $0x30] sm:$0xf] %vm558_vm3, %v707_v23  ;;  %v700_v26 = vpack.c.bf16 %v483_v24, %v483_v24  ;;  %v708_v27 = vpack.c.bf16 %v491_v25, %v491_v25 }
 0x119   : > { %v439_v28 = vpop.f32.mrb[12].mxu0  ;;  %v471_v29 = vpop.f32.mrb[12].mxu1 }
 0x11a   : > { %564 = vst.msk [vmem:[%s888_s18 + $0x14] sm:$0xf] %vm558_vm3, %v700_v26  ;;  %572 = vst.msk [vmem:[%s888_s18 + $0x34] sm:$0xf] %vm558_vm3, %v708_v27  ;;  %v440_v30 = vadd.f32 %v878_v31, %v439_v28  ;;  %v472_v32 = vadd.f32 %v878_v31, %v471_v29  ;;  %v441_v33 = vpop.f32.mrb[13].mxu0  ;;  %v473_v34 = vpop.f32.mrb[13].mxu1 }
 0x11b   : > { %v442_v35 = vpop.f32.mrb[14].mxu0  ;;  %v474_v36 = vpop.f32.mrb[14].mxu1 }
 0x11c   : > { %v484_v37 = vmax.f32 %v440_v30, 0.0  ;;  %v492_v38 = vmax.f32 %v472_v32, 0.0  ;;  %v443_v39 = vadd.f32 %v878_v31, %v442_v35  ;;  %v475_v40 = vadd.f32 %v878_v31, %v474_v36  ;;  %v444_v41 = vpop.f32.mrb[15].mxu0  ;;  %v476_v42 = vpop.f32.mrb[15].mxu1 }
 0x11e   : > { %v701_v43 = vpack.c.bf16 %v484_v37, %v484_v37  ;;  %v709_v44 = vpack.c.bf16 %v492_v38, %v492_v38  ;;  %v485_v45 = vmax.f32 %v443_v39, 0.0  ;;  %v493_v46 = vmax.f32 %v475_v40, 0.0 }
 0x120   : > { %565 = vst.msk [vmem:[%s888_s18 + $0x18] sm:$0xf] %vm558_vm3, %v701_v43  ;;  %573 = vst.msk [vmem:[%s888_s18 + $0x38] sm:$0xf] %vm558_vm3, %v709_v44  ;;  %v702_v47 = vpack.c.bf16 %v485_v45, %v485_v45  ;;  %v710_v48 = vpack.c.bf16 %v493_v46, %v493_v46 }
 0x122   : > { %566 = vst.msk [vmem:[%s888_s18 + $0x1c] sm:$0xf] %vm558_vm3, %v702_v47  ;;  %574 = vst.msk [vmem:[%s888_s18 + $0x3c] sm:$0xf] %vm558_vm3, %v710_v48 }
 0x123 PF: > { %s13_s12 = sadd.s32 1, %s781_s12  }
 0x124   : > { %p10_p4 = scmp.ge.s32.totalorder %s13_s12, 6  }
 0x126   :  { %12 = sbr.rel (!%p10_p4) target bundleno = 1 (0x1), region = 62 }

// kernel: densenet_forward.8
= control target key start
LH: loop header
LB: loop body
LE: loop exit
PB: predicated region body
PF: predicated region fallthrough
CT: control target
= control target key end

     0   :  { %s1883_s21 = smov 0   ;;  %s2151_s0 = inlined_call_operand.vmem [shape: bf16[2,64,16], index: 0, kind: input, shape index: {}]   ;;  %s2152_s1 = inlined_call_operand.vmem [shape: f32[1,16], index: 1, kind: input, shape index: {}]   ;;  %s2153_s2 = inlined_call_operand.vmem [shape: f32[1,16], index: 2, kind: input, shape index: {}]   ;;  %s2154_s3 = inlined_call_operand.vmem [shape: bf16[16,16], index: 3, kind: input, shape index: {}]   ;;  %s2155_s4 = inlined_call_operand.vmem [shape: f32[1,16], index: 4, kind: input, shape index: {}]   ;;  %s2156_s5 = inlined_call_operand.vmem [shape: bf16[9,16,8], index: 5, kind: input, shape index: {}]   ;;  %s2157_s6 = inlined_call_operand.vmem [shape: bf16[2,64,8], index: 6, kind: output, shape index: {}]  }
   0x1 LB: > { %s1489_s22 = sadd.s32 4294967295, %s1845_s21   ;;  %p1493_p0 = scmp.ge.s32.totalorder %s1845_s21, 1  ;;  %s1845_s21 = sphi %s1883_s21, %s16_s21  }
   0x2   : > { %p212_p1 = scmp.lt.s32.totalorder %s1845_s21, 3 }
   0x4   : > { %p213_p2 = pnand %p1493_p0, %p212_p1 }
   0x5   : > { %v1829_v0 = vld [vmem:[%s2154_s3] sm:$0xff] (!%p213_p2)   ;;  %p242_p3 = scmp.lt.s32.totalorder (!%p213_p2), %s1489_s22, 1  ;;  %vm326_vm0 = vcmask (!%p213_p2), 130048   ;;  %vm413_vm1 = vcmask (!%p213_p2), 123904   ;;  %v1847_v43 = vmov (!%p213_p2), 0.0   ;;  %v1830_v44 = vld [vmem:[%s2156_s5 + $0x8] sm:$0xff] (!%p213_p2)  }
   0x6   : > { %216 = sbr.rel (%p213_p2) target bundleno = 554 (0x22a), region = 44  ;;  %1656 = vmatprep.subr.bf16.mxu0 (!%p213_p2), %v1829_v0  ;;  %v1498_v1 = vld [vmem:[%s2152_s1] ss:$0 sm:$0xff] (!%p213_p2)  ;;  %419 = vst.msk [vmem:[#allocation2 + $0x30] sm:$0xff] (!%p213_p2), %vm326_vm0, %v1847_v43  ;;  %412 = vst.msk [vmem:[#allocation2] sm:$0xff] (!%p213_p2), %vm326_vm0, %v1847_v43  ;;  %v1941_v46 = vld [vmem:[%s2156_s5 + $0x28] sm:$0xff] (!%p213_p2)  }
   0x7   : > { %1657 = vmatpush3.bf16.msra.mxu0 (!%p213_p2), %v1829_v0  ;;  %v1499_v3 = vld [vmem:[%s2153_s2] ss:$0 sm:$0xff] (!%p213_p2)  ;;  %420 = vst.msk [vmem:[#allocation2 + $0x38] sm:$0x3] (!%p213_p2), %vm413_vm1, %v1847_v43  ;;  %414 = vst.msk [vmem:[#allocation2 + $0x8] sm:$0x3] (!%p213_p2), %vm413_vm1, %v1847_v43 }
   0x8   : > { %415 = vst.msk [vmem:[#allocation2 + $0x10] sm:$0xff] (!%p213_p2), %vm326_vm0, %v1847_v43  ;;  %417 = vst.msk [vmem:[#allocation2 + $0x20] sm:$0xff] (!%p213_p2), %vm326_vm0, %v1847_v43  ;;  %v1831_v45 = vld [vmem:[%s2156_s5 + $0x20] sm:$0xff] (!%p213_p2)   ;;  %1666 = vmatprep.subr.bf16.mxu0 (!%p213_p2), %v1830_v44  ;;  %vm484_vm2 = vcmask (!%p213_p2), 1046528   ;;  %vm690_vm3 = vcmask (!%p213_p2), 1045504   ;;  %vm1425_vm4 = vcmask (!%p213_p2), 60416  }
   0x9   : > { %416 = vst.msk [vmem:[#allocation2 + $0x18] sm:$0x3] (!%p213_p2), %vm413_vm1, %v1847_v43  ;;  %418 = vst.msk [vmem:[#allocation2 + $0x28] sm:$0x3] (!%p213_p2), %vm413_vm1, %v1847_v43  ;;  %1706 = vmatprep.subr.bf16.mxu1 (!%p213_p2), %v1831_v45  ;;  %v1947_v47 = vld [vmem:[%s2156_s5] sm:$0xff] (!%p213_p2)  }
   0xa   : > { %421 = vst.msk [vmem:[#allocation2 + $0x40] sm:$0xff] (!%p213_p2), %vm326_vm0, %v1847_v43  ;;  %423 = vst.msk [vmem:[#allocation2 + $0x50] sm:$0xff] (!%p213_p2), %vm326_vm0, %v1847_v43  ;;  %1707 = vmatpush3.bf16.msra.mxu1 (!%p213_p2), %v1831_v45  ;;  %v1500_v48 = vld [vmem:[%s2155_s4] ss:$0 sm:$0xff] (!%p213_p2) }
   0xb   : > { %422 = vst.msk [vmem:[#allocation2 + $0x48] sm:$0x3] (!%p213_p2), %vm413_vm1, %v1847_v43  ;;  %424 = vst.msk [vmem:[#allocation2 + $0x58] sm:$0x3] (!%p213_p2), %vm413_vm1, %v1847_v43  ;;  %1716 = vmatprep.subr.bf16.mxu1 (!%p213_p2), %v1941_v46 }
   0xc   : > { %425 = vst.msk [vmem:[#allocation2 + $0x60] sm:$0xff] (!%p213_p2), %vm326_vm0, %v1847_v43  ;;  %427 = vst.msk [vmem:[#allocation2 + $0x70] sm:$0xff] (!%p213_p2), %vm326_vm0, %v1847_v43 }
   0xd   : > { %s2159_s22 = smov (!%p242_p3, %s1489_s22), 1  ;;  %426 = vst.msk [vmem:[#allocation2 + $0x68] sm:$0x3] %vm413_vm1, %v1847_v43  ;;  %428 = vst.msk [vmem:[#allocation2 + $0x78] sm:$0x3] %vm413_vm1, %v1847_v43  ;;  %v1956_v61 = vld [vmem:[#allocation2] sm:$0xff] }
   0xe   : > { %s1577_s25 = sshll.u32 %s2159_s22, 5  ;;  %429 = vst.msk [vmem:[#allocation2 + $0x80] sm:$0xff] %vm326_vm0, %v1847_v43  ;;  %431 = vst.msk [vmem:[#allocation2 + $0x90] sm:$0xff] %vm326_vm0, %v1847_v43  ;;  %v1958_v62 = vld [vmem:[#allocation2 + $0x8] sm:$0x3] }
   0xf   : > { %s246_s30 = scalar_lea.vmem %s2151_s0, %s1577_s25  ;;  %430 = vst.msk [vmem:[#allocation2 + $0x88] sm:$0x3] %vm413_vm1, %v1847_v43  ;;  %432 = vst.msk [vmem:[#allocation2 + $0x98] sm:$0x3] %vm413_vm1, %v1847_v43  ;;  %s251_s10 = scalar_lea.vmem %s2157_s6, %s1577_s25 }
  0x10   : > { %v1588_v2 = vld [vmem:[%s246_s30] sm:$0xff]   ;;  %v1603_v4 = vld [vmem:[%s246_s30 + $0x8] sm:$0xff]   ;;  %v1604_v5 = vld [vmem:[%s246_s30 + $0x10] sm:$0xff]  }
  0x11   : > { %v1589_v6 = vunpack.c.l.bf16 %v1588_v2  ;;  %v1590_v7 = vunpack.c.h.bf16 %v1588_v2  ;;  %v1593_v8 = vunpack.c.l.bf16 %v1603_v4  ;;  %v1594_v9 = vunpack.c.h.bf16 %v1603_v4  ;;  %v1605_v10 = vld [vmem:[%s246_s30 + $0x18] sm:$0xff]  }
  0x12   : > { %v1597_v11 = vunpack.c.l.bf16 %v1604_v5  ;;  %v1598_v12 = vunpack.c.h.bf16 %v1604_v5  ;;  %v1601_v13 = vunpack.c.l.bf16 %v1605_v10  ;;  %v1602_v14 = vunpack.c.h.bf16 %v1605_v10 }
  0x13   : > { %v276_v15 = vmul.f32 %v1589_v6, %v1498_v1  ;;  %v277_v16 = vmul.f32 %v1590_v7, %v1498_v1  ;;  %v278_v17 = vmul.f32 %v1593_v8, %v1498_v1  ;;  %v279_v18 = vmul.f32 %v1594_v9, %v1498_v1 }
  0x14   : > { %v280_v19 = vmul.f32 %v1597_v11, %v1498_v1  ;;  %v281_v20 = vmul.f32 %v1598_v12, %v1498_v1  ;;  %v282_v21 = vmul.f32 %v1601_v13, %v1498_v1  ;;  %v283_v22 = vmul.f32 %v1602_v14, %v1498_v1 }
  0x15   : > { %v291_v23 = vadd.f32 %v1499_v3, %v276_v15  ;;  %v292_v24 = vadd.f32 %v1499_v3, %v277_v16  ;;  %v293_v25 = vadd.f32 %v1499_v3, %v278_v17  ;;  %v294_v26 = vadd.f32 %v1499_v3, %v279_v18 }
  0x16   : > { %v295_v27 = vadd.f32 %v1499_v3, %v280_v19  ;;  %v296_v28 = vadd.f32 %v1499_v3, %v281_v20  ;;  %v297_v35 = vadd.f32 %v1499_v3, %v282_v21  ;;  %v298_v36 = vadd.f32 %v1499_v3, %v283_v22 }
  0x17   : > { %v299_v29 = vmax.f32 %v291_v23, 0.0  ;;  %v300_v30 = vmax.f32 %v292_v24, 0.0  ;;  %v301_v31 = vmax.f32 %v293_v25, 0.0  ;;  %v302_v32 = vmax.f32 %v294_v26, 0.0 }
  0x18   : > { %v303_v33 = vmax.f32 %v295_v27, 0.0  ;;  %v304_v34 = vmax.f32 %v296_v28, 0.0  ;;  %v305_v40 = vmax.f32 %v297_v35, 0.0  ;;  %v306_v41 = vmax.f32 %v298_v36, 0.0 }
  0x19   : > { %v307_v37 = vpack.c.bf16 %v300_v30, %v299_v29  ;;  %v308_v38 = vpack.c.bf16 %v302_v32, %v301_v31  ;;  %v485_v4 = vrot.slane %v1956_v61, 1  ;;  %v486_v5 = vrot.slane %v1958_v62, 1 }
  0x1a   : > { %v309_v39 = vpack.c.bf16 %v304_v34, %v303_v33  ;;  %v310_v42 = vpack.c.bf16 %v306_v41, %v305_v40  ;;  %v2008_v41 = vld [vmem:[%s2156_s5 + $0x30] sm:$0xff]  }
  0x1b   : > { %1658 = vmatprep.mubr.msk.bf16.mxu0 %vm326_vm0, %v307_v37  ;;  %v487_v19 = vsel %vm484_vm2, %v485_v4, %v486_v5  ;;  %v1999_v37 = vld [vmem:[%s2156_s5 + $0x10] sm:$0xff]  }
  0x1c   : > { %1659 = vmatmul.mubr.msk.bf16.vlgmr.msra.gmra.mrb[0].mxu0 %vm326_vm0, %v308_v38 }
  0x1d   : > { %1662 = vmatprep.mubr.msk.bf16.mxu0 %vm326_vm0, %v309_v39  ;;  %1667 = vmatpush3.bf16.msra.mxu0 %v1830_v44 }
  0x1e   : > { %1676 = vmatprep.subr.bf16.mxu0 %v1947_v47 }
  0x24   : > { %1663 = vmatmul.mubr.msk.bf16.gmra.mrb[4].mxu0 %vm326_vm0, %v310_v42 }
  0xef   : > { %v1660_v49 = vpop.f32.mrb[0].mxu0 }
  0xf0   : > { %v382_v50 = vadd.f32 %v1660_v49, %v1500_v48  ;;  %v373_v51 = vpop.f32.mrb[1].mxu0 }
  0xf1   : > { %v374_v52 = vadd.f32 %v1500_v48, %v373_v51  ;;  %v1661_v53 = vpop.f32.mrb[2].mxu0 }
  0xf2   : > { %v406_v54 = vmax.f32 %v382_v50, 0.0  ;;  %v385_v55 = vadd.f32 %v1661_v53, %v1500_v48  ;;  %v376_v56 = vpop.f32.mrb[3].mxu0 }
  0xf3   : > { %v404_v57 = vmax.f32 %v374_v52, 0.0  ;;  %v377_v58 = vadd.f32 %v1500_v48, %v376_v56 }
  0xf4   : > { %436 = vst.msk [vmem:[#allocation2 + $0x31] sm:$0xff] %vm326_vm0, %v406_v54  ;;  %v407_v59 = vmax.f32 %v385_v55, 0.0 }
  0xf5   : > { %434 = vst.msk [vmem:[#allocation2 + $0x11] sm:$0xff] %vm326_vm0, %v404_v57  ;;  %v405_v60 = vmax.f32 %v377_v58, 0.0 }
  0xf6   : > { %437 = vst.msk [vmem:[#allocation2 + $0x41] sm:$0xff] %vm326_vm0, %v407_v59 }
  0xf7   : > { %435 = vst.msk [vmem:[#allocation2 + $0x21] sm:$0xff] %vm326_vm0, %v405_v60  ;;  %v1664_v63 = vpop.f32.mrb[4].mxu0 }
  0xf8   : > { %v398_v0 = vadd.f32 %v1664_v63, %v1500_v48  ;;  %v389_v1 = vpop.f32.mrb[5].mxu0 }
  0xf9   : > { %v390_v2 = vadd.f32 %v1500_v48, %v389_v1  ;;  %v1665_v3 = vpop.f32.mrb[6].mxu0 }
  0xfa   : > { %v410_v6 = vmax.f32 %v398_v0, 0.0  ;;  %v401_v7 = vadd.f32 %v1665_v3, %v1500_v48  ;;  %v392_v8 = vpop.f32.mrb[7].mxu0 }
  0xfb   : > { %v408_v9 = vmax.f32 %v390_v2, 0.0  ;;  %v393_v10 = vadd.f32 %v1500_v48, %v392_v8  ;;  %v1963_v11 = vld [vmem:[#allocation2 + $0x30] sm:$0xff]  ;;  %v1965_v12 = vld [vmem:[#allocation2 + $0x38] sm:$0x3] }
  0xfc   : > { %440 = vst.msk [vmem:[#allocation2 + $0x71] sm:$0xff] %vm326_vm0, %v410_v6  ;;  %v411_v13 = vmax.f32 %v401_v7, 0.0  ;;  %v1968_v14 = vld [vmem:[#allocation2 + $0x10] sm:$0xff]  ;;  %v1970_v15 = vld [vmem:[#allocation2 + $0x18] sm:$0x3]  ;;  %v494_v16 = vrot.slane %v1963_v11, 1 }
  0xfd   : > { %v495_v17 = vrot.slane %v1965_v12, 1  ;;  %438 = vst.msk [vmem:[#allocation2 + $0x51] sm:$0xff] %vm326_vm0, %v408_v9  ;;  %v409_v18 = vmax.f32 %v393_v10, 0.0  ;;  %v488_v20 = vrot.slane %v1968_v14, 1  ;;  %v489_v21 = vrot.slane %v1970_v15, 1  ;;  %v1978_v22 = vld [vmem:[#allocation2 + $0x40] sm:$0xff] }
  0xfe   : > { %v1980_v23 = vld [vmem:[#allocation2 + $0x48] sm:$0x3]  ;;  %441 = vst.msk [vmem:[#allocation2 + $0x81] sm:$0xff] %vm326_vm0, %v411_v13  ;;  %v1983_v24 = vld [vmem:[#allocation2 + $0x20] sm:$0xff]  ;;  %v497_v26 = vrot.slane %v1978_v22, 1  ;;  %v694_v58 = vrot.slane %v1968_v14, 2  ;;  %v462_v6 = vpack.c.bf16 %v1968_v14, %v1956_v61 }
  0xff   : > { %v447_v25 = vld [vmem:[#allocation2 + $0x28] sm:$0x3]  ;;  %v498_v27 = vrot.slane %v1980_v23, 1  ;;  %439 = vst.msk [vmem:[#allocation2 + $0x61] sm:$0xff] %vm326_vm0, %v409_v18  ;;  %v490_v28 = vsel %vm484_vm2, %v488_v20, %v489_v21  ;;  %v491_v29 = vrot.slane %v1983_v24, 1  ;;  %v496_v34 = vsel %vm484_vm2, %v494_v16, %v495_v17 }
 0x100   : > { %v492_v30 = vrot.slane %v447_v25, 1  ;;  %v517_v31 = vpack.c.bf16 %v490_v28, %v487_v19  ;;  %v697_v45 = vrot.slane %v1983_v24, 2  ;;  %v698_v48 = vrot.slane %v447_v25, 2 }
 0x101   : > { %v499_v32 = vsel %vm484_vm2, %v497_v26, %v498_v27  ;;  %v704_v9 = vrot.slane %v1980_v23, 2  ;;  %v703_v10 = vrot.slane %v1978_v22, 2  ;;  %v700_v17 = vrot.slane %v1963_v11, 2 }
 0x102   : > { %v493_v33 = vsel %vm484_vm2, %v491_v29, %v492_v30  ;;  %1668 = vmatprep.mubr.msk.bf16.mxu0 %vm326_vm0, %v517_v31  ;;  %v926_v38 = vpack.c.bf16 %v499_v32, %v496_v34  ;;  %v699_v3 = vsel %vm690_vm3, %v697_v45, %v698_v48  ;;  %v701_v18 = vrot.slane %v1965_v12, 2  ;;  %v1836_v30 = vld [vmem:[%s2156_s5 + $0x38] sm:$0xff]  }
 0x103   : > { %v1994_v35 = vpack.c.bf16 %v496_v34, %v493_v33  ;;  %v925_v36 = vpack.c.bf16 %v493_v33, %v490_v28  ;;  %v2001_v39 = vld [vmem:[#allocation2 + $0x70] sm:$0xff]  ;;  %v2003_v40 = vld [vmem:[#allocation2 + $0x78] sm:$0x3]  ;;  %v705_v21 = vsel %vm690_vm3, %v703_v10, %v704_v9  ;;  %v463_v26 = vpack.c.bf16 %v1963_v11, %v1983_v24 }
 0x104   : > { %v2013_v42 = vld [vmem:[#allocation2 + $0x50] sm:$0xff]  ;;  %v453_v43 = vld [vmem:[#allocation2 + $0x58] sm:$0x3]  ;;  %v506_v44 = vrot.slane %v2001_v39, 1  ;;  %v507_v51 = vrot.slane %v2003_v40, 1  ;;  %v702_v25 = vsel %vm690_vm3, %v700_v17, %v701_v18  ;;  %v691_v29 = vrot.slane %v1956_v61, 2 }
 0x105   : > { %1669 = vmatmul.mubr.msk.bf16.vlgmr.msra.gmra.mrb[8].mxu0 %vm326_vm0, %v1994_v35  ;;  %1708 = vmatprep.mubr.msk.bf16.mxu1 %vm326_vm0, %v925_v36  ;;  %v500_v49 = vrot.slane %v2013_v42, 1  ;;  %v501_v50 = vrot.slane %v453_v43, 1  ;;  %v2020_v52 = vld [vmem:[#allocation2 + $0x80] sm:$0xff]  ;;  %v2022_v53 = vld [vmem:[#allocation2 + $0x88] sm:$0x3]  ;;  %v706_v19 = vrot.slane %v2013_v42, 2  ;;  %v1028_v27 = vpack.c.bf16 %v705_v21, %v702_v25 }
 0x106   : > { %1709 = vmatmul.mubr.msk.bf16.vlgmr.msra.gmra.mrb[0].mxu1 %vm326_vm0, %v926_v38  ;;  %1677 = vmatpush3.bf16.msra.mxu0 %v1947_v47  ;;  %v2026_v54 = vld [vmem:[#allocation2 + $0x60] sm:$0xff]  ;;  %v455_v55 = vld [vmem:[#allocation2 + $0x68] sm:$0x3]  ;;  %v921_v56 = vrot.slane %v2020_v52, 1  ;;  %v922_v57 = vrot.slane %v2022_v53, 1  ;;  %v695_v47 = vrot.slane %v1970_v15, 2  ;;  %v508_v2 = vsel %vm484_vm2, %v506_v44, %v507_v51 }
 0x107   : > { %1717 = vmatpush3.bf16.msra.mxu1 %v1941_v46  ;;  %1686 = vmatprep.subr.bf16.mxu0 %v1999_v37  ;;  %v502_v59 = vsel %vm484_vm2, %v500_v49, %v501_v50  ;;  %v503_v60 = vrot.slane %v2026_v54, 1  ;;  %v504_v63 = vrot.slane %v455_v55, 1  ;;  %v709_v15 = vrot.slane %v2026_v54, 2  ;;  %v1837_v36 = vld [vmem:[%s2156_s5 + $0x18] sm:$0xff]   ;;  %v1838_v49 = vld [vmem:[%s2156_s5 + $0x40] sm:$0xff]   ;;  %v460_v50 = vld [vmem:[#allocation2 + $0x90] sm:$0xff] }
 0x108   : > { %1726 = vmatprep.subr.bf16.mxu1 %v2008_v41  ;;  %v2036_v46 = vpack.c.bf16 %v502_v59, %v499_v32  ;;  %v2039_v0 = vsel %vm484_vm2, %v921_v56, %v922_v57  ;;  %v696_v8 = vsel %vm690_vm3, %v694_v58, %v695_v47  ;;  %v710_v16 = vrot.slane %v455_v55, 2  ;;  %v461_v56 = vld [vmem:[#allocation2 + $0x98] sm:$0x3] }
 0x109   : > { %v505_v1 = vsel %vm484_vm2, %v503_v60, %v504_v63  ;;  %v928_v7 = vpack.c.bf16 %v2039_v0, %v508_v2  ;;  %v1027_v13 = vpack.c.bf16 %v699_v3, %v696_v8  ;;  %v707_v20 = vrot.slane %v453_v43, 2 }
 0x10a   : > { %1672 = vmatprep.mubr.msk.bf16.mxu0 %vm326_vm0, %v2036_v46  ;;  %v2046_v4 = vpack.c.bf16 %v508_v2, %v505_v1  ;;  %v927_v5 = vpack.c.bf16 %v505_v1, %v502_v59  ;;  %v711_v23 = vsel %vm690_vm3, %v709_v15, %v710_v16  ;;  %v464_v28 = vpack.c.bf16 %v2013_v42, %v1978_v22 }
 0x10b   : > { %v708_v12 = vsel %vm690_vm3, %v706_v19, %v707_v20  ;;  %v692_v32 = vrot.slane %v1958_v62, 2  ;;  %v1023_v33 = vrot.slane %v2020_v52, 2  ;;  %v1024_v34 = vrot.slane %v2022_v53, 2 }
 0x10c   : > { %1712 = vmatprep.mubr.msk.bf16.mxu1 %vm326_vm0, %v927_v5  ;;  %v1029_v31 = vpack.c.bf16 %v711_v23, %v708_v12  ;;  %v712_v61 = vrot.slane %v2001_v39, 2  ;;  %v713_v62 = vrot.slane %v2003_v40, 2  ;;  %v465_v44 = vpack.c.bf16 %v2001_v39, %v2026_v54 }
 0x10d   : > { %1673 = vmatmul.mubr.msk.bf16.gmra.mrb[12].mxu0 %vm326_vm0, %v2046_v4  ;;  %v693_v38 = vsel %vm690_vm3, %v691_v29, %v692_v32  ;;  %v1025_v43 = vsel %vm690_vm3, %v1023_v33, %v1024_v34  ;;  %v725_v40 = vpack.c.bf16 %v708_v12, %v705_v21  ;;  %v821_v53 = vpack.c.bf16 %v1983_v24, %v1968_v14 }
 0x10e   : > { %1678 = vmatprep.mubr.msk.bf16.mxu0 %vm326_vm0, %v462_v6  ;;  %1713 = vmatmul.mubr.msk.bf16.gmra.mrb[4].mxu1 %vm326_vm0, %v928_v7  ;;  %v714_v45 = vsel %vm690_vm3, %v712_v61, %v713_v62  ;;  %v1125_v55 = vpack.c.bf16 %v460_v50, %v2020_v52  ;;  %v822_v57 = vpack.c.bf16 %v1978_v22, %v1963_v11  ;;  %v1213_v59 = vrot.slane %v460_v50, 1 }
 0x10f   : > { %1718 = vmatprep.mubr.msk.bf16.mxu1 %vm326_vm0, %v1027_v13  ;;  %v1030_v48 = vpack.c.bf16 %v1025_v43, %v714_v45  ;;  %v726_v51 = vpack.c.bf16 %v714_v45, %v711_v23  ;;  %v823_v58 = vpack.c.bf16 %v2026_v54, %v2013_v42  ;;  %v1214_v14 = vrot.slane %v461_v56, 1 }
 0x110   : > { %v824_v11 = vpack.c.bf16 %v2020_v52, %v2001_v39  ;;  %v1304_v42 = vrot.slane %v461_v56, 2 }
 0x111   : > { %v1215_v24 = vsel %vm484_vm2, %v1213_v59, %v1214_v14 }
 0x112   : > { %v1217_v22 = vpack.c.bf16 %v1215_v24, %v2039_v0 }
 0x115   : > { %1679 = vmatmul.mubr.msk.bf16.vlgmr.msra.gmra.mrb[8].mxu0 %vm326_vm0, %v463_v26 }
 0x116   : > { %1682 = vmatprep.mubr.msk.bf16.mxu0 %vm326_vm0, %v464_v28  ;;  %1719 = vmatmul.mubr.msk.bf16.vlgmr.msra.gmra.mrb[0].mxu1 %vm326_vm0, %v1028_v27 }
 0x117   : > { %1727 = vmatpush3.bf16.msra.mxu1 %v2008_v41  ;;  %1722 = vmatprep.mubr.msk.bf16.mxu1 %vm326_vm0, %v1029_v31  ;;  %v723_v41 = vpack.c.bf16 %v696_v8, %v693_v38 }
 0x118   : > { %1687 = vmatpush3.bf16.msra.mxu0 %v1999_v37  ;;  %1736 = vmatprep.subr.bf16.mxu1 %v1836_v30  ;;  %v724_v37 = vpack.c.bf16 %v702_v25, %v699_v3 }
 0x119   : > { %1696 = vmatprep.subr.bf16.mxu0 %v1837_v36 }
 0x11d   : > { %1683 = vmatmul.mubr.msk.bf16.gmra.mrb[12].mxu0 %vm326_vm0, %v465_v44 }
 0x11e   : > { %1688 = vmatprep.mubr.msk.bf16.mxu0 %vm326_vm0, %v723_v41  ;;  %1723 = vmatmul.mubr.msk.bf16.gmra.mrb[4].mxu1 %vm326_vm0, %v1030_v48 }
 0x11f   : > { %1728 = vmatprep.mubr.msk.bf16.mxu1 %vm326_vm0, %v463_v26 }
 0x125   : > { %1689 = vmatmul.mubr.msk.bf16.vlgmr.msra.gmra.mrb[8].mxu0 %vm326_vm0, %v724_v37 }
 0x126   : > { %1692 = vmatprep.mubr.msk.bf16.mxu0 %vm326_vm0, %v725_v40  ;;  %1729 = vmatmul.mubr.msk.bf16.vlgmr.msra.gmra.mrb[0].mxu1 %vm326_vm0, %v464_v28 }
 0x127   : > { %1737 = vmatpush3.bf16.msra.mxu1 %v1836_v30  ;;  %1732 = vmatprep.mubr.msk.bf16.mxu1 %vm326_vm0, %v465_v44 }
 0x128   : > { %1697 = vmatpush3.bf16.msra.mxu0 %v1837_v36  ;;  %1746 = vmatprep.subr.bf16.mxu1 %v1838_v49 }
 0x12d   : > { %1693 = vmatmul.mubr.msk.bf16.gmra.mrb[12].mxu0 %vm326_vm0, %v726_v51 }
 0x12e   : > { %1698 = vmatprep.mubr.msk.bf16.mxu0 %vm326_vm0, %v821_v53  ;;  %1733 = vmatmul.mubr.msk.bf16.gmra.mrb[4].mxu1 %vm326_vm0, %v1125_v55 }
 0x12f   : > { %1738 = vmatprep.mubr.msk.bf16.mxu1 %vm326_vm0, %v1994_v35  ;;  %v1303_v35 = vrot.slane %v460_v50, 2 }
 0x131   : > { %v1305_v54 = vsel %vm690_vm3, %v1303_v35, %v1304_v42 }
 0x132   : > { %v1307_v60 = vpack.c.bf16 %v1305_v54, %v1025_v43 }
 0x135   : > { %1699 = vmatmul.mubr.msk.bf16.vlgmr.msra.gmra.mrb[8].mxu0 %vm326_vm0, %v822_v57 }
 0x136   : > { %1702 = vmatprep.mubr.msk.bf16.mxu0 %vm326_vm0, %v823_v58  ;;  %1739 = vmatmul.mubr.msk.bf16.vlgmr.msra.gmra.mrb[0].mxu1 %vm326_vm0, %v2036_v46 }
 0x137   : > { %1747 = vmatpush3.bf16.msra.mxu1 %v1838_v49  ;;  %1742 = vmatprep.mubr.msk.bf16.mxu1 %vm326_vm0, %v2046_v4 }
 0x13d   : > { %1703 = vmatmul.mubr.msk.bf16.gmra.mrb[12].mxu0 %vm326_vm0, %v824_v11 }
 0x13e   : > { %1743 = vmatmul.mubr.msk.bf16.gmra.mrb[4].mxu1 %vm326_vm0, %v1217_v22 }
 0x13f   : > { %1748 = vmatprep.mubr.msk.bf16.mxu1 %vm326_vm0, %v724_v37 }
 0x146   : > { %1749 = vmatmul.mubr.msk.bf16.vlgmr.msra.gmra.mrb[0].mxu1 %vm326_vm0, %v725_v40 }
 0x147   : > { %1752 = vmatprep.mubr.msk.bf16.mxu1 %vm326_vm0, %v726_v51 }
 0x14e   : > { %1753 = vmatmul.mubr.msk.bf16.gmra.mrb[4].mxu1 %vm326_vm0, %v1307_v60 }
 0x208   : > { %v1700_v39 = vpop.f32.mrb[8].mxu0 }
 0x209   : > { %v880_v52 = vpop.f32.mrb[9].mxu0 }
 0x20a   : > { %v1701_v63 = vpop.f32.mrb[10].mxu0 }
 0x20b   : > { %v883_v47 = vpop.f32.mrb[11].mxu0 }
 0x210   : > { %v1704_v46 = vpop.f32.mrb[12].mxu0 }
 0x211   : > { %v896_v0 = vpop.f32.mrb[13].mxu0 }
 0x212   : > { %v1705_v1 = vpop.f32.mrb[14].mxu0 }
 0x213   : > { %v899_v2 = vpop.f32.mrb[15].mxu0 }
 0x219   : > { %v1750_v3 = vpop.f32.mrb[0].mxu1 }
 0x21a   : > { %v1756_v4 = vadd.f32 %v1750_v3, %v1700_v39  ;;  %v1354_v5 = vpop.f32.mrb[1].mxu1 }
 0x21b   : > { %v1757_v6 = vadd.f32 %v1354_v5, %v880_v52  ;;  %v1751_v7 = vpop.f32.mrb[2].mxu1 }
 0x21c   : > { %v1581_v8 = vpack.c.bf16 %v1756_v4, %v1756_v4  ;;  %v1758_v9 = vadd.f32 %v1751_v7, %v1701_v63  ;;  %v1357_v10 = vpop.f32.mrb[3].mxu1 }
 0x21d   : > { %v1579_v13 = vpack.c.bf16 %v1757_v6, %v1757_v6  ;;  %v1759_v15 = vadd.f32 %v1357_v10, %v883_v47 }
 0x21e   : > { %1428 = vst.msk [vmem:[%s251_s10 + $0x8] sm:$0xf] %vm1425_vm4, %v1581_v8  ;;  %v1582_v16 = vpack.c.bf16 %v1758_v9, %v1758_v9 }
 0x21f   : > { %1426 = vst.msk [vmem:[%s251_s10] sm:$0xf] %vm1425_vm4, %v1579_v13  ;;  %v1580_v17 = vpack.c.bf16 %v1759_v15, %v1759_v15 }
 0x220   : > { %1429 = vst.msk [vmem:[%s251_s10 + $0xc] sm:$0xf] %vm1425_vm4, %v1582_v16 }
 0x221   : > { %1427 = vst.msk [vmem:[%s251_s10 + $0x4] sm:$0xf] %vm1425_vm4, %v1580_v17  ;;  %v1754_v18 = vpop.f32.mrb[4].mxu1 }
 0x222   : > { %v1760_v19 = vadd.f32 %v1754_v18, %v1704_v46  ;;  %v1370_v20 = vpop.f32.mrb[5].mxu1 }
 0x223   : > { %v1761_v21 = vadd.f32 %v1370_v20, %v896_v0  ;;  %v1755_v23 = vpop.f32.mrb[6].mxu1 }
 0x224   : > { %v1585_v25 = vpack.c.bf16 %v1760_v19, %v1760_v19  ;;  %v1762_v26 = vadd.f32 %v1755_v23, %v1705_v1  ;;  %v1373_v27 = vpop.f32.mrb[7].mxu1 }
 0x225   : > { %v1583_v28 = vpack.c.bf16 %v1761_v21, %v1761_v21  ;;  %v1763_v12 = vadd.f32 %v1373_v27, %v899_v2 }
 0x226   : > { %1432 = vst.msk [vmem:[%s251_s10 + $0x18] sm:$0xf] %vm1425_vm4, %v1585_v25  ;;  %v1586_v29 = vpack.c.bf16 %v1762_v26, %v1762_v26 }
 0x227   : > { %1430 = vst.msk [vmem:[%s251_s10 + $0x10] sm:$0xf] %vm1425_vm4, %v1583_v28  ;;  %v1584_v30 = vpack.c.bf16 %v1763_v12, %v1763_v12 }
 0x228   : > { %1433 = vst.msk [vmem:[%s251_s10 + $0x1c] sm:$0xf] %vm1425_vm4, %v1586_v29 }
 0x229   : > { %1431 = vst.msk [vmem:[%s251_s10 + $0x14] sm:$0xf] %vm1425_vm4, %v1584_v30 }
 0x22a PF: > { %s16_s21 = sadd.s32 1, %s1845_s21  }
 0x22b   : > { %p13_p4 = scmp.ge.s32.totalorder %s16_s21, 4  }
 0x22d   :  { %15 = sbr.rel (!%p13_p4) target bundleno = 1 (0x1), region = 83 }

// kernel: densenet_forward.9
= control target key start
LH: loop header
LB: loop body
LE: loop exit
PB: predicated region body
PF: predicated region fallthrough
CT: control target
= control target key end

     0   :  { %s2214_s30 = smov 0   ;;  %s2516_s0 = inlined_call_operand.vmem [shape: bf16[2,64,16], index: 0, kind: input, shape index: {}]   ;;  %s2517_s1 = inlined_call_operand.vmem [shape: bf16[2,64,8], index: 1, kind: input, shape index: {}]   ;;  %s2518_s2 = inlined_call_operand.vmem [shape: f32[1,16], index: 2, kind: input, shape index: {}]   ;;  %s2519_s3 = inlined_call_operand.vmem [shape: f32[1,8], index: 3, kind: input, shape index: {}]   ;;  %s2520_s4 = inlined_call_operand.vmem [shape: f32[1,16], index: 4, kind: input, shape index: {}]   ;;  %s2521_s5 = inlined_call_operand.vmem [shape: f32[1,8], index: 5, kind: input, shape index: {}]   ;;  %s2522_s6 = inlined_call_operand.vmem [shape: bf16[24,16], index: 6, kind: input, shape index: {}]   ;;  %s2523_s7 = inlined_call_operand.vmem [shape: f32[1,16], index: 7, kind: input, shape index: {}]   ;;  %s2524_s8 = inlined_call_operand.vmem [shape: bf16[9,16,8], index: 8, kind: input, shape index: {}]   ;;  %s2525_s9 = inlined_call_operand.vmem [shape: bf16[2,64,8], index: 9, kind: output, shape index: {}]  }
   0x1 LB: > { %s1751_s10 = sadd.s32 4294967295, %s2161_s30   ;;  %p1755_p0 = scmp.ge.s32.totalorder %s2161_s30, 1  ;;  %s2161_s30 = sphi %s2214_s30, %s19_s30  }
   0x2   : > { %p297_p1 = scmp.lt.s32.totalorder %s2161_s30, 3 }
   0x4   : > { %p298_p2 = pnand %p1755_p0, %p297_p1 }
   0x5   : > { %v472_v0 = vld [vmem:[%s2522_s6 + $0x8] sm:$0xf] (!%p298_p2)  ;;  %vm486_vm0 = vcmask (!%p298_p2), 1043456   ;;  %p338_p3 = scmp.lt.s32.totalorder (!%p298_p2), %s1751_s10, 1  ;;  %v2228_v2 = vld [vmem:[%s2522_s6] sm:$0xff] (!%p298_p2)   ;;  %vm473_vm1 = vcmask (!%p298_p2), 64512  }
   0x6   : > { %301 = sbr.rel (%p298_p2) target bundleno = 582 (0x246), region = 56  ;;  %2135 = vmatprep.subr.msk.bf16.mxu0 (!%p298_p2), %vm486_vm0, %v472_v0  ;;  %v488_v1 = vsel (!%p298_p2), %vm486_vm0, %v472_v0, 0  ;;  %v1764_v3 = vld [vmem:[%s2519_s3] ss:$0 sm:$0xff] (!%p298_p2)  ;;  %vm561_vm2 = vcmask (!%p298_p2), 130048   ;;  %vm663_vm3 = vcmask (!%p298_p2), 123904  }
   0x7   : > { %1952 = vmatpush3.bf16.msra.mxu0 (!%p298_p2), %v488_v1  ;;  %v1765_v13 = vld [vmem:[%s2521_s5] ss:$0 sm:$0xff] (!%p298_p2)  ;;  %vm734_vm4 = vcmask (!%p298_p2), 1046528   ;;  %vm940_vm5 = vcmask (!%p298_p2), 1045504   ;;  %vm1675_vm6 = vcmask (!%p298_p2), 60416  }
   0x8   : > { %1961 = vmatprep.subr.bf16.mxu0 (!%p298_p2), %v2228_v2  ;;  %v1762_v39 = vld [vmem:[%s2518_s2] ss:$0 sm:$0xff] (!%p298_p2) }
   0x9   : > { %v1763_v51 = vld [vmem:[%s2520_s4] ss:$0 sm:$0xff] (!%p298_p2) }
   0xd   : > { %s2527_s10 = smov (!%p338_p3, %s1751_s10), 1 }
   0xe   : > { %s2230_s15 = sshll.u32 %s2527_s10, 5 }
   0xf   : > { %s2240_s20 = scalar_lea.vmem %s2516_s0, %s2230_s15  ;;  %s347_s23 = scalar_lea.vmem %s2517_s1, %s2230_s15 }
  0x10   : > { %v1890_v4 = vld [vmem:[%s2240_s20 + $0x8] sm:$0xff]   ;;  %v1875_v5 = vld [vmem:[%s347_s23] sm:$0xff]   ;;  %v1894_v11 = vld [vmem:[%s347_s23 + $0x10] sm:$0xff]   ;;  %s352_s13 = scalar_lea.vmem %s2525_s9, %s2230_s15 }
  0x11   : > { %v1893_v6 = vld [vmem:[%s347_s23 + $0x8] sm:$0xff]   ;;  %v1864_v7 = vunpack.c.l.bf16 %v1890_v4  ;;  %v1865_v8 = vunpack.c.h.bf16 %v1890_v4  ;;  %v1876_v9 = vunpack.c.l.bf16 %v1875_v5  ;;  %v1877_v10 = vunpack.c.h.bf16 %v1875_v5  ;;  %v1895_v12 = vld [vmem:[%s347_s23 + $0x18] sm:$0xff]   ;;  %v1859_v34 = vld [vmem:[%s2240_s20] sm:$0xff]  }
  0x12   : > { %v1880_v14 = vunpack.c.l.bf16 %v1893_v6  ;;  %v1881_v15 = vunpack.c.h.bf16 %v1893_v6  ;;  %v1884_v16 = vunpack.c.l.bf16 %v1894_v11  ;;  %v1885_v17 = vunpack.c.h.bf16 %v1894_v11  ;;  %v1891_v44 = vld [vmem:[%s2240_s20 + $0x10] sm:$0xff]   ;;  %v1892_v61 = vld [vmem:[%s2240_s20 + $0x18] sm:$0xff]  }
  0x13   : > { %v437_v18 = vmul.f32 %v1876_v9, %v1764_v3  ;;  %v438_v19 = vmul.f32 %v1877_v10, %v1764_v3  ;;  %v1888_v20 = vunpack.c.l.bf16 %v1895_v12  ;;  %v1889_v21 = vunpack.c.h.bf16 %v1895_v12 }
  0x14   : > { %v439_v22 = vmul.f32 %v1880_v14, %v1764_v3  ;;  %v440_v23 = vmul.f32 %v1881_v15, %v1764_v3  ;;  %v441_v24 = vmul.f32 %v1884_v16, %v1764_v3  ;;  %v442_v25 = vmul.f32 %v1885_v17, %v1764_v3 }
  0x15   : > { %v452_v26 = vadd.f32 %v1765_v13, %v437_v18  ;;  %v453_v27 = vadd.f32 %v1765_v13, %v438_v19  ;;  %v443_v28 = vmul.f32 %v1888_v20, %v1764_v3  ;;  %v444_v29 = vmul.f32 %v1889_v21, %v1764_v3 }
  0x16   : > { %v454_v30 = vadd.f32 %v1765_v13, %v439_v22  ;;  %v455_v31 = vadd.f32 %v1765_v13, %v440_v23  ;;  %v456_v32 = vadd.f32 %v1765_v13, %v441_v24  ;;  %v457_v33 = vadd.f32 %v1765_v13, %v442_v25  ;;  %v2146_v24 = vld [vmem:[%s2524_s8 + $0x8] sm:$0xff]   ;;  %v2294_v25 = vld [vmem:[%s2524_s8 + $0x18] sm:$0xff]  }
  0x17   : > { %v460_v35 = vmax.f32 %v452_v26, 0.0  ;;  %v461_v36 = vmax.f32 %v453_v27, 0.0  ;;  %v458_v37 = vadd.f32 %v1765_v13, %v443_v28  ;;  %v459_v38 = vadd.f32 %v1765_v13, %v444_v29  ;;  %2061 = vmatprep.subr.bf16.mxu1 %v2294_v25  ;;  %v2301_v26 = vld [vmem:[%s2524_s8 + $0x20] sm:$0xff]  }
  0x18   : > { %v462_v40 = vmax.f32 %v454_v30, 0.0  ;;  %v463_v41 = vmax.f32 %v455_v31, 0.0  ;;  %v464_v42 = vmax.f32 %v456_v32, 0.0  ;;  %v465_v43 = vmax.f32 %v457_v33, 0.0  ;;  %2062 = vmatpush3.bf16.msra.mxu1 %v2294_v25  ;;  %v2307_v27 = vld [vmem:[%s2524_s8] sm:$0xff]  }
  0x19   : > { %v468_v45 = vpack.c.bf16 %v461_v36, %v460_v35  ;;  %v1860_v46 = vunpack.c.l.bf16 %v1859_v34  ;;  %v466_v49 = vmax.f32 %v458_v37, 0.0  ;;  %v1861_v50 = vunpack.c.h.bf16 %v1859_v34  ;;  %2011 = vmatprep.subr.bf16.mxu1 %v2301_v26  ;;  %v1775_v28 = vld [vmem:[%s2523_s7] ss:$0 sm:$0xff] }
  0x1a   : > { %v469_v47 = vpack.c.bf16 %v463_v41, %v462_v40  ;;  %v470_v48 = vpack.c.bf16 %v465_v43, %v464_v42  ;;  %v467_v52 = vmax.f32 %v459_v38, 0.0  ;;  %v379_v54 = vmul.f32 %v1864_v7, %v1762_v39 }
  0x1b   : > { %1953 = vmatprep.mubr.msk.bf16.mxu0 %vm473_vm1, %v468_v45  ;;  %v377_v53 = vmul.f32 %v1860_v46, %v1762_v39  ;;  %v1868_v55 = vunpack.c.l.bf16 %v1891_v44  ;;  %v378_v56 = vmul.f32 %v1861_v50, %v1762_v39  ;;  %v380_v57 = vmul.f32 %v1865_v8, %v1762_v39 }
  0x1c   : > { %1954 = vmatmul.mubr.msk.bf16.vlgmr.msra.gmra.mrb[0].mxu0 %vm473_vm1, %v469_v47  ;;  %v1869_v58 = vunpack.c.h.bf16 %v1891_v44  ;;  %v471_v0 = vpack.c.bf16 %v467_v52, %v466_v49  ;;  %v394_v3 = vadd.f32 %v1763_v51, %v379_v54  ;;  %v1872_v6 = vunpack.c.l.bf16 %v1892_v61 }
  0x1d   : > { %1962 = vmatpush3.bf16.msra.mxu0 %v2228_v2  ;;  %1957 = vmatprep.mubr.msk.bf16.mxu0 %vm473_vm1, %v470_v48  ;;  %v392_v59 = vadd.f32 %v1763_v51, %v377_v53  ;;  %v381_v60 = vmul.f32 %v1868_v55, %v1762_v39  ;;  %v393_v62 = vadd.f32 %v1763_v51, %v378_v56  ;;  %v1873_v7 = vunpack.c.h.bf16 %v1892_v61 }
  0x1e   : > { %v382_v63 = vmul.f32 %v1869_v58, %v1762_v39  ;;  %v395_v5 = vadd.f32 %v1763_v51, %v380_v57  ;;  %v402_v2 = vmax.f32 %v394_v3, 0.0  ;;  %v383_v12 = vmul.f32 %v1872_v6, %v1762_v39  ;;  %1971 = vmatprep.subr.bf16.mxu0 %v2146_v24 }
  0x1f   : > { %v400_v1 = vmax.f32 %v392_v59, 0.0  ;;  %v401_v4 = vmax.f32 %v393_v62, 0.0  ;;  %v396_v9 = vadd.f32 %v1763_v51, %v381_v60  ;;  %v384_v13 = vmul.f32 %v1873_v7, %v1762_v39 }
  0x20   : > { %v397_v10 = vadd.f32 %v1763_v51, %v382_v63  ;;  %v403_v11 = vmax.f32 %v395_v5, 0.0  ;;  %v398_v17 = vadd.f32 %v1763_v51, %v383_v12  ;;  %v2163_v23 = vmov 0.0  }
  0x21   : > { %v408_v8 = vpack.c.bf16 %v401_v4, %v400_v1  ;;  %v404_v14 = vmax.f32 %v396_v9, 0.0  ;;  %v399_v18 = vadd.f32 %v1763_v51, %v384_v13  ;;  %669 = vst.msk [vmem:[#allocation2 + $0x30] sm:$0xff] %vm561_vm2, %v2163_v23  ;;  %662 = vst.msk [vmem:[#allocation2] sm:$0xff] %vm561_vm2, %v2163_v23  ;;  %v2151_v13 = vld [vmem:[%s2524_s8 + $0x10] sm:$0xff]  }
  0x22   : > { %v405_v15 = vmax.f32 %v397_v10, 0.0  ;;  %v409_v16 = vpack.c.bf16 %v403_v11, %v402_v2  ;;  %v406_v20 = vmax.f32 %v398_v17, 0.0  ;;  %670 = vst.msk [vmem:[#allocation2 + $0x38] sm:$0x3] %vm663_vm3, %v2163_v23  ;;  %664 = vst.msk [vmem:[#allocation2 + $0x8] sm:$0x3] %vm663_vm3, %v2163_v23 }
  0x23   : > { %v407_v21 = vmax.f32 %v399_v18, 0.0  ;;  %665 = vst.msk [vmem:[#allocation2 + $0x10] sm:$0xff] %vm561_vm2, %v2163_v23  ;;  %667 = vst.msk [vmem:[#allocation2 + $0x20] sm:$0xff] %vm561_vm2, %v2163_v23 }
  0x24   : > { %1958 = vmatmul.mubr.msk.bf16.gmra.mrb[4].mxu0 %vm473_vm1, %v471_v0  ;;  %v410_v19 = vpack.c.bf16 %v405_v15, %v404_v14  ;;  %666 = vst.msk [vmem:[#allocation2 + $0x18] sm:$0x3] %vm663_vm3, %v2163_v23  ;;  %668 = vst.msk [vmem:[#allocation2 + $0x28] sm:$0x3] %vm663_vm3, %v2163_v23 }
  0x25   : > { %1963 = vmatprep.mubr.msk.bf16.mxu0 %vm561_vm2, %v408_v8  ;;  %v411_v22 = vpack.c.bf16 %v407_v21, %v406_v20  ;;  %671 = vst.msk [vmem:[#allocation2 + $0x40] sm:$0xff] %vm561_vm2, %v2163_v23  ;;  %673 = vst.msk [vmem:[#allocation2 + $0x50] sm:$0xff] %vm561_vm2, %v2163_v23 }
  0x26   : > { %672 = vst.msk [vmem:[#allocation2 + $0x48] sm:$0x3] %vm663_vm3, %v2163_v23  ;;  %674 = vst.msk [vmem:[#allocation2 + $0x58] sm:$0x3] %vm663_vm3, %v2163_v23 }
  0x27   : > { %675 = vst.msk [vmem:[#allocation2 + $0x60] sm:$0xff] %vm561_vm2, %v2163_v23  ;;  %677 = vst.msk [vmem:[#allocation2 + $0x70] sm:$0xff] %vm561_vm2, %v2163_v23 }
  0x28   : > { %676 = vst.msk [vmem:[#allocation2 + $0x68] sm:$0x3] %vm663_vm3, %v2163_v23  ;;  %678 = vst.msk [vmem:[#allocation2 + $0x78] sm:$0x3] %vm663_vm3, %v2163_v23  ;;  %v2315_v41 = vld [vmem:[#allocation2] sm:$0xff] }
  0x29   : > { %679 = vst.msk [vmem:[#allocation2 + $0x80] sm:$0xff] %vm561_vm2, %v2163_v23  ;;  %681 = vst.msk [vmem:[#allocation2 + $0x90] sm:$0xff] %vm561_vm2, %v2163_v23  ;;  %v2317_v42 = vld [vmem:[#allocation2 + $0x8] sm:$0x3]  ;;  %v735_v46 = vrot.slane %v2315_v41, 1 }
  0x2a   : > { %680 = vst.msk [vmem:[#allocation2 + $0x88] sm:$0x3] %vm663_vm3, %v2163_v23  ;;  %682 = vst.msk [vmem:[#allocation2 + $0x98] sm:$0x3] %vm663_vm3, %v2163_v23  ;;  %v736_v47 = vrot.slane %v2317_v42, 1 }
  0x2c   : > { %1964 = vmatmul.mubr.msk.bf16.vlgmr.msra.gmra.mrb[0].mxu0 %vm561_vm2, %v409_v16  ;;  %v737_v60 = vsel %vm734_vm4, %v735_v46, %v736_v47 }
  0x2d   : > { %1967 = vmatprep.mubr.msk.bf16.mxu0 %vm561_vm2, %v410_v19  ;;  %1972 = vmatpush3.bf16.msra.mxu0 %v2146_v24 }
  0x2e   : > { %1981 = vmatprep.subr.bf16.mxu0 %v2307_v27 }
  0x34   : > { %1968 = vmatmul.mubr.msk.bf16.gmra.mrb[4].mxu0 %vm561_vm2, %v411_v22 }
  0xff   : > { %v1965_v29 = vpop.f32.mrb[0].mxu0 }
 0x100   : > { %v648_v30 = vadd.f32 %v1965_v29, %v1775_v28  ;;  %v608_v31 = vpop.f32.mrb[1].mxu0 }
 0x101   : > { %v646_v32 = vadd.f32 %v1775_v28, %v608_v31  ;;  %v1966_v33 = vpop.f32.mrb[2].mxu0 }
 0x102   : > { %v656_v34 = vmax.f32 %v648_v30, 0.0  ;;  %v649_v35 = vadd.f32 %v1966_v33, %v1775_v28  ;;  %v611_v36 = vpop.f32.mrb[3].mxu0 }
 0x103   : > { %v654_v37 = vmax.f32 %v646_v32, 0.0  ;;  %v647_v38 = vadd.f32 %v1775_v28, %v611_v36  ;;  %v2150_v36 = vld [vmem:[%s2524_s8 + $0x28] sm:$0xff]  }
 0x104   : > { %686 = vst.msk [vmem:[#allocation2 + $0x31] sm:$0xff] %vm561_vm2, %v656_v34  ;;  %v657_v39 = vmax.f32 %v649_v35, 0.0 }
 0x105   : > { %684 = vst.msk [vmem:[#allocation2 + $0x11] sm:$0xff] %vm561_vm2, %v654_v37  ;;  %v655_v40 = vmax.f32 %v647_v38, 0.0 }
 0x106   : > { %687 = vst.msk [vmem:[#allocation2 + $0x41] sm:$0xff] %vm561_vm2, %v657_v39 }
 0x107   : > { %685 = vst.msk [vmem:[#allocation2 + $0x21] sm:$0xff] %vm561_vm2, %v655_v40  ;;  %v1969_v43 = vpop.f32.mrb[4].mxu0 }
 0x108   : > { %v652_v44 = vadd.f32 %v1969_v43, %v1775_v28  ;;  %v624_v45 = vpop.f32.mrb[5].mxu0 }
 0x109   : > { %v650_v48 = vadd.f32 %v1775_v28, %v624_v45  ;;  %v1970_v49 = vpop.f32.mrb[6].mxu0 }
 0x10a   : > { %v660_v50 = vmax.f32 %v652_v44, 0.0  ;;  %v653_v51 = vadd.f32 %v1970_v49, %v1775_v28  ;;  %v627_v52 = vpop.f32.mrb[7].mxu0 }
 0x10b   : > { %v658_v53 = vmax.f32 %v650_v48, 0.0  ;;  %v651_v54 = vadd.f32 %v1775_v28, %v627_v52  ;;  %v2323_v55 = vld [vmem:[#allocation2 + $0x30] sm:$0xff]  ;;  %v2325_v56 = vld [vmem:[#allocation2 + $0x38] sm:$0x3] }
 0x10c   : > { %690 = vst.msk [vmem:[#allocation2 + $0x71] sm:$0xff] %vm561_vm2, %v660_v50  ;;  %v661_v57 = vmax.f32 %v653_v51, 0.0  ;;  %v2328_v58 = vld [vmem:[#allocation2 + $0x10] sm:$0xff]  ;;  %v2330_v59 = vld [vmem:[#allocation2 + $0x18] sm:$0x3]  ;;  %v744_v61 = vrot.slane %v2323_v55, 1 }
 0x10d   : > { %688 = vst.msk [vmem:[#allocation2 + $0x51] sm:$0xff] %vm561_vm2, %v658_v53  ;;  %v659_v62 = vmax.f32 %v651_v54, 0.0  ;;  %v738_v63 = vrot.slane %v2328_v58, 1  ;;  %v739_v0 = vrot.slane %v2330_v59, 1  ;;  %v745_v1 = vrot.slane %v2325_v56, 1  ;;  %v2347_v10 = vld [vmem:[#allocation2 + $0x40] sm:$0xff] }
 0x10e   : > { %691 = vst.msk [vmem:[#allocation2 + $0x81] sm:$0xff] %vm561_vm2, %v661_v57  ;;  %v2339_v3 = vld [vmem:[#allocation2 + $0x20] sm:$0xff]  ;;  %v2341_v4 = vld [vmem:[#allocation2 + $0x28] sm:$0x3]  ;;  %v747_v14 = vrot.slane %v2347_v10, 1  ;;  %v712_v43 = vpack.c.bf16 %v2328_v58, %v2315_v41  ;;  %v944_v53 = vrot.slane %v2328_v58, 2 }
 0x10f   : > { %689 = vst.msk [vmem:[#allocation2 + $0x61] sm:$0xff] %vm561_vm2, %v659_v62  ;;  %v740_v5 = vsel %vm734_vm4, %v738_v63, %v739_v0  ;;  %v741_v6 = vrot.slane %v2339_v3, 1  ;;  %v742_v7 = vrot.slane %v2341_v4, 1  ;;  %v2349_v8 = vld [vmem:[#allocation2 + $0x48] sm:$0x3]  ;;  %v746_v11 = vsel %vm734_vm4, %v744_v61, %v745_v1 }
 0x110   : > { %v767_v9 = vpack.c.bf16 %v740_v5, %v737_v60  ;;  %v748_v15 = vrot.slane %v2349_v8, 1  ;;  %v947_v49 = vrot.slane %v2339_v3, 2  ;;  %v948_v50 = vrot.slane %v2341_v4, 2 }
 0x111   : > { %v743_v2 = vsel %vm734_vm4, %v741_v6, %v742_v7  ;;  %v713_v51 = vpack.c.bf16 %v2323_v55, %v2339_v3  ;;  %v945_v54 = vrot.slane %v2330_v59, 2  ;;  %v941_v60 = vrot.slane %v2315_v41, 2 }
 0x112   : > { %1973 = vmatprep.mubr.msk.bf16.mxu0 %vm561_vm2, %v767_v9  ;;  %v2354_v12 = vpack.c.bf16 %v746_v11, %v743_v2  ;;  %v749_v32 = vsel %vm734_vm4, %v747_v14, %v748_v15  ;;  %v1175_v37 = vpack.c.bf16 %v743_v2, %v740_v5  ;;  %v942_v61 = vrot.slane %v2317_v42, 2 }
 0x113   : > { %v2361_v16 = vld [vmem:[#allocation2 + $0x70] sm:$0xff]  ;;  %v2363_v17 = vld [vmem:[#allocation2 + $0x78] sm:$0x3]  ;;  %v1176_v45 = vpack.c.bf16 %v749_v32, %v746_v11  ;;  %v949_v62 = vsel %vm940_vm5, %v947_v49, %v948_v50  ;;  %v946_v63 = vsel %vm940_vm5, %v944_v53, %v945_v54  ;;  %v954_v0 = vrot.slane %v2349_v8, 2 }
 0x114   : > { %1974 = vmatmul.mubr.msk.bf16.vlgmr.msra.gmra.mrb[8].mxu0 %vm561_vm2, %v2354_v12  ;;  %v2367_v18 = vld [vmem:[#allocation2 + $0x50] sm:$0xff]  ;;  %v2369_v19 = vld [vmem:[#allocation2 + $0x58] sm:$0x3]  ;;  %v756_v28 = vrot.slane %v2361_v16, 1  ;;  %v757_v29 = vrot.slane %v2363_v17, 1  ;;  %v953_v1 = vrot.slane %v2347_v10, 2  ;;  %v1277_v4 = vpack.c.bf16 %v949_v62, %v946_v63 }
 0x115   : > { %v750_v20 = vrot.slane %v2367_v18, 1  ;;  %v751_v21 = vrot.slane %v2369_v19, 1  ;;  %v2373_v22 = vld [vmem:[#allocation2 + $0x80] sm:$0xff]  ;;  %1982 = vmatpush3.bf16.msra.mxu0 %v2307_v27  ;;  %v2410_v44 = vld [vmem:[#allocation2 + $0x88] sm:$0x3]  ;;  %v714_v52 = vpack.c.bf16 %v2367_v18, %v2347_v10  ;;  %v943_v41 = vsel %vm940_vm5, %v941_v60, %v942_v61 }
 0x116   : > { %v2376_v23 = vld [vmem:[#allocation2 + $0x60] sm:$0xff]  ;;  %v2378_v24 = vld [vmem:[#allocation2 + $0x68] sm:$0x3]  ;;  %1991 = vmatprep.subr.bf16.mxu0 %v2151_v13  ;;  %v1074_v27 = vpack.c.bf16 %v2373_v22, %v2361_v16  ;;  %v758_v39 = vsel %vm734_vm4, %v756_v28, %v757_v29  ;;  %v1171_v47 = vrot.slane %v2373_v22, 1  ;;  %v1172_v48 = vrot.slane %v2410_v44, 1 }
 0x117   : > { %v753_v30 = vrot.slane %v2376_v23, 1  ;;  %v1073_v31 = vpack.c.bf16 %v2376_v23, %v2367_v18  ;;  %v752_v33 = vsel %vm734_vm4, %v750_v20, %v751_v21  ;;  %v754_v35 = vrot.slane %v2378_v24, 1 }
 0x118   : > { %v2387_v34 = vpack.c.bf16 %v752_v33, %v749_v32  ;;  %v2429_v57 = vsel %vm734_vm4, %v1171_v47, %v1172_v48  ;;  %v959_v42 = vrot.slane %v2376_v23, 2  ;;  %v960_v5 = vrot.slane %v2378_v24, 2 }
 0x119   : > { %2007 = vmatprep.mubr.msk.bf16.mxu1 %vm561_vm2, %v1073_v31  ;;  %v755_v38 = vsel %vm734_vm4, %v753_v30, %v754_v35  ;;  %v1178_v59 = vpack.c.bf16 %v2429_v57, %v758_v39  ;;  %v950_v6 = vrot.slane %v2323_v55, 2  ;;  %v951_v7 = vrot.slane %v2325_v56, 2  ;;  %v711_v35 = vld [vmem:[#allocation2 + $0x98] sm:$0x3] }
 0x11a   : > { %1977 = vmatprep.mubr.msk.bf16.mxu0 %vm561_vm2, %v2387_v34  ;;  %2008 = vmatmul.mubr.msk.bf16.vlgmr.msra.gmra.mrb[0].mxu1 %vm561_vm2, %v1074_v27  ;;  %v2403_v40 = vpack.c.bf16 %v758_v39, %v755_v38  ;;  %v1177_v46 = vpack.c.bf16 %v755_v38, %v752_v33  ;;  %v715_v9 = vpack.c.bf16 %v2361_v16, %v2376_v23  ;;  %v956_v8 = vrot.slane %v2367_v18, 2  ;;  %v2153_v18 = vld [vmem:[%s2524_s8 + $0x38] sm:$0xff]   ;;  %v2154_v27 = vld [vmem:[%s2524_s8 + $0x40] sm:$0xff]  }
 0x11b   : > { %2012 = vmatpush3.bf16.msra.mxu1 %v2301_v26  ;;  %2013 = vmatprep.mubr.msk.bf16.mxu1 %vm561_vm2, %v1175_v37  ;;  %v2152_v26 = vld [vmem:[%s2524_s8 + $0x30] sm:$0xff]   ;;  %v973_v2 = vpack.c.bf16 %v946_v63, %v943_v41  ;;  %v957_v11 = vrot.slane %v2369_v19, 2  ;;  %v961_v14 = vsel %vm940_vm5, %v959_v42, %v960_v5  ;;  %v952_v56 = vsel %vm940_vm5, %v950_v6, %v951_v7 }
 0x11c   : > { %2021 = vmatprep.subr.bf16.mxu1 %v2150_v36  ;;  %1978 = vmatmul.mubr.msk.bf16.gmra.mrb[12].mxu0 %vm561_vm2, %v2403_v40  ;;  %v1273_v19 = vrot.slane %v2373_v22, 2  ;;  %v1274_v23 = vrot.slane %v2410_v44, 2  ;;  %v974_v24 = vpack.c.bf16 %v952_v56, %v949_v62  ;;  %v962_v28 = vrot.slane %v2361_v16, 2 }
 0x11d   : > { %1983 = vmatprep.mubr.msk.bf16.mxu0 %vm561_vm2, %v712_v43  ;;  %v958_v20 = vsel %vm940_vm5, %v956_v8, %v957_v11  ;;  %v963_v29 = vrot.slane %v2363_v17, 2  ;;  %v1071_v17 = vpack.c.bf16 %v2339_v3, %v2328_v58  ;;  %v710_v58 = vld [vmem:[#allocation2 + $0x90] sm:$0xff]  ;;  %v1464_v37 = vrot.slane %v711_v35, 1 }
 0x11e   : > { %v1279_v21 = vpack.c.bf16 %v961_v14, %v958_v20  ;;  %v1275_v31 = vsel %vm940_vm5, %v1273_v19, %v1274_v23  ;;  %v1375_v3 = vpack.c.bf16 %v710_v58, %v2373_v22  ;;  %v1553_v22 = vrot.slane %v710_v58, 2 }
 0x11f   : > { %v964_v32 = vsel %vm940_vm5, %v962_v28, %v963_v29 }
 0x120   : > { %v1280_v33 = vpack.c.bf16 %v1275_v31, %v964_v32  ;;  %v976_v16 = vpack.c.bf16 %v964_v32, %v961_v14 }
 0x122   : > { %2014 = vmatmul.mubr.msk.bf16.vlgmr.msra.gmra.mrb[4].mxu1 %vm561_vm2, %v1176_v45 }
 0x123   : > { %2022 = vmatpush3.bf16.msra.mxu1 %v2150_v36  ;;  %2017 = vmatprep.mubr.msk.bf16.mxu1 %vm561_vm2, %v1177_v46  ;;  %v1463_v36 = vrot.slane %v710_v58, 1 }
 0x124   : > { %2031 = vmatprep.subr.bf16.mxu1 %v2152_v26  ;;  %1984 = vmatmul.mubr.msk.bf16.vlgmr.msra.gmra.mrb[8].mxu0 %vm561_vm2, %v713_v51 }
 0x125   : > { %1987 = vmatprep.mubr.msk.bf16.mxu0 %vm561_vm2, %v714_v52  ;;  %1992 = vmatpush3.bf16.msra.mxu0 %v2151_v13  ;;  %v955_v13 = vsel %vm940_vm5, %v953_v1, %v954_v0 }
 0x126   : > { %2001 = vmatprep.subr.bf16.mxu0 %v2294_v25  ;;  %v1278_v15 = vpack.c.bf16 %v955_v13, %v952_v56  ;;  %v975_v30 = vpack.c.bf16 %v958_v20, %v955_v13 }
 0x12a   : > { %2018 = vmatmul.mubr.msk.bf16.gmra.mrb[0].mxu1 %vm561_vm2, %v1178_v59 }
 0x12b   : > { %2023 = vmatprep.mubr.msk.bf16.mxu1 %vm561_vm2, %v1277_v4 }
 0x12c   : > { %1988 = vmatmul.mubr.msk.bf16.gmra.mrb[12].mxu0 %vm561_vm2, %v715_v9 }
 0x12d   : > { %1993 = vmatprep.mubr.msk.bf16.mxu0 %vm561_vm2, %v973_v2 }
 0x132   : > { %2024 = vmatmul.mubr.msk.bf16.vlgmr.msra.gmra.mrb[4].mxu1 %vm561_vm2, %v1278_v15 }
 0x133   : > { %2032 = vmatpush3.bf16.msra.mxu1 %v2152_v26  ;;  %2027 = vmatprep.mubr.msk.bf16.mxu1 %vm561_vm2, %v1279_v21 }
 0x134   : > { %2041 = vmatprep.subr.bf16.mxu1 %v2153_v18  ;;  %1994 = vmatmul.mubr.msk.bf16.vlgmr.msra.gmra.mrb[8].mxu0 %vm561_vm2, %v974_v24 }
 0x135   : > { %1997 = vmatprep.mubr.msk.bf16.mxu0 %vm561_vm2, %v975_v30  ;;  %2002 = vmatpush3.bf16.msra.mxu0 %v2294_v25  ;;  %v1072_v25 = vpack.c.bf16 %v2347_v10, %v2323_v55  ;;  %v1465_v55 = vsel %vm734_vm4, %v1463_v36, %v1464_v37 }
 0x136   : > { %v1467_v10 = vpack.c.bf16 %v1465_v55, %v2429_v57 }
 0x13a   : > { %2028 = vmatmul.mubr.msk.bf16.gmra.mrb[0].mxu1 %vm561_vm2, %v1280_v33 }
 0x13b   : > { %2033 = vmatprep.mubr.msk.bf16.mxu1 %vm561_vm2, %v713_v51 }
 0x13c   : > { %1998 = vmatmul.mubr.msk.bf16.gmra.mrb[12].mxu0 %vm561_vm2, %v976_v16 }
 0x13d   : > { %2003 = vmatprep.mubr.msk.bf16.mxu0 %vm561_vm2, %v1071_v17 }
 0x142   : > { %2034 = vmatmul.mubr.msk.bf16.vlgmr.msra.gmra.mrb[4].mxu1 %vm561_vm2, %v714_v52 }
 0x143   : > { %2042 = vmatpush3.bf16.msra.mxu1 %v2153_v18  ;;  %2037 = vmatprep.mubr.msk.bf16.mxu1 %vm561_vm2, %v715_v9 }
 0x144   : > { %2051 = vmatprep.subr.bf16.mxu1 %v2154_v27  ;;  %2004 = vmatmul.mubr.msk.bf16.vlgmr.msra.gmra.mrb[8].mxu0 %vm561_vm2, %v1072_v25 }
 0x14a   : > { %2038 = vmatmul.mubr.msk.bf16.gmra.mrb[0].mxu1 %vm561_vm2, %v1375_v3 }
 0x14b   : > { %2043 = vmatprep.mubr.msk.bf16.mxu1 %vm561_vm2, %v2354_v12  ;;  %v1554_v12 = vrot.slane %v711_v35, 2 }
 0x152   : > { %2044 = vmatmul.mubr.msk.bf16.vlgmr.msra.gmra.mrb[4].mxu1 %vm561_vm2, %v2387_v34  ;;  %v1555_v34 = vsel %vm940_vm5, %v1553_v22, %v1554_v12 }
 0x153   : > { %2052 = vmatpush3.bf16.msra.mxu1 %v2154_v27  ;;  %2047 = vmatprep.mubr.msk.bf16.mxu1 %vm561_vm2, %v2403_v40  ;;  %v1557_v38 = vpack.c.bf16 %v1555_v34, %v1275_v31 }
 0x15a   : > { %2048 = vmatmul.mubr.msk.bf16.gmra.mrb[0].mxu1 %vm561_vm2, %v1467_v10 }
 0x15b   : > { %2053 = vmatprep.mubr.msk.bf16.mxu1 %vm561_vm2, %v974_v24 }
 0x162   : > { %2054 = vmatmul.mubr.msk.bf16.vlgmr.msra.gmra.mrb[4].mxu1 %vm561_vm2, %v975_v30 }
 0x163   : > { %2057 = vmatprep.mubr.msk.bf16.mxu1 %vm561_vm2, %v976_v16 }
 0x16a   : > { %2058 = vmatmul.mubr.msk.bf16.gmra.mrb[0].mxu1 %vm561_vm2, %v1557_v38 }
 0x20f   : > { %v1999_v39 = vpop.f32.mrb[12].mxu0 }
 0x210   : > { %v1048_v40 = vpop.f32.mrb[13].mxu0 }
 0x211   : > { %v2000_v43 = vpop.f32.mrb[14].mxu0 }
 0x212   : > { %v1051_v44 = vpop.f32.mrb[15].mxu0 }
 0x217   : > { %v2005_v45 = vpop.f32.mrb[8].mxu0 }
 0x218   : > { %v1130_v26 = vpop.f32.mrb[9].mxu0 }
 0x219   : > { %v2006_v46 = vpop.f32.mrb[10].mxu0 }
 0x21a   : > { %v1133_v47 = vpop.f32.mrb[11].mxu0 }
 0x235   : > { %v2055_v48 = vpop.f32.mrb[4].mxu1 }
 0x236   : > { %v2063_v49 = vadd.f32 %v2055_v48, %v2005_v45  ;;  %v1604_v50 = vpop.f32.mrb[5].mxu1 }
 0x237   : > { %v2064_v51 = vadd.f32 %v1604_v50, %v1130_v26  ;;  %v2056_v52 = vpop.f32.mrb[6].mxu1 }
 0x238   : > { %v1852_v53 = vpack.c.bf16 %v2063_v49, %v2063_v49  ;;  %v2065_v54 = vadd.f32 %v2056_v52, %v2006_v46  ;;  %v1607_v57 = vpop.f32.mrb[7].mxu1 }
 0x239   : > { %v1850_v60 = vpack.c.bf16 %v2064_v51, %v2064_v51  ;;  %v2066_v61 = vadd.f32 %v1607_v57, %v1133_v47 }
 0x23a   : > { %1678 = vst.msk [vmem:[%s352_s13 + $0x8] sm:$0xf] %vm1675_vm6, %v1852_v53  ;;  %v1853_v62 = vpack.c.bf16 %v2065_v54, %v2065_v54 }
 0x23b   : > { %1676 = vst.msk [vmem:[%s352_s13] sm:$0xf] %vm1675_vm6, %v1850_v60  ;;  %v1851_v59 = vpack.c.bf16 %v2066_v61, %v2066_v61 }
 0x23c   : > { %1679 = vst.msk [vmem:[%s352_s13 + $0xc] sm:$0xf] %vm1675_vm6, %v1853_v62 }
 0x23d   : > { %1677 = vst.msk [vmem:[%s352_s13 + $0x4] sm:$0xf] %vm1675_vm6, %v1851_v59  ;;  %v2059_v63 = vpop.f32.mrb[0].mxu1 }
 0x23e   : > { %v2067_v0 = vadd.f32 %v2059_v63, %v1999_v39  ;;  %v1620_v1 = vpop.f32.mrb[1].mxu1 }
 0x23f   : > { %v2068_v4 = vadd.f32 %v1620_v1, %v1048_v40  ;;  %v2060_v41 = vpop.f32.mrb[2].mxu1 }
 0x240   : > { %v1856_v42 = vpack.c.bf16 %v2067_v0, %v2067_v0  ;;  %v2069_v5 = vadd.f32 %v2060_v41, %v2000_v43  ;;  %v1623_v6 = vpop.f32.mrb[3].mxu1 }
 0x241   : > { %v1854_v7 = vpack.c.bf16 %v2068_v4, %v2068_v4  ;;  %v2070_v9 = vadd.f32 %v1623_v6, %v1051_v44 }
 0x242   : > { %1682 = vst.msk [vmem:[%s352_s13 + $0x18] sm:$0xf] %vm1675_vm6, %v1856_v42  ;;  %v1857_v8 = vpack.c.bf16 %v2069_v5, %v2069_v5 }
 0x243   : > { %1680 = vst.msk [vmem:[%s352_s13 + $0x10] sm:$0xf] %vm1675_vm6, %v1854_v7  ;;  %v1855_v2 = vpack.c.bf16 %v2070_v9, %v2070_v9 }
 0x244   : > { %1683 = vst.msk [vmem:[%s352_s13 + $0x1c] sm:$0xf] %vm1675_vm6, %v1857_v8 }
 0x245   : > { %1681 = vst.msk [vmem:[%s352_s13 + $0x14] sm:$0xf] %vm1675_vm6, %v1855_v2 }
 0x246 PF: > { %s19_s30 = sadd.s32 1, %s2161_s30  }
 0x247   : > { %p16_p4 = scmp.ge.s32.totalorder %s19_s30, 4  }
 0x249   :  { %18 = sbr.rel (!%p16_p4) target bundleno = 1 (0x1), region = 98 }

// kernel: densenet_forward.10
= control target key start
LH: loop header
LB: loop body
LE: loop exit
PB: predicated region body
PF: predicated region fallthrough
CT: control target
= control target key end

     0   :  { %s1668_s13 = smov 0   ;;  %s1892_s0 = inlined_call_operand.vmem [shape: bf16[2,64,16], index: 0, kind: input, shape index: {}]   ;;  %s1893_s1 = inlined_call_operand.vmem [shape: bf16[2,64,8], index: 1, kind: input, shape index: {}]   ;;  %s1894_s2 = inlined_call_operand.vmem [shape: bf16[2,64,8], index: 2, kind: input, shape index: {}]   ;;  %s1895_s3 = inlined_call_operand.vmem [shape: f32[1,16], index: 3, kind: input, shape index: {}]   ;;  %s1896_s4 = inlined_call_operand.vmem [shape: f32[1,8], index: 4, kind: input, shape index: {}]   ;;  %s1897_s5 = inlined_call_operand.vmem [shape: f32[1,8], index: 5, kind: input, shape index: {}]   ;;  %s1898_s6 = inlined_call_operand.vmem [shape: f32[1,16], index: 6, kind: input, shape index: {}]   ;;  %s1899_s7 = inlined_call_operand.vmem [shape: f32[1,8], index: 7, kind: input, shape index: {}]   ;;  %s1900_s8 = inlined_call_operand.vmem [shape: f32[1,8], index: 8, kind: input, shape index: {}]   ;;  %s1901_s9 = inlined_call_operand.vmem [shape: bf16[32,16], index: 9, kind: input, shape index: {}]   ;;  %s1902_s10 = inlined_call_operand.vmem [shape: bf16[2,16,16], index: 10, kind: output, shape index: {}]  }
   0x1 LB: > { %s1370_s14 = sadd.s32 4294967295, %s1610_s13   ;;  %p1374_p0 = scmp.ge.s32.totalorder %s1610_s13, 1  ;;  %s1610_s13 = sphi %s1668_s13, %s20_s13  }
   0x2   : > { %p332_p1 = scmp.lt.s32.totalorder %s1610_s13, 3 }
   0x4   : > { %p333_p2 = pnand %p1374_p0, %p332_p1 }
   0x5   : > { %v519_v0 = vld [vmem:[%s1901_s9 + $0x8] sm:$0xf] (!%p333_p2)  ;;  %vm533_vm0 = vcmask (!%p333_p2), 1043456   ;;  %v1682_v1 = vld [vmem:[%s1901_s9] sm:$0xff] (!%p333_p2)   ;;  %p380_p3 = scmp.lt.s32.totalorder (!%p333_p2), %s1370_s14, 1  ;;  %vm520_vm1 = vcmask (!%p333_p2), 64512  }
   0x6   : > { %336 = sbr.rel (%p333_p2) target bundleno = 321 (0x141), region = 60  ;;  %1592 = vmatprep.subr.msk.bf16.mxu1 (!%p333_p2), %vm533_vm0, %v519_v0  ;;  %v535_v2 = vsel (!%p333_p2), %vm533_vm0, %v519_v0, 0  ;;  %1554 = vmatprep.subr.bf16.mxu0 (!%p333_p2), %v1682_v1  ;;  %v744_v3 = vld [vmem:[%s1901_s9 + $0xc] sm:$0xf] (!%p333_p2)  ;;  %v1708_v5 = vld [vmem:[%s1896_s4] ss:$0 sm:$0xff] (!%p333_p2) }
   0x7   : > { %1545 = vmatpush3.bf16.msra.mxu1 (!%p333_p2), %v535_v2  ;;  %1555 = vmatpush3.bf16.msra.mxu0 (!%p333_p2), %v1682_v1  ;;  %v1718_v7 = vsel (!%p333_p2), %vm533_vm0, %v744_v3, 0  ;;  %v1725_v12 = vld [vmem:[%s1895_s3] ss:$0 sm:$0xff] (!%p333_p2)  ;;  %vm608_vm2 = vcmask (!%p333_p2), 130048   ;;  %vm1250_vm3 = vcmask (!%p333_p2), 1041409   ;;  %vm1253_vm4 = vcmask (!%p333_p2), 1042434  }
   0x8   : > { %1574 = vmatprep.subr.bf16.mxu1 (!%p333_p2), %v1682_v1  ;;  %1593 = vmatprep.subr.msk.bf16.mxu0 (!%p333_p2), %vm533_vm0, %v744_v3  ;;  %v1730_v15 = vld [vmem:[%s1899_s7] ss:$0 sm:$0xff] (!%p333_p2)  ;;  %vm1256_vm5 = vcmask (!%p333_p2), 1043459   ;;  %vm1259_vm6 = vcmask (!%p333_p2), 1044484   ;;  %vm1262_vm7 = vcmask (!%p333_p2), 1045509   ;;  %vm1265_vm8 = vcmask (!%p333_p2), 1046534  }
   0x9   : > { %v1737_v22 = vld [vmem:[%s1898_s6] ss:$0 sm:$0xff] (!%p333_p2)  ;;  %vm1268_vm9 = vcmask (!%p333_p2), 1047559   ;;  %vm1288_vm10 = vcmask (!%p333_p2), 125952  }
   0xa   : > { %v1772_v57 = vld [vmem:[%s1897_s5] ss:$0 sm:$0xff] (!%p333_p2) }
   0xd   : > { %s1904_s14 = smov (!%p380_p3, %s1370_s14), 1 }
   0xe   : > { %s1696_s21 = sshll.u32 %s1904_s14, 5  ;;  %s1455_s25 = sshll.u32 %s1904_s14, 3 }
   0xf   : > { %s1702_s24 = scalar_lea.vmem %s1893_s1, %s1696_s21  ;;  %s1714_s29 = scalar_lea.vmem %s1892_s0, %s1696_s21 }
  0x10   : > { %v1489_v4 = vld [vmem:[%s1702_s24] sm:$0xff]   ;;  %v1523_v6 = vld [vmem:[%s1702_s24 + $0x8] sm:$0xff]   ;;  %v1522_v11 = vld [vmem:[%s1714_s29 + $0x18] sm:$0xff]   ;;  %s1754_s20 = scalar_lea.vmem %s1894_s2, %s1696_s21  ;;  %s1871_s27 = scalar_lea.vmem %s1902_s10, %s1455_s25 }
  0x11   : > { %v1490_v8 = vunpack.c.l.bf16 %v1489_v4  ;;  %v1491_v9 = vunpack.c.h.bf16 %v1489_v4  ;;  %v1473_v10 = vld [vmem:[%s1714_s29] sm:$0xff]   ;;  %v1494_v13 = vunpack.c.l.bf16 %v1523_v6  ;;  %v1495_v14 = vunpack.c.h.bf16 %v1523_v6  ;;  %v1520_v25 = vld [vmem:[%s1714_s29 + $0x8] sm:$0xff]   ;;  %v1524_v38 = vld [vmem:[%s1702_s24 + $0x10] sm:$0xff]  }
  0x12   : > { %v1474_v16 = vunpack.c.l.bf16 %v1473_v10  ;;  %v1475_v17 = vunpack.c.h.bf16 %v1473_v10  ;;  %v1486_v18 = vunpack.c.l.bf16 %v1522_v11  ;;  %v1487_v19 = vunpack.c.h.bf16 %v1522_v11  ;;  %v1525_v43 = vld [vmem:[%s1702_s24 + $0x18] sm:$0xff]   ;;  %v1505_v48 = vld [vmem:[%s1754_s20] sm:$0xff]   ;;  %v1526_v62 = vld [vmem:[%s1754_s20 + $0x8] sm:$0xff]  }
  0x13   : > { %v484_v20 = vmul.f32 %v1490_v8, %v1708_v5  ;;  %v485_v21 = vmul.f32 %v1491_v9, %v1708_v5  ;;  %v486_v23 = vmul.f32 %v1494_v13, %v1708_v5  ;;  %v487_v24 = vmul.f32 %v1495_v14, %v1708_v5  ;;  %v1784_v4 = vld [vmem:[%s1900_s8] ss:$0 sm:$0xff] }
  0x14   : > { %v424_v26 = vmul.f32 %v1474_v16, %v1725_v12  ;;  %v425_v27 = vmul.f32 %v1475_v17, %v1725_v12  ;;  %v1745_v28 = vmul.f32 %v1486_v18, %v1725_v12  ;;  %v1748_v29 = vmul.f32 %v1487_v19, %v1725_v12  ;;  %v1521_v17 = vld [vmem:[%s1714_s29 + $0x10] sm:$0xff]  }
  0x15   : > { %v499_v30 = vadd.f32 %v1730_v15, %v484_v20  ;;  %v500_v31 = vadd.f32 %v1730_v15, %v485_v21  ;;  %v501_v32 = vadd.f32 %v1730_v15, %v486_v23  ;;  %v502_v33 = vadd.f32 %v1730_v15, %v487_v24 }
  0x16   : > { %v439_v34 = vadd.f32 %v1737_v22, %v424_v26  ;;  %v440_v35 = vadd.f32 %v1737_v22, %v425_v27  ;;  %v1478_v36 = vunpack.c.l.bf16 %v1520_v25  ;;  %v1479_v37 = vunpack.c.h.bf16 %v1520_v25  ;;  %v1527_v25 = vld [vmem:[%s1754_s20 + $0x10] sm:$0xff]  }
  0x17   : > { %v507_v39 = vmax.f32 %v499_v30, 0.0  ;;  %v508_v40 = vmax.f32 %v500_v31, 0.0  ;;  %v509_v41 = vmax.f32 %v501_v32, 0.0  ;;  %v510_v42 = vmax.f32 %v502_v33, 0.0 }
  0x18   : > { %v447_v44 = vmax.f32 %v439_v34, 0.0  ;;  %v448_v45 = vmax.f32 %v440_v35, 0.0  ;;  %v426_v46 = vmul.f32 %v1478_v36, %v1725_v12  ;;  %v427_v47 = vmul.f32 %v1479_v37, %v1725_v12 }
  0x19   : > { %v515_v49 = vpack.c.bf16 %v508_v40, %v507_v39  ;;  %v516_v50 = vpack.c.bf16 %v510_v42, %v509_v41  ;;  %v1498_v51 = vunpack.c.l.bf16 %v1524_v38  ;;  %v1499_v52 = vunpack.c.h.bf16 %v1524_v38  ;;  %v1528_v39 = vld [vmem:[%s1754_s20 + $0x18] sm:$0xff]  }
  0x1a   : > { %v455_v53 = vpack.c.bf16 %v448_v45, %v447_v44  ;;  %v441_v54 = vadd.f32 %v1737_v22, %v426_v46  ;;  %v442_v55 = vadd.f32 %v1737_v22, %v427_v47  ;;  %v1502_v56 = vunpack.c.l.bf16 %v1525_v43 }
  0x1b   : > { %1546 = vmatprep.mubr.msk.bf16.mxu1 %vm520_vm1, %v515_v49  ;;  %v488_v58 = vmul.f32 %v1498_v51, %v1708_v5  ;;  %v489_v59 = vmul.f32 %v1499_v52, %v1708_v5  ;;  %v1503_v60 = vunpack.c.h.bf16 %v1525_v43  ;;  %v1506_v61 = vunpack.c.l.bf16 %v1505_v48 }
  0x1c   : > { %1556 = vmatprep.mubr.msk.bf16.mxu0 %vm608_vm2, %v455_v53  ;;  %1547 = vmatmul.mubr.msk.bf16.vlgmr.msra.gmra.mrb[0].mxu1 %vm520_vm1, %v516_v50  ;;  %v449_v63 = vmax.f32 %v441_v54, 0.0  ;;  %v450_v0 = vmax.f32 %v442_v55, 0.0  ;;  %v490_v2 = vmul.f32 %v1502_v56, %v1708_v5  ;;  %v1507_v3 = vunpack.c.h.bf16 %v1505_v48 }
  0x1d   : > { %1575 = vmatpush3.bf16.msra.mxu1 %v1682_v1  ;;  %v503_v6 = vadd.f32 %v1730_v15, %v488_v58  ;;  %v504_v8 = vadd.f32 %v1730_v15, %v489_v59  ;;  %v491_v9 = vmul.f32 %v1503_v60, %v1708_v5  ;;  %v709_v10 = vmul.f32 %v1506_v61, %v1772_v57 }
  0x1e   : > { %v456_v11 = vpack.c.bf16 %v450_v0, %v449_v63  ;;  %v505_v13 = vadd.f32 %v1730_v15, %v490_v2  ;;  %v710_v14 = vmul.f32 %v1507_v3, %v1772_v57  ;;  %v1510_v16 = vunpack.c.l.bf16 %v1526_v62 }
  0x1f   : > { %v511_v18 = vmax.f32 %v503_v6, 0.0  ;;  %v512_v19 = vmax.f32 %v504_v8, 0.0  ;;  %v506_v1 = vadd.f32 %v1730_v15, %v491_v9  ;;  %v724_v20 = vadd.f32 %v1784_v4, %v709_v10 }
  0x20   : > { %1557 = vmatmul.mubr.msk.bf16.vlgmr.msra.gmra.mrb[0].mxu0 %vm608_vm2, %v456_v11  ;;  %v513_v21 = vmax.f32 %v505_v13, 0.0  ;;  %v725_v5 = vadd.f32 %v1784_v4, %v710_v14  ;;  %v1511_v23 = vunpack.c.h.bf16 %v1526_v62  ;;  %v711_v24 = vmul.f32 %v1510_v16, %v1772_v57 }
  0x21   : > { %1565 = vmatpush3.bf16.msra.mxu0 %v1718_v7  ;;  %v517_v26 = vpack.c.bf16 %v512_v19, %v511_v18  ;;  %v514_v27 = vmax.f32 %v506_v1, 0.0  ;;  %v732_v30 = vmax.f32 %v724_v20, 0.0  ;;  %v1482_v31 = vunpack.c.l.bf16 %v1521_v17 }
  0x22   : > { %v733_v32 = vmax.f32 %v725_v5, 0.0  ;;  %v712_v15 = vmul.f32 %v1511_v23, %v1772_v57  ;;  %v726_v33 = vadd.f32 %v1784_v4, %v711_v24  ;;  %v1483_v34 = vunpack.c.h.bf16 %v1521_v17 }
  0x23   : > { %1550 = vmatprep.mubr.msk.bf16.mxu1 %vm520_vm1, %v517_v26  ;;  %v518_v35 = vpack.c.bf16 %v514_v27, %v513_v21  ;;  %v428_v36 = vmul.f32 %v1482_v31, %v1725_v12  ;;  %v1514_v37 = vunpack.c.l.bf16 %v1527_v25  ;;  %v1515_v38 = vunpack.c.h.bf16 %v1527_v25 }
  0x24   : > { %v740_v40 = vpack.c.bf16 %v733_v32, %v732_v30  ;;  %v727_v7 = vadd.f32 %v1784_v4, %v712_v15  ;;  %v734_v41 = vmax.f32 %v726_v33, 0.0  ;;  %v429_v42 = vmul.f32 %v1483_v34, %v1725_v12 }
  0x25   : > { %1551 = vmatmul.mubr.msk.bf16.gmra.mrb[4].mxu1 %vm520_vm1, %v518_v35  ;;  %v443_v43 = vadd.f32 %v1737_v22, %v428_v36  ;;  %v713_v44 = vmul.f32 %v1514_v37, %v1772_v57  ;;  %v714_v45 = vmul.f32 %v1515_v38, %v1772_v57  ;;  %v445_v46 = vadd.f32 %v1737_v22, %v1745_v28 }
  0x26   : > { %1566 = vmatprep.mubr.msk.bf16.mxu0 %vm520_vm1, %v740_v40  ;;  %v735_v47 = vmax.f32 %v727_v7, 0.0  ;;  %v444_v48 = vadd.f32 %v1737_v22, %v429_v42  ;;  %v446_v49 = vadd.f32 %v1737_v22, %v1748_v29  ;;  %v1518_v12 = vunpack.c.l.bf16 %v1528_v39 }
  0x27   : > { %v451_v50 = vmax.f32 %v443_v43, 0.0  ;;  %v728_v51 = vadd.f32 %v1784_v4, %v713_v44  ;;  %v729_v52 = vadd.f32 %v1784_v4, %v714_v45  ;;  %v453_v55 = vmax.f32 %v445_v46, 0.0 }
  0x28   : > { %v741_v53 = vpack.c.bf16 %v735_v47, %v734_v41  ;;  %v452_v54 = vmax.f32 %v444_v48, 0.0  ;;  %v1519_v56 = vunpack.c.h.bf16 %v1528_v39  ;;  %v454_v59 = vmax.f32 %v446_v49, 0.0 }
  0x29   : > { %v736_v58 = vmax.f32 %v728_v51, 0.0  ;;  %v737_v28 = vmax.f32 %v729_v52, 0.0  ;;  %v715_v60 = vmul.f32 %v1518_v12, %v1772_v57  ;;  %v1612_v11 = vmov 1983009808  }
  0x2a   : > { %v457_v61 = vpack.c.bf16 %v452_v54, %v451_v50  ;;  %v716_v62 = vmul.f32 %v1519_v56, %v1772_v57  ;;  %v458_v0 = vpack.c.bf16 %v454_v59, %v453_v55  ;;  %v843_v13 = vunpack.c.l.s4 %v1612_v11 }
  0x2b   : > { %v742_v63 = vpack.c.bf16 %v737_v28, %v736_v58  ;;  %v730_v22 = vadd.f32 %v1784_v4, %v715_v60  ;;  %v845_v14 = vlaneseq }
  0x2c   : > { %1567 = vmatmul.mubr.msk.bf16.vlgmr.msra.gmra.mrb[0].mxu0 %vm520_vm1, %v741_v53  ;;  %1560 = vmatprep.mubr.msk.bf16.mxu1 %vm608_vm2, %v457_v61  ;;  %v731_v29 = vadd.f32 %v1784_v4, %v716_v62  ;;  %v844_v16 = vunpack.c.0.s8 %v843_v13 }
  0x2d   : > { %1570 = vmatprep.mubr.msk.bf16.mxu0 %vm520_vm1, %v742_v63  ;;  %v738_v2 = vmax.f32 %v730_v22, 0.0  ;;  %v846_v17 = vshrl.u32 %v845_v14, 7 }
  0x2e   : > { %v739_v3 = vmax.f32 %v731_v29, 0.0 }
  0x2f   : > { %v1829_v4 = vsub.s32 %v844_v16, %v846_v17 }
  0x30   : > { %v743_v6 = vpack.c.bf16 %v739_v3, %v738_v2 }
  0x31   : > { %1561 = vmatmul.mubr.msk.bf16.vlgmr.msra.gmra.mrb[4].mxu1 %vm608_vm2, %v458_v0 }
  0x34   : > { %1571 = vmatmul.mubr.msk.bf16.gmra.mrb[4].mxu0 %vm520_vm1, %v743_v6 }
  0xef   : > { %v1548_v57 = vpop.f32.mrb[0].mxu1 }
  0xf0   : > { %v571_v8 = vpop.f32.mrb[1].mxu1 }
  0xf1   : > { %v1549_v9 = vpop.f32.mrb[2].mxu1 }
  0xf2   : > { %v574_v10 = vpop.f32.mrb[3].mxu1 }
  0xff   : > { %v1568_v18 = vpop.f32.mrb[0].mxu0 }
 0x100   : > { %v1576_v19 = vadd.f32 %v1568_v18, %v1548_v57  ;;  %v794_v1 = vpop.f32.mrb[1].mxu0 }
 0x101   : > { %v1577_v20 = vadd.f32 %v794_v1, %v571_v8  ;;  %v1569_v21 = vpop.f32.mrb[2].mxu0 }
 0x102   : > { %v875_v5 = vcombine.high %v1576_v19, %v1576_v19  ;;  %v882_v23 = vrot.slane %v1576_v19, %v1829_v4  ;;  %v1578_v24 = vadd.f32 %v1569_v21, %v1549_v9  ;;  %v797_v25 = vpop.f32.mrb[3].mxu0 }
 0x103   : > { %v841_v26 = vcombine.high %v1577_v20, %v1577_v20  ;;  %v848_v27 = vrot.slane %v1577_v20, %v1829_v4  ;;  %v1579_v30 = vadd.f32 %v797_v25, %v574_v10 }
 0x104   : > { %v889_v31 = vrot.slane %v875_v5, %v1829_v4  ;;  %v890_v32 = vcombine.high %v882_v23, %v882_v23  ;;  %v1410_v15 = vrot.slane %v882_v23, 9  ;;  %v892_v33 = vcombine.high %v1578_v24, %v1578_v24  ;;  %v1562_v34 = vpop.f32.mrb[4].mxu1 }
 0x105   : > { %v855_v35 = vrot.slane %v841_v26, %v1829_v4  ;;  %v856_v36 = vcombine.high %v848_v27, %v848_v27  ;;  %v1402_v37 = vrot.slane %v848_v27, 9  ;;  %v899_v38 = vrot.slane %v1578_v24, %v1829_v4  ;;  %v1836_v39 = vpop.f32.mrb[5].mxu1 }
 0x106   : > { %v891_v40 = vcombine.high %v889_v31, %v889_v31  ;;  %v1411_v7 = vrot.slane %v890_v32, 9  ;;  %v1412_v41 = vrot.slane %v889_v31, 9  ;;  %v1838_v42 = vpop.f32.mrb[6].mxu1  ;;  %v1113_v46 = vadd.f32 %v1410_v15, %v882_v23 }
 0x107   : > { %v857_v43 = vcombine.high %v855_v35, %v855_v35  ;;  %v1572_v44 = vpop.f32.mrb[4].mxu0  ;;  %v1840_v45 = vpop.f32.mrb[7].mxu1  ;;  %v1403_v47 = vrot.slane %v856_v36, 9  ;;  %v1404_v48 = vrot.slane %v855_v35, 9  ;;  %v906_v49 = vrot.slane %v892_v33, %v1829_v4 }
 0x108   : > { %v1843_v12 = vpop.f32.mrb[5].mxu0  ;;  %v1413_v50 = vrot.slane %v891_v40, 9  ;;  %v1114_v51 = vadd.f32 %v1411_v7, %v890_v32  ;;  %v1105_v52 = vadd.f32 %v1402_v37, %v848_v27  ;;  %v907_v53 = vcombine.high %v899_v38, %v899_v38 }
 0x109   : > { %v1845_v54 = vpop.f32.mrb[6].mxu0  ;;  %v1115_v55 = vadd.f32 %v1412_v41, %v889_v31  ;;  %v908_v56 = vcombine.high %v906_v49, %v906_v49  ;;  %v1414_v58 = vrot.slane %v899_v38, 9  ;;  %v1416_v28 = vrot.slane %v906_v49, 9 }
 0x10a   : > { %v1847_v59 = vpop.f32.mrb[7].mxu0  ;;  %v1405_v60 = vrot.slane %v857_v43, 9  ;;  %v1415_v61 = vrot.slane %v907_v53, 9  ;;  %v858_v62 = vcombine.high %v1579_v30, %v1579_v30  ;;  %v865_v63 = vrot.slane %v1579_v30, %v1829_v4 }
 0x10b   : > { %v1417_v22 = vrot.slane %v908_v56, 9  ;;  %v1117_v29 = vadd.f32 %v1414_v58, %v899_v38  ;;  %v1119_v0 = vadd.f32 %v1416_v28, %v906_v49  ;;  %v1580_v2 = vadd.f32 %v1572_v44, %v1562_v34 }
 0x10c   : > { %v1118_v3 = vadd.f32 %v1415_v61, %v907_v53  ;;  %v872_v6 = vrot.slane %v858_v62, %v1829_v4  ;;  %v873_v57 = vcombine.high %v865_v63, %v865_v63  ;;  %v1406_v8 = vrot.slane %v865_v63, 9 }
 0x10d   : > { %v1116_v9 = vadd.f32 %v1413_v50, %v891_v40  ;;  %v1120_v10 = vadd.f32 %v1417_v22, %v908_v56  ;;  %v1141_v11 = vadd.f32 %v1117_v29, %v1113_v46  ;;  %v1143_v13 = vadd.f32 %v1119_v0, %v1115_v55 }
 0x10e   : > { %v1142_v14 = vadd.f32 %v1118_v3, %v1114_v51  ;;  %v874_v16 = vcombine.high %v872_v6, %v872_v6  ;;  %v1407_v17 = vrot.slane %v873_v57, 9  ;;  %v1408_v18 = vrot.slane %v872_v6, 9 }
 0x10f   : > { %v1106_v19 = vadd.f32 %v1403_v47, %v856_v36  ;;  %v1144_v1 = vadd.f32 %v1120_v10, %v1116_v9  ;;  %v1157_v20 = vmul.f32 0.25, %v1141_v11  ;;  %v1109_v21 = vadd.f32 %v1406_v8, %v865_v63 }
 0x110   : > { %v1107_v5 = vadd.f32 %v1404_v48, %v855_v35  ;;  %v1409_v23 = vrot.slane %v874_v16, 9  ;;  %v1110_v24 = vadd.f32 %v1407_v17, %v873_v57  ;;  %v1111_v25 = vadd.f32 %v1408_v18, %v872_v6 }
 0x111   : > { %v1158_v26 = vmul.f32 0.25, %v1142_v14  ;;  %v1159_v27 = vmul.f32 0.25, %v1143_v13  ;;  %v1137_v30 = vadd.f32 %v1109_v21, %v1105_v52  ;;  %v1108_v31 = vadd.f32 %v1405_v60, %v857_v43 }
 0x112   : > { %v1112_v32 = vadd.f32 %v1409_v23, %v874_v16  ;;  %v1138_v15 = vadd.f32 %v1110_v24, %v1106_v19  ;;  %v1139_v33 = vadd.f32 %v1111_v25, %v1107_v5  ;;  %v1160_v34 = vmul.f32 0.25, %v1144_v1 }
 0x113   : > { %v1460_v37 = vpack.c.bf16 %v1157_v20, %v1157_v20  ;;  %v1153_v38 = vmul.f32 0.25, %v1137_v30  ;;  %v943_v36 = vcombine.high %v1580_v2, %v1580_v2  ;;  %v1461_v35 = vpack.c.bf16 %v1158_v26, %v1158_v26 }
 0x114   : > { %v1140_v40 = vadd.f32 %v1112_v32, %v1108_v31  ;;  %v1154_v7 = vmul.f32 0.25, %v1138_v15  ;;  %v1155_v41 = vmul.f32 0.25, %v1139_v33  ;;  %v1462_v44 = vpack.c.bf16 %v1159_v27, %v1159_v27 }
 0x115   : > { %v1456_v46 = vpack.c.bf16 %v1153_v38, %v1153_v38  ;;  %v1463_v43 = vpack.c.bf16 %v1160_v34, %v1160_v34  ;;  %v1237_v50 = vunpack.c.l.b16 %v1460_v37  ;;  %v950_v51 = vrot.slane %v1580_v2, %v1829_v4 }
 0x116   : > { %v1156_v47 = vmul.f32 0.25, %v1140_v40  ;;  %v1457_v48 = vpack.c.bf16 %v1154_v7, %v1154_v7  ;;  %v1458_v49 = vpack.c.bf16 %v1155_v41, %v1155_v41  ;;  %v957_v52 = vrot.slane %v943_v36, %v1829_v4 }
 0x117   : > { %v1581_v58 = vadd.f32 %v1843_v12, %v1836_v39  ;;  %v1238_v28 = vunpack.c.l.b16 %v1461_v35  ;;  %v1239_v60 = vunpack.c.l.b16 %v1462_v44  ;;  %v1233_v61 = vunpack.c.l.b16 %v1456_v46 }
 0x118   : > { %v1459_v53 = vpack.c.bf16 %v1156_v47, %v1156_v47  ;;  %v1234_v55 = vunpack.c.l.b16 %v1457_v48  ;;  %v1235_v56 = vunpack.c.l.b16 %v1458_v49  ;;  %v958_v29 = vcombine.high %v950_v51, %v950_v51 }
 0x119   : > { %v1240_v0 = vunpack.c.l.b16 %v1463_v43  ;;  %v1258_v3 = vrot.slane %v1237_v50, 4  ;;  %v959_v57 = vcombine.high %v957_v52, %v957_v52  ;;  %v1426_v8 = vrot.slane %v950_v51, 9 }
 0x11a   : > { %v1236_v62 = vunpack.c.l.b16 %v1459_v53  ;;  %v1249_v63 = vrot.slane %v1234_v55, 7  ;;  %v1252_v22 = vrot.slane %v1235_v56, 6  ;;  %v1264_v9 = vrot.slane %v1239_v60, 2 }
 0x11b   : > { %v909_v12 = vcombine.high %v1581_v58, %v1581_v58  ;;  %v1582_v10 = vadd.f32 %v1845_v54, %v1838_v42  ;;  %v1261_v11 = vrot.slane %v1238_v28, 3  ;;  %v1427_v14 = vrot.slane %v958_v29, 9 }
 0x11c   : > { %v1251_v2 = vsel %vm1250_vm3, %v1249_v63, %v1233_v61  ;;  %v1255_v6 = vrot.slane %v1236_v62, 5  ;;  %v1428_v16 = vrot.slane %v957_v52, 9  ;;  %v1267_v17 = vrot.slane %v1240_v0, 1 }
 0x11d   : > { %v1254_v39 = vsel %vm1253_vm4, %v1252_v22, %v1251_v2  ;;  %v960_v19 = vcombine.high %v1582_v10, %v1582_v10  ;;  %v967_v1 = vrot.slane %v1582_v10, %v1829_v4  ;;  %v1429_v21 = vrot.slane %v959_v57, 9 }
 0x11e   : > { %v1257_v13 = vsel %vm1256_vm5, %v1255_v6, %v1254_v39  ;;  %v1129_v5 = vadd.f32 %v1426_v8, %v950_v51  ;;  %v916_v23 = vrot.slane %v1581_v58, %v1829_v4  ;;  %v923_v54 = vrot.slane %v909_v12, %v1829_v4 }
 0x11f   : > { %v1260_v18 = vsel %vm1259_vm6, %v1258_v3, %v1257_v13  ;;  %v974_v24 = vrot.slane %v960_v19, %v1829_v4  ;;  %v975_v25 = vcombine.high %v967_v1, %v967_v1  ;;  %v1130_v27 = vadd.f32 %v1427_v14, %v958_v29 }
 0x120   : > { %v1263_v20 = vsel %vm1262_vm7, %v1261_v11, %v1260_v18  ;;  %v1131_v30 = vadd.f32 %v1428_v16, %v957_v52  ;;  %v1430_v31 = vrot.slane %v967_v1, 9  ;;  %v1132_v37 = vadd.f32 %v1429_v21, %v959_v57 }
 0x121   : > { %v1266_v42 = vsel %vm1265_vm8, %v1264_v9, %v1263_v20  ;;  %v976_v15 = vcombine.high %v974_v24, %v974_v24  ;;  %v1431_v33 = vrot.slane %v975_v25, 9  ;;  %v1432_v34 = vrot.slane %v974_v24, 9 }
 0x122   : > { %v1269_v26 = vsel %vm1268_vm9, %v1267_v17, %v1266_v42  ;;  %v924_v38 = vcombine.high %v916_v23, %v916_v23  ;;  %v1133_v36 = vadd.f32 %v1430_v31, %v967_v1  ;;  %v1583_v40 = vadd.f32 %v1847_v59, %v1840_v45 }
 0x123   : > { %v1284_v32 = vpack.c.b16 %v1269_v26, %v1269_v26  ;;  %v925_v7 = vcombine.high %v923_v54, %v923_v54  ;;  %v1433_v41 = vrot.slane %v976_v15, 9  ;;  %v1134_v35 = vadd.f32 %v1431_v33, %v975_v25 }
 0x124   : > { %v1135_v44 = vadd.f32 %v1432_v34, %v974_v24  ;;  %v1418_v46 = vrot.slane %v916_v23, 9  ;;  %v1149_v47 = vadd.f32 %v1133_v36, %v1129_v5  ;;  %v926_v48 = vcombine.high %v1583_v40, %v1583_v40 }
 0x125   : > { %1289 = vst.msk [vmem:[%s1871_s27] sm:$0xf] %vm1288_vm10, %v1284_v32  ;;  %v933_v49 = vrot.slane %v1583_v40, %v1829_v4  ;;  %v1420_v43 = vrot.slane %v923_v54, 9  ;;  %v1136_v50 = vadd.f32 %v1433_v41, %v976_v15  ;;  %v1150_v51 = vadd.f32 %v1134_v35, %v1130_v27 }
 0x126   : > { %v1151_v52 = vadd.f32 %v1135_v44, %v1131_v30  ;;  %v1419_v53 = vrot.slane %v924_v38, 9  ;;  %v940_v55 = vrot.slane %v926_v48, %v1829_v4  ;;  %v1421_v58 = vrot.slane %v925_v7, 9 }
 0x127   : > { %v941_v56 = vcombine.high %v933_v49, %v933_v49  ;;  %v1422_v45 = vrot.slane %v933_v49, 9  ;;  %v1152_v59 = vadd.f32 %v1136_v50, %v1132_v37  ;;  %v1121_v62 = vadd.f32 %v1418_v46, %v916_v23 }
 0x128   : > { %v942_v28 = vcombine.high %v940_v55, %v940_v55  ;;  %v1424_v61 = vrot.slane %v940_v55, 9  ;;  %v1123_v63 = vadd.f32 %v1420_v43, %v923_v54  ;;  %v1122_v29 = vadd.f32 %v1419_v53, %v924_v38 }
 0x129   : > { %v1423_v60 = vrot.slane %v941_v56, 9  ;;  %v1125_v22 = vadd.f32 %v1422_v45, %v933_v49  ;;  %v1165_v6 = vmul.f32 0.25, %v1149_v47  ;;  %v1166_v57 = vmul.f32 0.25, %v1150_v51 }
 0x12a   : > { %v1425_v0 = vrot.slane %v942_v28, 9  ;;  %v1127_v2 = vadd.f32 %v1424_v61, %v940_v55  ;;  %v1124_v9 = vadd.f32 %v1421_v58, %v925_v7  ;;  %v1167_v10 = vmul.f32 0.25, %v1151_v52 }
 0x12b   : > { %v1126_v3 = vadd.f32 %v1423_v60, %v941_v56  ;;  %v1145_v8 = vadd.f32 %v1125_v22, %v1121_v62  ;;  %v1168_v13 = vmul.f32 0.25, %v1152_v59  ;;  %v1468_v18 = vpack.c.bf16 %v1165_v6, %v1165_v6 }
 0x12c   : > { %v1128_v39 = vadd.f32 %v1425_v0, %v942_v28  ;;  %v1147_v12 = vadd.f32 %v1127_v2, %v1123_v63  ;;  %v1469_v19 = vpack.c.bf16 %v1166_v57, %v1166_v57  ;;  %v1470_v23 = vpack.c.bf16 %v1167_v10, %v1167_v10 }
 0x12d   : > { %v1146_v4 = vadd.f32 %v1126_v3, %v1122_v29  ;;  %v1161_v11 = vmul.f32 0.25, %v1145_v8  ;;  %v1471_v42 = vpack.c.bf16 %v1168_v13, %v1168_v13  ;;  %v1245_v26 = vunpack.c.l.b16 %v1468_v18 }
 0x12e   : > { %v1148_v14 = vadd.f32 %v1128_v39, %v1124_v9  ;;  %v1163_v17 = vmul.f32 0.25, %v1147_v12  ;;  %v1246_v27 = vunpack.c.l.b16 %v1469_v19  ;;  %v1247_v33 = vunpack.c.l.b16 %v1470_v23 }
 0x12f   : > { %v1162_v16 = vmul.f32 0.25, %v1146_v4  ;;  %v1464_v20 = vpack.c.bf16 %v1161_v11, %v1161_v11  ;;  %v1248_v34 = vunpack.c.l.b16 %v1471_v42  ;;  %v1276_v36 = vrot.slane %v1245_v26, 4 }
 0x130   : > { %v1164_v1 = vmul.f32 0.25, %v1148_v14  ;;  %v1466_v5 = vpack.c.bf16 %v1163_v17, %v1163_v17  ;;  %v1278_v7 = vrot.slane %v1246_v27, 3  ;;  %v1280_v35 = vrot.slane %v1247_v33, 2 }
 0x131   : > { %v1465_v21 = vpack.c.bf16 %v1162_v16, %v1162_v16  ;;  %v1241_v30 = vunpack.c.l.b16 %v1464_v20  ;;  %v1282_v46 = vrot.slane %v1248_v34, 1 }
 0x132   : > { %v1467_v54 = vpack.c.bf16 %v1164_v1, %v1164_v1  ;;  %v1243_v25 = vunpack.c.l.b16 %v1466_v5 }
 0x133   : > { %v1242_v24 = vunpack.c.l.b16 %v1465_v21 }
 0x134   : > { %v1244_v31 = vunpack.c.l.b16 %v1467_v54  ;;  %v1272_v15 = vrot.slane %v1243_v25, 6 }
 0x135   : > { %v1270_v32 = vrot.slane %v1242_v24, 7 }
 0x136   : > { %v1274_v38 = vrot.slane %v1244_v31, 5 }
 0x137   : > { %v1271_v37 = vsel %vm1250_vm3, %v1270_v32, %v1241_v30 }
 0x138   : > { %v1273_v40 = vsel %vm1253_vm4, %v1272_v15, %v1271_v37 }
 0x139   : > { %v1275_v41 = vsel %vm1256_vm5, %v1274_v38, %v1273_v40 }
 0x13a   : > { %v1277_v44 = vsel %vm1259_vm6, %v1276_v36, %v1275_v41 }
 0x13b   : > { %v1279_v47 = vsel %vm1262_vm7, %v1278_v7, %v1277_v44 }
 0x13c   : > { %v1281_v48 = vsel %vm1265_vm8, %v1280_v35, %v1279_v47 }
 0x13d   : > { %v1283_v49 = vsel %vm1268_vm9, %v1282_v46, %v1281_v48 }
 0x13e   : > { %v1285_v43 = vpack.c.b16 %v1283_v49, %v1283_v49 }
 0x140   : > { %1290 = vst.msk [vmem:[%s1871_s27 + $0x4] sm:$0xf] %vm1288_vm10, %v1285_v43 }
 0x141 PF: > { %s20_s13 = sadd.s32 1, %s1610_s13  }
 0x142   : > { %p17_p4 = scmp.ge.s32.totalorder %s20_s13, 4  }
 0x144   :  { %19 = sbr.rel (!%p17_p4) target bundleno = 1 (0x1), region = 96 }

// kernel: densenet_forward.11
= control target key start
LH: loop header
LB: loop body
LE: loop exit
PB: predicated region body
PF: predicated region fallthrough
CT: control target
= control target key end

     0   :  { %s1284_s21 = smov 0   ;;  %s1476_s0 = inlined_call_operand.vmem [shape: bf16[2,16,16], index: 0, kind: input, shape index: {}]   ;;  %s1477_s1 = inlined_call_operand.vmem [shape: f32[1,16], index: 1, kind: input, shape index: {}]   ;;  %s1478_s2 = inlined_call_operand.vmem [shape: f32[1,16], index: 2, kind: input, shape index: {}]   ;;  %s1479_s3 = inlined_call_operand.vmem [shape: bf16[16,16], index: 3, kind: input, shape index: {}]   ;;  %s1480_s4 = inlined_call_operand.vmem [shape: f32[1,16], index: 4, kind: input, shape index: {}]   ;;  %s1481_s5 = inlined_call_operand.vmem [shape: bf16[9,16,8], index: 5, kind: input, shape index: {}]   ;;  %s1482_s6 = inlined_call_operand.vmem [shape: bf16[2,16,8], index: 6, kind: output, shape index: {}]  }
   0x1 LB: > { %s1026_s22 = sadd.s32 4294967295, %s1245_s21   ;;  %p1030_p0 = scmp.ge.s32.totalorder %s1245_s21, 1  ;;  %s1245_s21 = sphi %s1284_s21, %s16_s21  }
   0x2   : > { %p212_p1 = scmp.lt.s32.totalorder %s1245_s21, 3 }
   0x4   : > { %p213_p2 = pnand %p1030_p0, %p212_p1 }
   0x5   : > { %v1218_v0 = vld [vmem:[%s1479_s3] sm:$0xff] (!%p213_p2)   ;;  %v1247_v1 = vmov (!%p213_p2), 0.0   ;;  %p242_p3 = scmp.lt.s32.totalorder (!%p213_p2), %s1026_s22, 1  ;;  %vm1248_vm0 = vmmov (!%p213_p2), 0   ;;  %vm293_vm1 = vcmask (!%p213_p2), 130048   ;;  %vm340_vm2 = vcmask (!%p213_p2), 128000  }
   0x6   : > { %216 = sbr.rel (%p213_p2) target bundleno = 531 (0x213), region = 44  ;;  %1118 = vmatprep.subr.bf16.mxu0 (!%p213_p2), %v1247_v1  ;;  %1148 = vmatprep.subr.bf16.mxu1 (!%p213_p2), %v1247_v1  ;;  %v1035_v2 = vld [vmem:[%s1477_s1] ss:$0 sm:$0xff] (!%p213_p2)  ;;  %341 = vst.msk [vmem:[#allocation2] sm:$0x3f] (!%p213_p2), %vm340_vm2, %v1247_v1  ;;  %v1219_v14 = vld [vmem:[%s1481_s5 + $0x8] sm:$0xff] (!%p213_p2)  }
   0x7   : > { %1119 = vmatpush3.bf16.msra.mxu0 (!%p213_p2), %v1218_v0  ;;  %1120 = vmatprep.mubr.msk.bf16.mxu0 (!%p213_p2), %vm1248_vm0, %v1247_v1  ;;  %v1036_v6 = vld [vmem:[%s1478_s2] ss:$0 sm:$0xff] (!%p213_p2)  ;;  %342 = vst.msk [vmem:[#allocation2 + $0x8] sm:$0x3f] (!%p213_p2), %vm340_vm2, %v1247_v1  ;;  %343 = vst.msk [vmem:[#allocation2 + $0x10] sm:$0x3f] (!%p213_p2), %vm340_vm2, %v1247_v1 }
   0x8   : > { %1124 = vmatprep.subr.bf16.mxu0 (!%p213_p2), %v1247_v1  ;;  %1150 = vmatprep.mubr.msk.bf16.mxu1 (!%p213_p2), %vm1248_vm0, %v1247_v1  ;;  %346 = vst.msk [vmem:[#allocation2 + $0x28] sm:$0x3f] (!%p213_p2), %vm340_vm2, %v1247_v1  ;;  %344 = vst.msk [vmem:[#allocation2 + $0x18] sm:$0x3f] (!%p213_p2), %vm340_vm2, %v1247_v1  ;;  %v1220_v15 = vld [vmem:[%s1481_s5 + $0x20] sm:$0xff] (!%p213_p2)   ;;  %vm354_vm3 = vcmask (!%p213_p2), 125952  }
   0x9   : > { %345 = vst.msk [vmem:[#allocation2 + $0x20] sm:$0x3f] (!%p213_p2), %vm340_vm2, %v1247_v1  ;;  %1149 = vmatpush3.bf16.msra.mxu1 (!%p213_p2), %v1220_v15  ;;  %v1037_v16 = vld [vmem:[%s1480_s4] ss:$0 sm:$0xff] (!%p213_p2)  ;;  %vm380_vm4 = vcmask (!%p213_p2), 1042432   ;;  %vm381_vm5 = vcmask (!%p213_p2), 1046532  }
   0xa   : > { %1154 = vmatprep.subr.bf16.mxu1 (!%p213_p2), %v1247_v1  ;;  %vm1348_vm6 = vmor (!%p213_p2), %vm380_vm4, %vm381_vm5  ;;  %v1228_v55 = vld [vmem:[%s1481_s5] sm:$0xff] (!%p213_p2)   ;;  %v1227_v59 = vld [vmem:[%s1481_s5 + $0x28] sm:$0xff] (!%p213_p2)   ;;  %vm507_vm7 = vcmask (!%p213_p2), 1041408   ;;  %vm508_vm8 = vcmask (!%p213_p2), 1045508   ;;  %vm968_vm10 = vcmask (!%p213_p2), 60416  }
   0xb   : > { %vm1399_vm9 = vmor (!%p213_p2), %vm507_vm7, %vm508_vm8 }
   0xd   : > { %s1488_s22 = smov (!%p242_p3, %s1026_s22), 1  ;;  %v1336_v26 = vld [vmem:[#allocation2] sm:$0x3f] }
   0xe   : > { %s1090_s25 = sshll.u32 %s1488_s22, 3  ;;  %v1340_v28 = vcombine.high %v1336_v26, %v1336_v26  ;;  %v1040_v30 = vrot.slane %v1336_v26, 9 }
   0xf   : > { %s246_s30 = scalar_lea.vmem %s1476_s0, %s1090_s25  ;;  %s251_s10 = scalar_lea.vmem %s1482_s6, %s1090_s25 }
  0x10   : > { %v1095_v3 = vld [vmem:[%s246_s30] sm:$0xff]   ;;  %v385_v31 = vrot.slane %v1340_v28, 5 }
  0x11   : > { %v1096_v4 = vunpack.c.l.bf16 %v1095_v3  ;;  %v1097_v5 = vunpack.c.h.bf16 %v1095_v3 }
  0x12   : > { %v386_v40 = vsel %vm1348_vm6, %v1040_v30, %v385_v31  ;;  %v1234_v30 = vld [vmem:[%s1481_s5 + $0x38] sm:$0xff]  }
  0x13   : > { %v264_v7 = vmul.f32 %v1096_v4, %v1035_v2  ;;  %v265_v8 = vmul.f32 %v1097_v5, %v1035_v2 }
  0x15   : > { %v273_v9 = vadd.f32 %v1036_v6, %v264_v7  ;;  %v274_v10 = vadd.f32 %v1036_v6, %v265_v8 }
  0x17   : > { %v275_v11 = vmax.f32 %v273_v9, 0.0  ;;  %v276_v12 = vmax.f32 %v274_v10, 0.0 }
  0x19   : > { %v277_v13 = vpack.c.bf16 %v276_v12, %v275_v11 }
  0x1b   : > { %1121 = vmatmul.mubr.msk.bf16.vlgmr.msra.gmra.mrb[0].mxu0 %vm293_vm1, %v277_v13 }
  0x1c   : > { %1126 = vmatprep.mubr.msk.bf16.mxu0 %vm1248_vm0, %v1247_v1  ;;  %1125 = vmatpush3.bf16.msra.mxu0 %v1219_v14  ;;  %v1232_v14 = vld [vmem:[%s1481_s5 + $0x10] sm:$0xff]  }
  0x1d   : > { %1130 = vmatprep.subr.bf16.mxu0 %v1247_v1 }
  0xee   : > { %v331_v17 = vpop.f32.mrb[0].mxu0 }
  0xef   : > { %v332_v18 = vadd.f32 %v1037_v16, %v331_v17  ;;  %v1122_v19 = vpop.f32.mrb[1].mxu0  ;;  %v1231_v17 = vld [vmem:[%s1481_s5 + $0x30] sm:$0xff]  }
  0xf0   : > { %v334_v20 = vpop.f32.mrb[2].mxu0  ;;  %v1050_v19 = vrot.slane %v1336_v26, 10 }
  0xf1   : > { %v338_v21 = vmax.f32 %v332_v18, 0.0  ;;  %v335_v22 = vadd.f32 %v1037_v16, %v334_v20  ;;  %v1123_v23 = vpop.f32.mrb[3].mxu0  ;;  %v512_v20 = vrot.slane %v1340_v28, 6 }
  0xf3   : > { %v349_v24 = vcombine.high %v338_v21, %v338_v21  ;;  %355 = vst.msk [vmem:[#allocation2 + $0x9] sm:$0xf] %vm354_vm3, %v338_v21  ;;  %v339_v25 = vmax.f32 %v335_v22, 0.0  ;;  %v364_v21 = vld [vmem:[#allocation2 + $0x28] sm:$0x3f]  ;;  %v513_v22 = vsel %vm1399_vm9, %v1050_v19, %v512_v20 }
  0xf5   : > { %356 = vst.msk [vmem:[#allocation2 + $0x11] sm:$0xf] %vm354_vm3, %v349_v24  ;;  %v350_v27 = vcombine.high %v339_v25, %v339_v25  ;;  %357 = vst.msk [vmem:[#allocation2 + $0x19] sm:$0xf] %vm354_vm3, %v339_v25 }
  0xf7   : > { %358 = vst.msk [vmem:[#allocation2 + $0x21] sm:$0xf] %vm354_vm3, %v350_v27  ;;  %v1235_v27 = vld [vmem:[%s1481_s5 + $0x18] sm:$0xff]  }
  0xfa   : > { %v1342_v29 = vld [vmem:[#allocation2 + $0x8] sm:$0x3f] }
  0xfb   : > { %v377_v32 = vcombine.high %v1342_v29, %v1342_v29  ;;  %v1041_v38 = vrot.slane %v1342_v29, 9  ;;  %v1051_v8 = vrot.slane %v1342_v29, 10  ;;  %v369_v11 = vcombine.low %v1336_v26, %v1342_v29 }
  0xfc   : > { %v1352_v34 = vld [vmem:[#allocation2 + $0x10] sm:$0x3f]  ;;  %v1354_v35 = vld [vmem:[#allocation2 + $0x18] sm:$0x3f]  ;;  %v835_v26 = vcombine.high %v364_v21, %v364_v21 }
  0xfd   : > { %v378_v36 = vcombine.high %v1352_v34, %v1352_v34  ;;  %v379_v37 = vcombine.high %v1354_v35, %v1354_v35  ;;  %v389_v39 = vrot.slane %v377_v32, 5  ;;  %v1042_v41 = vrot.slane %v1352_v34, 9 }
  0xfe   : > { %v1043_v42 = vrot.slane %v1354_v35, 9  ;;  %v1365_v43 = vld [vmem:[#allocation2 + $0x20] sm:$0x3f]  ;;  %v516_v3 = vrot.slane %v377_v32, 6  ;;  %v1052_v4 = vrot.slane %v1352_v34, 10  ;;  %v1053_v5 = vrot.slane %v1354_v35, 10 }
  0xff   : > { %v390_v44 = vsel %vm1348_vm6, %v1041_v38, %v389_v39  ;;  %v393_v45 = vrot.slane %v378_v36, 5  ;;  %v397_v46 = vrot.slane %v379_v37, 5  ;;  %v647_v47 = vcombine.high %v1365_v43, %v1365_v43 }
 0x100   : > { %v1062_v50 = vrot.slane %v1365_v43, 9  ;;  %v399_v52 = vcombine.low %v386_v40, %v390_v44  ;;  %v520_v62 = vrot.slane %v378_v36, 6  ;;  %v524_v63 = vrot.slane %v379_v37, 6 }
 0x101   : > { %v394_v48 = vsel %vm1348_vm6, %v1042_v41, %v393_v45  ;;  %v398_v49 = vsel %vm1348_vm6, %v1043_v42, %v397_v46  ;;  %v650_v51 = vrot.slane %v647_v47, 5  ;;  %v714_v61 = vrot.slane %v647_v47, 6  ;;  %v1238_v42 = vld [vmem:[%s1481_s5 + $0x40] sm:$0xff]  }
 0x102   : > { %v1376_v53 = vcombine.low %v394_v48, %v398_v49  ;;  %v652_v57 = vcombine.low %v390_v44, %v394_v48  ;;  %v1067_v0 = vrot.slane %v1365_v43, 10  ;;  %v370_v7 = vcombine.low %v1352_v34, %v1354_v35 }
 0x103   : > { %v1380_v54 = vsel %vm1348_vm6, %v1062_v50, %v650_v51  ;;  %v521_v9 = vsel %vm1399_vm9, %v1052_v4, %v520_v62  ;;  %v525_v10 = vsel %vm1399_vm9, %v1053_v5, %v524_v63  ;;  %v517_v13 = vsel %vm1399_vm9, %v1051_v8, %v516_v3 }
 0x104   : > { %v403_v56 = vpack.c.bf16 %v1376_v53, %v399_v52  ;;  %v653_v58 = vcombine.low %v398_v49, %v1380_v54  ;;  %v715_v6 = vsel %vm1399_vm9, %v1067_v0, %v714_v61  ;;  %v373_v15 = vpack.c.bf16 %v370_v7, %v369_v11 }
 0x105   : > { %v717_v12 = vcombine.low %v525_v10, %v715_v6  ;;  %v716_v16 = vcombine.low %v517_v13, %v521_v9  ;;  %v527_v23 = vcombine.low %v521_v9, %v525_v10  ;;  %v526_v24 = vcombine.low %v513_v22, %v517_v13 }
 0x106   : > { %1127 = vmatmul.mubr.msk.bf16.vlgmr.msra.gmra.mrb[4].mxu0 %vm293_vm1, %v403_v56  ;;  %v656_v60 = vpack.c.bf16 %v653_v58, %v652_v57  ;;  %v777_v25 = vcombine.low %v1365_v43, %v364_v21  ;;  %v1076_v32 = vrot.slane %v364_v21, 9  ;;  %v838_v36 = vrot.slane %v835_v26, 5 }
 0x107   : > { %1131 = vmatpush3.bf16.msra.mxu0 %v1228_v55  ;;  %1132 = vmatprep.mubr.msk.bf16.mxu0 %vm1248_vm0, %v1247_v1  ;;  %v720_v18 = vpack.c.bf16 %v717_v12, %v716_v16  ;;  %v530_v28 = vpack.c.bf16 %v527_v23, %v526_v24  ;;  %v588_v38 = vcombine.low %v1354_v35, %v1365_v43  ;;  %v1081_v45 = vrot.slane %v364_v21, 10 }
 0x108   : > { %1151 = vmatmul.mubr.msk.bf16.vlgmr.msra.gmra.mrb[0].mxu1 %vm293_vm1, %v656_v60  ;;  %1136 = vmatprep.subr.bf16.mxu0 %v1247_v1  ;;  %v779_v31 = vpack.c.bf16 %v777_v25, %v370_v7  ;;  %v839_v37 = vsel %vm1348_vm6, %v1076_v32, %v838_v36  ;;  %v587_v40 = vcombine.low %v1342_v29, %v1352_v34  ;;  %v900_v33 = vrot.slane %v835_v26, 6 }
 0x109   : > { %1155 = vmatpush3.bf16.msra.mxu1 %v1227_v59  ;;  %1156 = vmatprep.mubr.msk.bf16.mxu1 %vm1248_vm0, %v1247_v1  ;;  %v840_v39 = vcombine.low %v1380_v54, %v839_v37 }
 0x10a   : > { %1160 = vmatprep.subr.bf16.mxu1 %v1247_v1  ;;  %v591_v41 = vpack.c.bf16 %v588_v38, %v587_v40  ;;  %v901_v29 = vsel %vm1399_vm9, %v1081_v45, %v900_v33 }
 0x10b   : > { %v842_v44 = vpack.c.bf16 %v840_v39, %v1376_v53  ;;  %v902_v34 = vcombine.low %v715_v6, %v901_v29 }
 0x10d   : > { %v904_v35 = vpack.c.bf16 %v902_v34, %v527_v23 }
 0x112   : > { %1133 = vmatmul.mubr.msk.bf16.vlgmr.msra.gmra.mrb[4].mxu0 %vm293_vm1, %v373_v15 }
 0x113   : > { %1137 = vmatpush3.bf16.msra.mxu0 %v1232_v14  ;;  %1138 = vmatprep.mubr.msk.bf16.mxu0 %vm1248_vm0, %v1247_v1 }
 0x114   : > { %1157 = vmatmul.mubr.msk.bf16.vlgmr.msra.gmra.mrb[0].mxu1 %vm293_vm1, %v720_v18  ;;  %1142 = vmatprep.subr.bf16.mxu0 %v1247_v1 }
 0x115   : > { %1161 = vmatpush3.bf16.msra.mxu1 %v1231_v17  ;;  %1162 = vmatprep.mubr.msk.bf16.mxu1 %vm1248_vm0, %v1247_v1 }
 0x116   : > { %1166 = vmatprep.subr.bf16.mxu1 %v1247_v1 }
 0x11e   : > { %1139 = vmatmul.mubr.msk.bf16.vlgmr.msra.gmra.mrb[4].mxu0 %vm293_vm1, %v530_v28 }
 0x11f   : > { %1143 = vmatpush3.bf16.msra.mxu0 %v1235_v27  ;;  %1144 = vmatprep.mubr.msk.bf16.mxu0 %vm1248_vm0, %v1247_v1 }
 0x120   : > { %1163 = vmatmul.mubr.msk.bf16.vlgmr.msra.gmra.mrb[0].mxu1 %vm293_vm1, %v779_v31 }
 0x121   : > { %1167 = vmatpush3.bf16.msra.mxu1 %v1234_v30  ;;  %1168 = vmatprep.mubr.msk.bf16.mxu1 %vm1248_vm0, %v1247_v1 }
 0x122   : > { %1172 = vmatprep.subr.bf16.mxu1 %v1247_v1 }
 0x12a   : > { %1145 = vmatmul.mubr.msk.bf16.vlgmr.msra.gmra.mrb[4].mxu0 %vm293_vm1, %v591_v41 }
 0x12c   : > { %1169 = vmatmul.mubr.msk.bf16.vlgmr.msra.gmra.mrb[0].mxu1 %vm293_vm1, %v842_v44 }
 0x12d   : > { %1173 = vmatpush3.bf16.msra.mxu1 %v1238_v42  ;;  %1174 = vmatprep.mubr.msk.bf16.mxu1 %vm1248_vm0, %v1247_v1 }
 0x138   : > { %1175 = vmatmul.mubr.msk.bf16.vlgmr.msra.gmra.mrb[0].mxu1 %vm293_vm1, %v904_v35 }
 0x1fd   : > { %v638_v43 = vpop.f32.mrb[4].mxu0 }
 0x1fe   : > { %v1146_v46 = vpop.f32.mrb[5].mxu0 }
 0x1ff   : > { %v641_v47 = vpop.f32.mrb[6].mxu0 }
 0x200   : > { %v1147_v48 = vpop.f32.mrb[7].mxu0 }
 0x20b   : > { %v951_v49 = vpop.f32.mrb[0].mxu1 }
 0x20c   : > { %v1178_v50 = vadd.f32 %v951_v49, %v638_v43  ;;  %v1176_v51 = vpop.f32.mrb[1].mxu1 }
 0x20d   : > { %v954_v1 = vpop.f32.mrb[2].mxu1 }
 0x20e   : > { %v1092_v52 = vpack.c.bf16 %v1178_v50, %v1178_v50  ;;  %v1179_v53 = vadd.f32 %v954_v1, %v641_v47  ;;  %v1177_v54 = vpop.f32.mrb[3].mxu1 }
 0x210   : > { %969 = vst.msk [vmem:[%s251_s10] sm:$0xf] %vm968_vm10, %v1092_v52  ;;  %v1093_v55 = vpack.c.bf16 %v1179_v53, %v1179_v53 }
 0x212   : > { %970 = vst.msk [vmem:[%s251_s10 + $0x4] sm:$0xf] %vm968_vm10, %v1093_v55 }
 0x213 PF: > { %s16_s21 = sadd.s32 1, %s1245_s21  }
 0x214   : > { %p13_p4 = scmp.ge.s32.totalorder %s16_s21, 4  }
 0x216   :  { %15 = sbr.rel (!%p13_p4) target bundleno = 1 (0x1), region = 83 }

// kernel: densenet_forward.12
= control target key start
LH: loop header
LB: loop body
LE: loop exit
PB: predicated region body
PF: predicated region fallthrough
CT: control target
= control target key end

     0   :  { %s1507_s30 = smov 0   ;;  %s1724_s0 = inlined_call_operand.vmem [shape: bf16[2,16,16], index: 0, kind: input, shape index: {}]   ;;  %s1725_s1 = inlined_call_operand.vmem [shape: bf16[2,16,8], index: 1, kind: input, shape index: {}]   ;;  %s1726_s2 = inlined_call_operand.vmem [shape: f32[1,16], index: 2, kind: input, shape index: {}]   ;;  %s1727_s3 = inlined_call_operand.vmem [shape: f32[1,8], index: 3, kind: input, shape index: {}]   ;;  %s1728_s4 = inlined_call_operand.vmem [shape: f32[1,16], index: 4, kind: input, shape index: {}]   ;;  %s1729_s5 = inlined_call_operand.vmem [shape: f32[1,8], index: 5, kind: input, shape index: {}]   ;;  %s1730_s6 = inlined_call_operand.vmem [shape: bf16[24,16], index: 6, kind: input, shape index: {}]   ;;  %s1731_s7 = inlined_call_operand.vmem [shape: f32[1,16], index: 7, kind: input, shape index: {}]   ;;  %s1732_s8 = inlined_call_operand.vmem [shape: bf16[9,16,8], index: 8, kind: input, shape index: {}]   ;;  %s1733_s9 = inlined_call_operand.vmem [shape: bf16[2,16,8], index: 9, kind: output, shape index: {}]  }
   0x1 LB: > { %s1216_s10 = sadd.s32 4294967295, %s1453_s30   ;;  %p1220_p0 = scmp.ge.s32.totalorder %s1453_s30, 1  ;;  %s1453_s30 = sphi %s1507_s30, %s19_s30  }
   0x2   : > { %p297_p1 = scmp.lt.s32.totalorder %s1453_s30, 3 }
   0x4   : > { %p298_p2 = pnand %p1220_p0, %p297_p1 }
   0x5   : > { %v406_v0 = vld [vmem:[%s1730_s6 + $0x8] sm:$0xf] (!%p298_p2)  ;;  %vm411_vm0 = vcmask (!%p298_p2), 1043456   ;;  %p338_p3 = scmp.lt.s32.totalorder (!%p298_p2), %s1216_s10, 1  ;;  %v1455_v1 = vmov (!%p298_p2), 0.0   ;;  %vm1456_vm1 = vmmov (!%p298_p2), 0  }
   0x6   : > { %301 = sbr.rel (%p298_p2) target bundleno = 548 (0x224), region = 56  ;;  %1320 = vmatprep.subr.bf16.mxu1 (!%p298_p2), %v1455_v1  ;;  %v413_v2 = vsel (!%p298_p2), %vm411_vm0, %v406_v0, 0  ;;  %1322 = vmatprep.mubr.msk.bf16.mxu1 (!%p298_p2), %vm1456_vm1, %v1455_v1  ;;  %v1229_v3 = vld [vmem:[%s1727_s3] ss:$0 sm:$0xff] (!%p298_p2)  ;;  %vm407_vm2 = vcmask (!%p298_p2), 64512   ;;  %vm462_vm3 = vcmask (!%p298_p2), 130048  }
   0x7   : > { %1321 = vmatpush3.bf16.msra.mxu1 (!%p298_p2), %v413_v2  ;;  %1350 = vmatprep.subr.bf16.mxu0 (!%p298_p2), %v1455_v1  ;;  %v1227_v4 = vld [vmem:[%s1726_s2] ss:$0 sm:$0xff] (!%p298_p2)  ;;  %vm518_vm4 = vcmask (!%p298_p2), 128000   ;;  %v1427_v28 = vld [vmem:[%s1732_s8 + $0x18] sm:$0xff] (!%p298_p2)   ;;  %v1428_v29 = vld [vmem:[%s1732_s8 + $0x8] sm:$0xff] (!%p298_p2)   ;;  %vm532_vm5 = vcmask (!%p298_p2), 125952  }
   0x8   : > { %1326 = vmatprep.subr.bf16.mxu1 (!%p298_p2), %v1455_v1  ;;  %1352 = vmatprep.mubr.msk.bf16.mxu0 (!%p298_p2), %vm1456_vm1, %v1455_v1  ;;  %v1230_v6 = vld [vmem:[%s1729_s5] ss:$0 sm:$0xff] (!%p298_p2)  ;;  %519 = vst.msk [vmem:[#allocation2] sm:$0x3f] (!%p298_p2), %vm518_vm4, %v1455_v1  ;;  %520 = vst.msk [vmem:[#allocation2 + $0x8] sm:$0x3f] (!%p298_p2), %vm518_vm4, %v1455_v1 }
   0x9   : > { %v1228_v12 = vld [vmem:[%s1728_s4] ss:$0 sm:$0xff] (!%p298_p2)  ;;  %521 = vst.msk [vmem:[#allocation2 + $0x10] sm:$0x3f] (!%p298_p2), %vm518_vm4, %v1455_v1  ;;  %524 = vst.msk [vmem:[#allocation2 + $0x28] sm:$0x3f] (!%p298_p2), %vm518_vm4, %v1455_v1  ;;  %1351 = vmatpush3.bf16.msra.mxu0 (!%p298_p2), %v1427_v28 }
   0xa   : > { %v1426_v23 = vld [vmem:[%s1730_s6] sm:$0xff] (!%p298_p2)   ;;  %522 = vst.msk [vmem:[#allocation2 + $0x18] sm:$0x3f] (!%p298_p2), %vm518_vm4, %v1455_v1  ;;  %523 = vst.msk [vmem:[#allocation2 + $0x20] sm:$0x3f] (!%p298_p2), %vm518_vm4, %v1455_v1  ;;  %1356 = vmatprep.subr.bf16.mxu0 (!%p298_p2), %v1455_v1  ;;  %vm558_vm6 = vcmask (!%p298_p2), 1042432  }
   0xb   : > { %v1234_v35 = vld [vmem:[%s1731_s7] ss:$0 sm:$0xff] (!%p298_p2)  ;;  %vm559_vm7 = vcmask (!%p298_p2), 1046532   ;;  %vm685_vm9 = vcmask (!%p298_p2), 1041408   ;;  %vm686_vm10 = vcmask (!%p298_p2), 1045508   ;;  %vm1146_vm12 = vcmask (!%p298_p2), 60416  }
   0xc   : > { %vm1587_vm8 = vmor (!%p298_p2), %vm558_vm6, %vm559_vm7 }
   0xd   : > { %s1739_s10 = smov (!%p338_p3, %s1216_s10), 1  ;;  %vm1665_vm11 = vmor %vm685_vm9, %vm686_vm10 }
   0xe   : > { %s1525_s13 = sshll.u32 %s1739_s10, 3 }
   0xf   : > { %s347_s20 = scalar_lea.vmem %s1725_s1, %s1525_s13  ;;  %s342_s23 = scalar_lea.vmem %s1724_s0, %s1525_s13  ;;  %v1573_v46 = vld [vmem:[#allocation2] sm:$0x3f] }
  0x10   : > { %v1295_v5 = vld [vmem:[%s347_s20] sm:$0xff]   ;;  %v1577_v48 = vcombine.high %v1573_v46, %v1573_v46  ;;  %v1235_v50 = vrot.slane %v1573_v46, 9  ;;  %s352_s14 = scalar_lea.vmem %s1733_s9, %s1525_s13 }
  0x11   : > { %v1291_v7 = vld [vmem:[%s342_s23] sm:$0xff]   ;;  %v1296_v8 = vunpack.c.l.bf16 %v1295_v5  ;;  %v1297_v9 = vunpack.c.h.bf16 %v1295_v5 }
  0x12   : > { %v1292_v10 = vunpack.c.l.bf16 %v1291_v7  ;;  %v1293_v11 = vunpack.c.h.bf16 %v1291_v7  ;;  %v563_v51 = vrot.slane %v1577_v48, 5 }
  0x13   : > { %v392_v13 = vmul.f32 %v1296_v8, %v1229_v3  ;;  %v393_v14 = vmul.f32 %v1297_v9, %v1229_v3 }
  0x14   : > { %v365_v15 = vmul.f32 %v1292_v10, %v1227_v4  ;;  %v366_v16 = vmul.f32 %v1293_v11, %v1227_v4  ;;  %v564_v62 = vsel %vm1587_vm8, %v1235_v50, %v563_v51 }
  0x15   : > { %v401_v17 = vadd.f32 %v1230_v6, %v392_v13  ;;  %v402_v18 = vadd.f32 %v1230_v6, %v393_v14  ;;  %v1431_v6 = vld [vmem:[%s1732_s8 + $0x20] sm:$0xff]  }
  0x16   : > { %v374_v21 = vadd.f32 %v1228_v12, %v365_v15  ;;  %v375_v22 = vadd.f32 %v1228_v12, %v366_v16  ;;  %v1436_v14 = vld [vmem:[%s1732_s8] sm:$0xff]  }
  0x17   : > { %v403_v19 = vmax.f32 %v401_v17, 0.0  ;;  %v404_v20 = vmax.f32 %v402_v18, 0.0 }
  0x18   : > { %v376_v25 = vmax.f32 %v374_v21, 0.0  ;;  %v377_v26 = vmax.f32 %v375_v22, 0.0 }
  0x19   : > { %v405_v24 = vpack.c.bf16 %v404_v20, %v403_v19  ;;  %v1438_v20 = vld [vmem:[%s1732_s8 + $0x28] sm:$0xff]  }
  0x1a   : > { %v378_v27 = vpack.c.bf16 %v377_v26, %v376_v25  ;;  %v1441_v25 = vld [vmem:[%s1732_s8 + $0x10] sm:$0xff]  }
  0x1b   : > { %1323 = vmatmul.mubr.msk.bf16.vlgmr.msra.gmra.mrb[0].mxu1 %vm407_vm2, %v405_v24 }
  0x1c   : > { %1327 = vmatpush3.bf16.msra.mxu1 %v1426_v23  ;;  %1328 = vmatprep.mubr.msk.bf16.mxu1 %vm1456_vm1, %v1455_v1 }
  0x1d   : > { %1332 = vmatprep.subr.bf16.mxu1 %v1455_v1 }
  0x23   : > { %1329 = vmatmul.mubr.msk.bf16.vlgmr.msra.gmra.mrb[4].mxu1 %vm462_vm3, %v378_v27 }
  0x24   : > { %1334 = vmatprep.mubr.msk.bf16.mxu1 %vm1456_vm1, %v1455_v1  ;;  %1333 = vmatpush3.bf16.msra.mxu1 %v1428_v29 }
  0x25   : > { %1338 = vmatprep.subr.bf16.mxu1 %v1455_v1 }
  0xee   : > { %v449_v30 = vpop.f32.mrb[0].mxu1 }
  0xef   : > { %v1324_v31 = vpop.f32.mrb[1].mxu1 }
  0xf0   : > { %v452_v32 = vpop.f32.mrb[2].mxu1 }
  0xf1   : > { %v1325_v33 = vpop.f32.mrb[3].mxu1 }
  0xf6   : > { %v500_v34 = vpop.f32.mrb[4].mxu1 }
  0xf7   : > { %v501_v36 = vadd.f32 %v500_v34, %v449_v30  ;;  %v1330_v37 = vpop.f32.mrb[5].mxu1 }
  0xf8   : > { %v503_v38 = vpop.f32.mrb[6].mxu1 }
  0xf9   : > { %v514_v39 = vadd.f32 %v1234_v35, %v501_v36  ;;  %v504_v40 = vadd.f32 %v503_v38, %v452_v32  ;;  %v1331_v41 = vpop.f32.mrb[7].mxu1  ;;  %v690_v36 = vrot.slane %v1577_v48, 6 }
  0xfb   : > { %v516_v42 = vmax.f32 %v514_v39, 0.0  ;;  %v515_v43 = vadd.f32 %v1234_v35, %v504_v40  ;;  %v1245_v35 = vrot.slane %v1573_v46, 10 }
  0xfd   : > { %v527_v44 = vcombine.high %v516_v42, %v516_v42  ;;  %533 = vst.msk [vmem:[#allocation2 + $0x9] sm:$0xf] %vm532_vm5, %v516_v42  ;;  %v517_v45 = vmax.f32 %v515_v43, 0.0  ;;  %v691_v43 = vsel %vm1665_vm11, %v1245_v35, %v690_v36 }
  0xff   : > { %534 = vst.msk [vmem:[#allocation2 + $0x11] sm:$0xf] %vm532_vm5, %v527_v44  ;;  %v528_v47 = vcombine.high %v517_v45, %v517_v45  ;;  %535 = vst.msk [vmem:[#allocation2 + $0x19] sm:$0xf] %vm532_vm5, %v517_v45  ;;  %v1442_v44 = vld [vmem:[%s1732_s8 + $0x30] sm:$0xff]  }
 0x101   : > { %536 = vst.msk [vmem:[#allocation2 + $0x21] sm:$0xf] %vm532_vm5, %v528_v47 }
 0x104   : > { %v1579_v49 = vld [vmem:[#allocation2 + $0x8] sm:$0x3f] }
 0x105   : > { %v1585_v52 = vcombine.high %v1579_v49, %v1579_v49  ;;  %v1236_v58 = vrot.slane %v1579_v49, 9  ;;  %v547_v23 = vcombine.low %v1573_v46, %v1579_v49  ;;  %v1246_v37 = vrot.slane %v1579_v49, 10 }
 0x106   : > { %v1591_v54 = vld [vmem:[#allocation2 + $0x10] sm:$0x3f]  ;;  %v1593_v55 = vld [vmem:[#allocation2 + $0x18] sm:$0x3f] }
 0x107   : > { %v1597_v56 = vcombine.high %v1591_v54, %v1591_v54  ;;  %v1601_v57 = vcombine.high %v1593_v55, %v1593_v55  ;;  %v567_v59 = vrot.slane %v1585_v52, 5  ;;  %v765_v61 = vcombine.low %v1579_v49, %v1591_v54  ;;  %v542_v49 = vld [vmem:[#allocation2 + $0x28] sm:$0x3f] }
 0x108   : > { %v1605_v60 = vld [vmem:[#allocation2 + $0x20] sm:$0x3f]  ;;  %v1237_v63 = vrot.slane %v1591_v54, 9  ;;  %v1238_v0 = vrot.slane %v1593_v55, 9  ;;  %v548_v21 = vcombine.low %v1591_v54, %v1593_v55  ;;  %v694_v31 = vrot.slane %v1585_v52, 6  ;;  %v1444_v52 = vld [vmem:[%s1732_s8 + $0x38] sm:$0xff]  }
 0x109   : > { %v766_v2 = vcombine.low %v1593_v55, %v1605_v60  ;;  %v568_v3 = vsel %vm1587_vm8, %v1236_v58, %v567_v59  ;;  %v571_v4 = vrot.slane %v1597_v56, 5  ;;  %v575_v5 = vrot.slane %v1601_v57, 5  ;;  %v1446_v59 = vld [vmem:[%s1732_s8 + $0x40] sm:$0xff]  }
 0x10a   : > { %v825_v7 = vcombine.high %v1605_v60, %v1605_v60  ;;  %v577_v11 = vcombine.low %v564_v62, %v568_v3  ;;  %v1257_v16 = vrot.slane %v1605_v60, 9  ;;  %v551_v26 = vpack.c.bf16 %v548_v21, %v547_v23 }
 0x10b   : > { %v769_v8 = vpack.c.bf16 %v766_v2, %v765_v61  ;;  %v572_v9 = vsel %vm1587_vm8, %v1237_v63, %v571_v4  ;;  %v576_v10 = vsel %vm1587_vm8, %v1238_v0, %v575_v5  ;;  %v698_v27 = vrot.slane %v1597_v56, 6 }
 0x10c   : > { %v1628_v12 = vcombine.low %v572_v9, %v576_v10  ;;  %v828_v13 = vrot.slane %v825_v7, 5  ;;  %v830_v19 = vcombine.low %v568_v3, %v572_v9  ;;  %v892_v24 = vrot.slane %v825_v7, 6 }
 0x10d   : > { %1353 = vmatmul.mubr.msk.bf16.vlgmr.msra.gmra.mrb[0].mxu0 %vm462_vm3, %v769_v8  ;;  %v702_v28 = vrot.slane %v1601_v57, 6  ;;  %v1262_v29 = vrot.slane %v1605_v60, 10  ;;  %v1247_v32 = vrot.slane %v1591_v54, 10  ;;  %v1248_v33 = vrot.slane %v1593_v55, 10 }
 0x10e   : > { %1357 = vmatpush3.bf16.msra.mxu0 %v1431_v6  ;;  %v581_v15 = vpack.c.bf16 %v1628_v12, %v577_v11  ;;  %1358 = vmatprep.mubr.msk.bf16.mxu0 %vm1456_vm1, %v1455_v1  ;;  %v1642_v17 = vsel %vm1587_vm8, %v1257_v16, %v828_v13  ;;  %v695_v41 = vsel %vm1665_vm11, %v1246_v37, %v694_v31  ;;  %v1271_v55 = vrot.slane %v542_v49, 9 }
 0x10f   : > { %1362 = vmatprep.subr.bf16.mxu0 %v1455_v1  ;;  %v831_v18 = vcombine.low %v576_v10, %v1642_v17  ;;  %v893_v34 = vsel %vm1665_vm11, %v1262_v29, %v892_v24  ;;  %v699_v38 = vsel %vm1665_vm11, %v1247_v32, %v698_v27  ;;  %v703_v39 = vsel %vm1665_vm11, %v1248_v33, %v702_v28 }
 0x110   : > { %1335 = vmatmul.mubr.msk.bf16.vlgmr.msra.gmra.mrb[8].mxu1 %vm462_vm3, %v581_v15  ;;  %v895_v40 = vcombine.low %v703_v39, %v893_v34  ;;  %v894_v42 = vcombine.low %v695_v41, %v699_v38  ;;  %v705_v45 = vcombine.low %v699_v38, %v703_v39  ;;  %v704_v47 = vcombine.low %v691_v43, %v695_v41 }
 0x111   : > { %1339 = vmatpush3.bf16.msra.mxu1 %v1436_v14  ;;  %1340 = vmatprep.mubr.msk.bf16.mxu1 %vm1456_vm1, %v1455_v1  ;;  %v834_v22 = vpack.c.bf16 %v831_v18, %v830_v19  ;;  %v955_v50 = vcombine.low %v1605_v60, %v542_v49  ;;  %v1013_v51 = vcombine.high %v542_v49, %v542_v49  ;;  %v1276_v61 = vrot.slane %v542_v49, 10 }
 0x112   : > { %1344 = vmatprep.subr.bf16.mxu1 %v1455_v1  ;;  %v898_v46 = vpack.c.bf16 %v895_v40, %v894_v42  ;;  %v708_v48 = vpack.c.bf16 %v705_v45, %v704_v47 }
 0x113   : > { %v957_v54 = vpack.c.bf16 %v955_v50, %v548_v21  ;;  %v1016_v56 = vrot.slane %v1013_v51, 5  ;;  %v1078_v62 = vrot.slane %v1013_v51, 6 }
 0x115   : > { %v1017_v57 = vsel %vm1587_vm8, %v1271_v55, %v1016_v56  ;;  %v1079_v53 = vsel %vm1665_vm11, %v1276_v61, %v1078_v62 }
 0x116   : > { %v1018_v58 = vcombine.low %v1642_v17, %v1017_v57  ;;  %v1080_v63 = vcombine.low %v893_v34, %v1079_v53 }
 0x118   : > { %v1020_v60 = vpack.c.bf16 %v1018_v58, %v1628_v12  ;;  %v1082_v0 = vpack.c.bf16 %v1080_v63, %v705_v45 }
 0x119   : > { %1359 = vmatmul.mubr.msk.bf16.vlgmr.msra.gmra.mrb[0].mxu0 %vm462_vm3, %v834_v22 }
 0x11a   : > { %1363 = vmatpush3.bf16.msra.mxu0 %v1438_v20  ;;  %1364 = vmatprep.mubr.msk.bf16.mxu0 %vm1456_vm1, %v1455_v1 }
 0x11b   : > { %1368 = vmatprep.subr.bf16.mxu0 %v1455_v1 }
 0x11c   : > { %1341 = vmatmul.mubr.msk.bf16.vlgmr.msra.gmra.mrb[8].mxu1 %vm462_vm3, %v551_v26 }
 0x11d   : > { %1345 = vmatpush3.bf16.msra.mxu1 %v1441_v25  ;;  %1346 = vmatprep.mubr.msk.bf16.mxu1 %vm1456_vm1, %v1455_v1 }
 0x125   : > { %1365 = vmatmul.mubr.msk.bf16.vlgmr.msra.gmra.mrb[0].mxu0 %vm462_vm3, %v898_v46 }
 0x126   : > { %1369 = vmatpush3.bf16.msra.mxu0 %v1442_v44  ;;  %1370 = vmatprep.mubr.msk.bf16.mxu0 %vm1456_vm1, %v1455_v1 }
 0x127   : > { %1374 = vmatprep.subr.bf16.mxu0 %v1455_v1 }
 0x128   : > { %1347 = vmatmul.mubr.msk.bf16.vlgmr.msra.gmra.mrb[8].mxu1 %vm462_vm3, %v708_v48 }
 0x131   : > { %1371 = vmatmul.mubr.msk.bf16.vlgmr.msra.gmra.mrb[0].mxu0 %vm462_vm3, %v957_v54 }
 0x132   : > { %1375 = vmatpush3.bf16.msra.mxu0 %v1444_v52  ;;  %1376 = vmatprep.mubr.msk.bf16.mxu0 %vm1456_vm1, %v1455_v1 }
 0x133   : > { %1380 = vmatprep.subr.bf16.mxu0 %v1455_v1 }
 0x13d   : > { %1377 = vmatmul.mubr.msk.bf16.vlgmr.msra.gmra.mrb[0].mxu0 %vm462_vm3, %v1020_v60 }
 0x13e   : > { %1381 = vmatpush3.bf16.msra.mxu0 %v1446_v59  ;;  %1382 = vmatprep.mubr.msk.bf16.mxu0 %vm1456_vm1, %v1455_v1 }
 0x149   : > { %1383 = vmatmul.mubr.msk.bf16.vlgmr.msra.gmra.mrb[0].mxu0 %vm462_vm3, %v1082_v0 }
 0x1fb   : > { %v755_v2 = vpop.f32.mrb[8].mxu1 }
 0x1fc   : > { %v1348_v3 = vpop.f32.mrb[9].mxu1 }
 0x1fd   : > { %v758_v4 = vpop.f32.mrb[10].mxu1 }
 0x1fe   : > { %v1349_v5 = vpop.f32.mrb[11].mxu1 }
 0x21c   : > { %v1129_v6 = vpop.f32.mrb[0].mxu0 }
 0x21d   : > { %v1386_v7 = vadd.f32 %v1129_v6, %v755_v2  ;;  %v1384_v8 = vpop.f32.mrb[1].mxu0 }
 0x21e   : > { %v1132_v1 = vpop.f32.mrb[2].mxu0 }
 0x21f   : > { %v1288_v9 = vpack.c.bf16 %v1386_v7, %v1386_v7  ;;  %v1387_v10 = vadd.f32 %v1132_v1, %v758_v4  ;;  %v1385_v11 = vpop.f32.mrb[3].mxu0 }
 0x221   : > { %1147 = vst.msk [vmem:[%s352_s14] sm:$0xf] %vm1146_vm12, %v1288_v9  ;;  %v1289_v12 = vpack.c.bf16 %v1387_v10, %v1387_v10 }
 0x223   : > { %1148 = vst.msk [vmem:[%s352_s14 + $0x4] sm:$0xf] %vm1146_vm12, %v1289_v12 }
 0x224 PF: > { %s19_s30 = sadd.s32 1, %s1453_s30  }
 0x225   : > { %p16_p4 = scmp.ge.s32.totalorder %s19_s30, 4  }
 0x227   :  { %18 = sbr.rel (!%p16_p4) target bundleno = 1 (0x1), region = 98 }

// kernel: densenet_forward.13
= control target key start
LH: loop header
LB: loop body
LE: loop exit
PB: predicated region body
PF: predicated region fallthrough
CT: control target
= control target key end

     0   :  { %16 = vsyncpa [#allocation3], 0  ;;  %s1239_s0 = inlined_call_operand.vmem [shape: bf16[2,16,16], index: 0, kind: input, shape index: {}]   ;;  %s1240_s1 = inlined_call_operand.vmem [shape: bf16[2,16,8], index: 1, kind: input, shape index: {}]   ;;  %s1241_s2 = inlined_call_operand.vmem [shape: bf16[2,16,8], index: 2, kind: input, shape index: {}]   ;;  %s1242_s3 = inlined_call_operand.vmem [shape: f32[1,16], index: 3, kind: input, shape index: {}]   ;;  %s1243_s4 = inlined_call_operand.vmem [shape: f32[1,8], index: 4, kind: input, shape index: {}]   ;;  %s1244_s5 = inlined_call_operand.vmem [shape: f32[1,8], index: 5, kind: input, shape index: {}]   ;;  %s1245_s6 = inlined_call_operand.vmem [shape: f32[1,16], index: 6, kind: input, shape index: {}]   ;;  %s1246_s7 = inlined_call_operand.vmem [shape: f32[1,8], index: 7, kind: input, shape index: {}]   ;;  %s1247_s8 = inlined_call_operand.vmem [shape: f32[1,8], index: 8, kind: input, shape index: {}]   ;;  %s1248_s9 = inlined_call_operand.vmem [shape: f32[32,10], index: 9, kind: input, shape index: {}]   ;;  %s1249_s10 = inlined_call_operand.vmem [shape: f32[1,10], index: 10, kind: input, shape index: {}]   ;;  %s1250_s11 = inlined_call_operand.hbm [shape: f32[2,1,10], index: 11, kind: output, shape index: {}]  }
   0x1   :  { %18 = vsyncpa [#allocation3 + $0x1], 0  ;;  %s1083_s17 = smov 0   ;;  %s1085_s18 = smov 0  }
   0x2   :  { %s1087_s19 = smov 0   ;;  %s1089_s20 = smov 0  }
   0x3 LB: > { %1255 = sst [smem:[#allocation5_spill]] %s1013_s19  ;;  %s1104_s21 = sadd.s32 4294967295, %s1017_s20   ;;  %s1017_s20 = sphi %s1089_s20, %s1262_s20   ;;  %s1013_s19 = sphi %s1087_s19, %s1264_s19   ;;  %s1009_s18 = sphi %s1085_s18, %s1266_s18   ;;  %s1005_s17 = sphi %s1083_s17, %s1265_s17  }
   0x4   : > { %s849_s22 = sadd.s32 4294967294, %s1017_s20   ;;  %s1108_s23 = sadd.s32 1, %s1017_s20  }
   0x5   : > { %1256 = sst [smem:[#allocation6_spill]] %s1108_s23  ;;  %s277_s24 = sadd.s32 1, %s1013_s19 }
   0x6   : > { %s274_s25 = ssub.s32 %s1017_s20, %s1108_s23  ;;  %p287_p0 = scmp.ne.s32.totalorder %s1013_s19, %s1009_s18 }
   0x7   : > { %p275_p1 = scmp.eq.s32.totalorder %s274_s25, 0  ;;  %p288_p2 = scmp.eq.s32.totalorder %s1104_s21, 1 }
   0x8   : > { %p293_p3 = scmp.ne.s32.totalorder %s1009_s18, %s1005_s17  ;;  %p294_p4 = scmp.eq.s32.totalorder %s849_s22, 1 }
   0x9   : > { %s1119_s26 = scalar_select %p275_p1, %s1013_s19, %s277_s24  }
   0xa   : > { %p1121_p5 = por %p288_p2, %p287_p0  ;;  %p1125_p6 = por %p294_p4, %p293_p3 }
   0xb   : > { %1257 = sst [smem:[#allocation7_spill]] %s1119_s26  ;;  %p852_p7 = scmp.ge.s32.totalorder %s1017_s20, 1 }
   0xc   : > { %s1259_s28 = scalar_select %p1125_p6, 1, 0 }
   0xd   : > { %p360_p8 = scmp.lt.s32.totalorder %s1017_s20, 3 }
   0xe   : > { %1260 = sst [smem:[#allocation8_spill]] %s1259_s28 }
   0xf   : > { %p361_p9 = pnand %p852_p7, %p360_p8 }
  0x10   : > { %v460_v0 = vld [vmem:[%s1248_s9] sm:$0xff] (!%p361_p9)  ;;  %v461_v1 = vld [vmem:[%s1248_s9 + $0x8] sm:$0xff] (!%p361_p9)  ;;  %v497_v2 = vld [vmem:[%s1248_s9 + $0x10] sm:$0xff] (!%p361_p9)  ;;  %v1019_v3 = vmov (!%p361_p9), 0.0|0.0   ;;  %v1020_v4 = vmov (!%p361_p9), 0.0   ;;  %p409_p10 = scmp.lt.s32.totalorder (!%p361_p9), %s1104_s21, 1 }
  0x11   : > { %364 = sbr.rel (%p361_p9) target bundleno = 288 (0x120), region = 64  ;;  %910 = vmatprep.subr.bf16.mxu1 (!%p361_p9), %v1019_v3  ;;  %893 = vmatprep.subr.mxu0 (!%p361_p9), %v1020_v4  ;;  %v911_v5 = vpack.c.bf16 (!%p361_p9), %v461_v1, %v460_v0  ;;  %vm1021_vm0 = vmmov (!%p361_p9), 0   ;;  %v861_v6 = vld [vmem:[%s1243_s4] ss:$0 sm:$0xff] (!%p361_p9)  ;;  %vm486_vm1 = vcmask (!%p361_p9), 64512   ;;  %vm448_vm2 = vcmask (!%p361_p9), 130048  }
  0x12   : > { %894 = vmatpush3.msra.mxu0 (!%p361_p9), %v497_v2  ;;  %895 = vmatprep.mubr.msk.f32.mxu0 (!%p361_p9), %vm1021_vm0, %v1020_v4  ;;  %v865_v9 = vld [vmem:[%s1244_s5] ss:$0 sm:$0xff] (!%p361_p9)  ;;  %v678_v3 = vld [vmem:[%s1248_s9 + $0x18] sm:$0xff] (!%p361_p9)  ;;  %vm755_vm3 = vcmask (!%p361_p9), 73728  }
  0x13   : > { %912 = vmatpush3.bf16.msra.mxu1 (!%p361_p9), %v911_v5  ;;  %902 = vmatprep.mubr.msk.f32.mxu1 (!%p361_p9), %vm1021_vm0, %v1020_v4  ;;  %v859_v15 = vld [vmem:[%s1242_s3] ss:$0 sm:$0xff] (!%p361_p9) }
  0x14   : > { %905 = vmatprep.subr.mxu0 (!%p361_p9), %v1020_v4  ;;  %v862_v16 = vld [vmem:[%s1246_s7] ss:$0 sm:$0xff] (!%p361_p9) }
  0x15   : > { %v866_v17 = vld [vmem:[%s1247_s8] ss:$0 sm:$0xff] (!%p361_p9) }
  0x16   : > { %v860_v24 = vld [vmem:[%s1245_s6] ss:$0 sm:$0xff] (!%p361_p9) }
  0x18   : > { %s410_s16 = scalar_select %p409_p10, %s1104_s21, 1 }
  0x1a   : > { %s871_s22 = sshll.u32 %s410_s16, 3  ;;  %s868_s16 = sshll.u32 %s1104_s21, 4 }
  0x1b   : > { %s418_s29 = scalar_lea.vmem %s1240_s1, %s871_s22  ;;  %s423_s13 = scalar_lea.vmem %s1241_s2, %s871_s22 }
  0x1c   : > { %v879_v7 = vld [vmem:[%s418_s29] sm:$0xff]   ;;  %s413_s28 = scalar_lea.vmem %s1239_s0, %s871_s22  ;;  %s1197_s12 = scalar_lea.hbm %s1250_s11, %s868_s16 }
  0x1d   : > { %v883_v8 = vld [vmem:[%s423_s13] sm:$0xff]   ;;  %v880_v10 = vunpack.c.l.bf16 %v879_v7  ;;  %v881_v11 = vunpack.c.h.bf16 %v879_v7  ;;  %s407_s13 = sand.u32 1, %s1009_s18   ;;  %s1022_s21 = smov [#allocation2]  }
  0x1e   : > { %v884_v12 = vunpack.c.l.bf16 %v883_v8  ;;  %v885_v13 = vunpack.c.h.bf16 %v883_v8  ;;  %v875_v14 = vld [vmem:[%s413_s28] sm:$0xff]   ;;  %s408_s24 = scalar_lea.vmem [#allocation2], %s407_s13  ;;  %s758_s19 = scalar_lea.sflag [#allocation3], %s407_s13 }
  0x1f   : > { %v876_v18 = vunpack.c.l.bf16 %v875_v14  ;;  %v877_v19 = vunpack.c.h.bf16 %v875_v14  ;;  %v473_v20 = vmul.f32 %v880_v10, %v861_v6  ;;  %v474_v21 = vmul.f32 %v881_v11, %v861_v6  ;;  %s770_s25 = sshll.u32 %s408_s24, 4  ;;  %s959_s26 = sshll.u32 %s1022_s21, 4  ;;  %s1199_s25 = int_to_ptr.vmem [resolvable:$true] %s770_s25  ;;  %s960_s26 = int_to_ptr.vmem [resolvable:$false] %s959_s26 }
  0x20   : > { %v655_v22 = vmul.f32 %v884_v12, %v865_v9  ;;  %v656_v23 = vmul.f32 %v885_v13, %v865_v9  ;;  %v753_v13 = vld [vmem:[%s1249_s10] sm:$0x1]  ;;  %s955_s23 = scalar_lea.vmem %s1199_s25, 16  ;;  %s961_s28 = scalar_lea.vmem %s960_s26, 32 }
  0x21   : > { %v435_v25 = vmul.f32 %v876_v18, %v859_v15  ;;  %v436_v26 = vmul.f32 %v877_v19, %v859_v15  ;;  %v482_v27 = vadd.f32 %v862_v16, %v473_v20  ;;  %v483_v28 = vadd.f32 %v862_v16, %v474_v21  ;;  %p956_p11 = scmp.ne.s32.totalorder %s1199_s25, %s955_s23  ;;  %p962_p0 = scmp.lt.s32.totalorder %s1199_s25, %s960_s26 }
  0x22   : > { %v664_v29 = vadd.f32 %v866_v17, %v655_v22  ;;  %v665_v30 = vadd.f32 %v866_v17, %v656_v23  ;;  %p963_p1 = scmp.lt.s32.totalorder %s961_s28, %s955_s23 }
  0x23   : > { %v444_v31 = vadd.f32 %v860_v24, %v435_v25  ;;  %v445_v32 = vadd.f32 %v860_v24, %v436_v26  ;;  %v484_v33 = vmax.f32 %v482_v27, 0.0  ;;  %v485_v34 = vmax.f32 %v483_v28, 0.0  ;;  %p957_p12 = pnand %p956_p11, %p1121_p5 }
  0x24   : > { %v666_v35 = vmax.f32 %v664_v29, 0.0  ;;  %v667_v36 = vmax.f32 %v665_v30, 0.0  ;;  %p964_p2 = por %p963_p1, %p962_p0 }
  0x25   : > { %v446_v37 = vmax.f32 %v444_v31, 0.0  ;;  %v447_v38 = vmax.f32 %v445_v32, 0.0  ;;  %v487_v39 = vsel %vm486_vm1, %v484_v33, 0.0  ;;  %v488_v40 = vsel %vm486_vm1, %v485_v34, 0.0  ;;  %p958_p13 = pneg %p957_p12 }
  0x26   : > { %v668_v41 = vsel %vm486_vm1, %v666_v35, 0.0  ;;  %v669_v42 = vsel %vm486_vm1, %v667_v36, 0.0  ;;  %v489_v43 = vadd.f32 %v488_v40, %v487_v39 }
  0x27   : > { %v449_v44 = vsel %vm448_vm2, %v446_v37, 0.0  ;;  %v450_v45 = vsel %vm448_vm2, %v447_v38, 0.0  ;;  %v670_v46 = vadd.f32 %v669_v42, %v668_v41  ;;  %p965_p3 = pnand %p964_p2, %p958_p13 }
  0x28   : > { %v451_v47 = vadd.f32 %v450_v45, %v449_v44  ;;  %v490_v48 = vrot.slane %v489_v43, 4 }
  0x29   : > { %v671_v49 = vrot.slane %v670_v46, 4 }
  0x2a   : > { %v452_v50 = vrot.slane %v451_v47, 4  ;;  %v491_v51 = vadd.f32 %v490_v48, %v489_v43 }
  0x2b   : > { %v672_v52 = vadd.f32 %v671_v49, %v670_v46 }
  0x2c   : > { %v453_v53 = vadd.f32 %v452_v50, %v451_v47  ;;  %v492_v54 = vrot.slane %v491_v51, 2 }
  0x2d   : > { %v673_v55 = vrot.slane %v672_v52, 2 }
  0x2e   : > { %v454_v56 = vrot.slane %v453_v53, 2  ;;  %v493_v57 = vadd.f32 %v492_v54, %v491_v51 }
  0x2f   : > { %v674_v58 = vadd.f32 %v673_v55, %v672_v52 }
  0x30   : > { %v455_v59 = vadd.f32 %v454_v56, %v453_v53  ;;  %v494_v60 = vrot.slane %v493_v57, 1 }
  0x31   : > { %v675_v61 = vrot.slane %v674_v58, 1 }
  0x32   : > { %v456_v62 = vrot.slane %v455_v59, 1  ;;  %v495_v63 = vadd.f32 %v494_v60, %v493_v57 }
  0x33   : > { %v676_v0 = vadd.f32 %v675_v61, %v674_v58 }
  0x34   : > { %v457_v1 = vadd.f32 %v456_v62, %v455_v59  ;;  %v496_v2 = vmul.f32 0.0625, %v495_v63 }
  0x35   : > { %v677_v6 = vmul.f32 0.0625, %v676_v0 }
  0x36   : > { %v459_v5 = vmul.f32 0.0625, %v457_v1  ;;  %896 = vmatmul.mubr.msk.f32.vlgmr.msra.gmra.mrb[0].mxu0 %vm486_vm1, %v496_v2 }
  0x37   : > { %906 = vmatpush3.msra.mxu0 %v678_v3  ;;  %907 = vmatprep.mubr.msk.f32.mxu0 %vm1021_vm0, %v1020_v4 }
  0x38   : > { %903 = vmatmul.mubr.msk.f32.vlgmr.msra.gmra.mrb[0].mxu1 %vm448_vm2, %v459_v5 }
  0x3a   : > { %908 = vmatmul.mubr.msk.f32.vlgmr.msra.gmra.mrb[2].mxu0 %vm486_vm1, %v677_v6 }
 0x109   : > { %v567_v7 = vpop.f32.mrb[0].mxu0 }
 0x10a   : > { %v897_v9 = vpop.f32.mrb[1].mxu0 }
 0x10b   : > { %v640_v8 = vpop.f32.mrb[0].mxu1 }
 0x10c   : > { %v641_v10 = vadd.f32 %v640_v8, %v567_v7  ;;  %v904_v11 = vpop.f32.mrb[1].mxu1 }
 0x10d   : > { %v748_v12 = vpop.f32.mrb[2].mxu0 }
 0x10e   : > { %v752_v14 = vadd.f32 %v748_v12, %v641_v10  ;;  %v909_v15 = vpop.f32.mrb[3].mxu0 }
 0x110   : > { %v754_v4 = vadd.f32 %v753_v13, %v752_v14 }
 0x112   : > { %756 = vst.msk [vmem:[%s408_s24] sm:$0x1] %vm755_vm3, %v754_v4 }
 0x113   : > { %968 = shalt.err (!%p965_p3)
}
 0x114   : > { %s969_s22 = scalar_lea.hbm %s1197_s12, 16  ;;  %s973_s15 = scalar_lea.hbm %s1250_s11, 32 }
 0x115   : > { %p970_p4 = scmp.ne.s32.totalorder %s1197_s12, %s969_s22  ;;  %p974_p9 = scmp.lt.u32.totalorder %s1197_s12, %s1250_s11 }
 0x116   : > { %p975_p10 = scmp.lt.u32.totalorder %s973_s15, %s969_s22  ;;  %p977_p12 = scmp.lt.u32.totalorder %s969_s22, %s1197_s12 }
 0x117   : > { %p971_p7 = pnand %p970_p4, %p1121_p5 }
 0x118   : > { %p976_p11 = por %p975_p10, %p974_p9 }
 0x119   : > { %p972_p8 = pneg %p971_p7 }
 0x11a   : > { %p978_p13 = por %p977_p12, %p976_p11 }
 0x11c   : > { %p979_p0 = pnand %p978_p13, %p972_p8 }
 0x11e   : > { %982 = shalt.err (!%p979_p0)
}
 0x11f   : > { %913 = dma.vmem_to_hbm [thread:$0]  (%p1121_p5), %s1199_s25, 16, %s1197_s12, %s758_s19  }
 0x120 PF: > { %p919_p1 = scmp.ge.s32.totalorder %s1017_s20, 2  ;;  %s782_s29 = sand.u32 1, %s1005_s17  }
 0x121   : > { %s783_s23 = scalar_lea.sflag [#allocation3], %s782_s29 }
 0x122   : > { %p916_p2 = pnand %p919_p1, %p1125_p6 }
 0x124   : > { %1000 = dma.done.wait (!%p916_p2), %s783_s23, 16  }
 0x125   : > { %1002 = vsyncadd (!%p916_p2), %s783_s23, 4294967280  ;;  %s1262_s20 = sld [smem:[#allocation6_spill]]  ;;  %s1263_s21 = sld [smem:[#allocation5_spill]] }
 0x126   : > { %s1264_s19 = sld [smem:[#allocation7_spill]]  ;;  %s1265_s17 = smov %s1009_s18 }
 0x12b   : > { %p21_p3 = scmp.ge.s32.totalorder %s1262_s20, 4   ;;  %s1266_s18 = smov %s1263_s21 }
 0x12d   :  { %23 = sbr.rel (!%p21_p3) target bundleno = 3 (0x3), region = 105 }
 0x134   :  { %787 = vsyncpa [#allocation3], 1 }
 0x135   :  { %789 = vsyncpa [#allocation3 + $0x1], 1 }

</bundles_post_ra>
